<compile_context>
chip_gen: v7x
topology: tpu7x:2x2x1
jax: 0.10.0
libtpu: 0.0.40
codegen_flags: <defaults>
</compile_context>

<pallas_src>
import jax
import jax.numpy as jnp
from jax.experimental import pallas as pl
from jax.experimental.pallas import tpu as pltpu

BN_EPS = 1e-5
LEAKY_SLOPE = 0.2
HIDDEN = 1024


def _batchnorm1d_train(h):
    """Training-mode BatchNorm1d with gamma=1, beta=0, f32, one pass.

    One-pass E[h^2]-E[h]^2 variance (clamped at 0).  Matches PyTorch to ~1e-3
    for discriminator-scale activations; switch to two-pass if exact parity is
    ever required.
    """
    inv_b = 1.0 / h.shape[0]
    s = jnp.sum(h, axis=0, keepdims=True)
    s2 = jnp.sum(h * h, axis=0, keepdims=True)
    mu = s * inv_b
    var = jnp.maximum(s2 * inv_b - mu * mu, 0.0)   # biased variance
    return (h - mu) * jax.lax.rsqrt(var + BN_EPS)


def _leaky_relu(h):
    # max(h, a*h) == LeakyReLU(a) for 0 < a < 1: mul+max instead of cmp+sel+mul.
    return jnp.maximum(h, LEAKY_SLOPE * h)


def adversarial_kernel(x_ref, w1_ref, w2_ref, w3_ref, b3_ref, o_ref, acc_ref):
    # grad_reverse is identity in the forward pass.
    # TODO(synk): the gradient reversal (backward-only, coeff=0.05) cannot be
    # expressed in a forward Pallas kernel; wrap adversarial_forward with
    # jax.custom_vjp if training gradients are needed.
    k = pl.program_id(0)

    @pl.when(k == 0)
    def _init():
        acc_ref[...] = jnp.zeros_like(acc_ref)

    # ---- Linear(in_feature, 1024): bf16 MXU matmul, f32 accumulation over K ----
    acc_ref[...] += jnp.dot(x_ref[...], w1_ref[...],
                            preferred_element_type=jnp.float32)

    @pl.when(k == pl.num_programs(0) - 1)
    def _finish():
        # BN + LeakyReLU (bias b1 cancelled by BN); keep only the bf16 copy live.
        h = _leaky_relu(_batchnorm1d_train(acc_ref[...])).astype(jnp.bfloat16)

        # ---- Linear(1024, 1024) [b2 cancelled by BN] + BN + LeakyReLU ----
        h = jnp.dot(h, w2_ref[...], preferred_element_type=jnp.float32)
        h = _leaky_relu(_batchnorm1d_train(h))

        # ---- Linear(1024, 1) + Sigmoid: lane reduction instead of N=1 matmul ----
        logits = jnp.sum(h * w3_ref[...], axis=-1) + b3_ref[0, 0]   # [B]
        o_ref[...] = jax.nn.sigmoid(logits)[None, :]                # lane-dense (1, B)


def _round_up(n, m):
    return ((n + m - 1) // m) * m


def _pick_vmem_limit():
    """Generation-aware scoped-VMEM limit."""
    try:
        cap = pltpu.get_tpu_info().vmem_capacity_bytes
    except Exception:
        cap = 64 << 20
    if cap <= (64 << 20):
        return 40 << 20      # v7x-class (64 MiB/TC): leave double-buffer headroom
    return 100 << 20         # v5e/v6e (128 MiB): allow large single-shot batches


def adversarial_forward(x, params, *, tk=None):
    """x: [B, in_feature] (f32 or bf16) -> [B] float32 (== PyTorch .view(-1))."""
    w1, w2, w3, b3 = params
    B, F = x.shape
    H = w1.shape[1]

    # bf16 activations at the kernel boundary: halves the dominant x DMA.
    # (Best when the upstream producer already emits bf16 so this cast fuses.)
    x = x.astype(jnp.bfloat16)

    # K-tiling: zero-pad in_feature to a multiple of tk (padding x and w1 with
    # zeros along K leaves the matmul unchanged).
    F_pad = _round_up(F, 128)
    if tk is None:
        tk = next(c for c in (512, 384, 256, 128) if F_pad % c == 0)
    assert tk % 128 == 0, "K tile must be a multiple of 128 (lane width)"
    F_pad = _round_up(F_pad, tk)
    if F_pad != F:
        x = jnp.pad(x, ((0, 0), (0, F_pad - F)))
    if w1.shape[0] != F_pad:
        w1 = jnp.pad(w1, ((0, F_pad - w1.shape[0]), (0, 0)))
    n_k = F_pad // tk

    out = pl.pallas_call(
        adversarial_kernel,
        out_shape=jax.ShapeDtypeStruct((1, B), jnp.float32),
        grid=(n_k,),
        in_specs=[
            pl.BlockSpec((B, tk), lambda k: (0, k)),   # x      [B, F_pad] bf16, K-tiled
            pl.BlockSpec((tk, H), lambda k: (k, 0)),   # w1     [F_pad, H] bf16, K-tiled
            pl.BlockSpec((H, H), lambda k: (0, 0)),    # w2     [H, H]     bf16, resident
            pl.BlockSpec((1, H), lambda k: (0, 0)),    # w3 row [1, H]     f32,  resident
            pl.BlockSpec(memory_space=pltpu.SMEM),     # b3     [1, 1]     f32 scalar
        ],
        out_specs=pl.BlockSpec((1, B), lambda k: (0, 0)),
        scratch_shapes=[pltpu.VMEM((B, H), jnp.float32)],   # layer-1 f32 accumulator
        compiler_params=pltpu.CompilerParams(
            dimension_semantics=("arbitrary",),
            vmem_limit_bytes=_pick_vmem_limit()),
    )(x, w1, w2, w3, b3)
    return out.reshape(-1)


def init_params(key, in_feature, hidden=HIDDEN):
    """Init matching PyTorch nn.Linear defaults (U(-1/sqrt(fan_in), +...)).

    - BatchNorm1d gamma=1 / beta=0 are folded away (identity affine).
    - b1/b2 are mathematically inert in training-mode BN (cancelled by the
      mean subtraction), so they are not materialized.
    - w1/w2 stored bf16 [in, out] for bf16 MXU matmuls with f32 accumulation.
    - w3 passed as an f32 (1, hidden) row for the lane reduction; b3 as (1, 1).
    """
    ks = jax.random.split(key, 6)

    def lin_w(kw, fan_in, fan_out, dtype):
        bound = 1.0 / jnp.sqrt(jnp.float32(fan_in))
        return jax.random.uniform(kw, (fan_in, fan_out), jnp.float32,
                                  -bound, bound).astype(dtype)

    def lin_b(kb, fan_in, fan_out):
        bound = 1.0 / jnp.sqrt(jnp.float32(fan_in))
        return jax.random.uniform(kb, (fan_out,), jnp.float32, -bound, bound)

    w1 = lin_w(ks[0], in_feature, hidden, jnp.bfloat16)   # b1 dropped (BN-cancelled)
    w2 = lin_w(ks[2], hidden, hidden, jnp.bfloat16)       # b2 dropped (BN-cancelled)
    w3 = lin_w(ks[4], hidden, 1, jnp.float32).reshape(1, hidden)
    b3 = lin_b(ks[5], hidden, 1).reshape(1, 1)
    return (w1, w2, w3, b3)


if __name__ == "__main__":
    key = jax.random.PRNGKey(0)
    k_x, k_p = jax.random.split(key)

    B, in_feature = 8, 256
    x = jax.random.normal(k_x, (B, in_feature), dtype=jnp.float32)
    params = init_params(k_p, in_feature)

    out = adversarial_forward(x, params, tk=128)   # exercises a 2-step K grid
    out = jax.block_until_ready(out)

    assert out.shape == (B,), out.shape
    assert bool(jnp.all(jnp.isfinite(out)))
    assert bool(jnp.all((out >= 0.0) & (out <= 1.0)))   # sigmoid range

    # Pure-JAX reference on the same bf16-cast weights / activations.
    w1, w2, w3, b3 = params

    def bn_ref(h):
        mu = jnp.mean(h, axis=0, keepdims=True)
        var = jnp.mean((h - mu) ** 2, axis=0, keepdims=True)
        return (h - mu) * jax.lax.rsqrt(var + BN_EPS)

    xb = x.astype(jnp.bfloat16).astype(jnp.float32)
    h = xb @ w1.astype(jnp.float32)
    h = _leaky_relu(bn_ref(h)).astype(jnp.bfloat16).astype(jnp.float32)
    h = h @ w2.astype(jnp.float32)
    h = _leaky_relu(bn_ref(h))
    ref = jax.nn.sigmoid(h @ w3.reshape(-1, 1).astype(jnp.float32) + b3[0, 0]).reshape(-1)
    assert bool(jnp.allclose(out, ref, atol=2e-2)), (out, ref)

    print("KERNEL_OK")
</pallas_src>

<mosaic_0001>
module attributes {stable_mosaic.version = 11 : i64} {
  func.func @adversarial_kernel(%arg0: i32, %arg1: memref<8x128xbf16, #tpu.memory_space<vmem>>, %arg2: memref<128x1024xbf16, #tpu.memory_space<vmem>>, %arg3: memref<1024x1024xbf16, #tpu.memory_space<vmem>>, %arg4: memref<1x1024xf32, #tpu.memory_space<vmem>>, %arg5: memref<1x1xf32, #tpu.memory_space<smem>>, %arg6: memref<1x8xf32, #tpu.memory_space<vmem>>, %arg7: memref<8x1024xf32, #tpu.memory_space<vmem>>) attributes {dimension_semantics = [#tpu.dimension_semantics<arbitrary>], iteration_bounds = array<i64: 2>, scalar_prefetch = 0 : i64, scratch_operands = 1 : i64, tpu.core_type = #tpu.core_type<tc>, window_params = [{transform_indices = @transform_0, window_bounds = array<i64: 8, 128>}, {transform_indices = @transform_1, window_bounds = array<i64: 128, 1024>}, {pipeline_mode = #tpu.pipeline_mode<synchronous>, transform_indices = @transform_2, window_bounds = array<i64: 1024, 1024>}, {pipeline_mode = #tpu.pipeline_mode<synchronous>, transform_indices = @transform_3, window_bounds = array<i64: 1, 1024>}, {transform_indices = @transform_4, window_bounds = array<i64: 1, 1>}, {pipeline_mode = #tpu.pipeline_mode<synchronous>, transform_indices = @transform_5, window_bounds = array<i64: 1, 8>}]} {
    %c0_i32 = arith.constant 0 : i32
    %0 = arith.cmpi eq, %arg0, %c0_i32 : i32
    %1 = arith.extui %0 : i1 to i32
    %c0_i32_0 = arith.constant 0 : i32
    %2 = arith.cmpi ne, %1, %c0_i32_0 : i32
    scf.if %2 {
      %cst_9 = arith.constant 0.000000e+00 : f32
      %12 = vector.broadcast %cst_9 : f32 to vector<8x1024xf32>
      %c0_10 = arith.constant 0 : index
      %c0_11 = arith.constant 0 : index
      %13 = vector.load %arg7[%c0_10, %c0_11] : memref<8x1024xf32, #tpu.memory_space<vmem>>, vector<8x1024xf32>
      tpu.vector_store %arg7[%c0_10, %c0_11], %12 {strides = array<i32>} : memref<8x1024xf32, #tpu.memory_space<vmem>>, vector<8x1024xf32>,
    } else {
    }
    %c0 = arith.constant 0 : index
    %c0_1 = arith.constant 0 : index
    %3 = vector.load %arg7[%c0, %c0_1] : memref<8x1024xf32, #tpu.memory_space<vmem>>, vector<8x1024xf32>
    %c0_2 = arith.constant 0 : index
    %c0_3 = arith.constant 0 : index
    %4 = vector.load %arg1[%c0_2, %c0_3] : memref<8x128xbf16, #tpu.memory_space<vmem>>, vector<8x128xbf16>
    %c0_4 = arith.constant 0 : index
    %c0_5 = arith.constant 0 : index
    %5 = vector.load %arg2[%c0_4, %c0_5] : memref<128x1024xbf16, #tpu.memory_space<vmem>>, vector<128x1024xbf16>
    %cst = arith.constant dense<0.000000e+00> : vector<8x1024xf32>
    %6 = tpu.matmul %4, %5, %cst {dimension_numbers = #tpu.dot_dimension_numbers<[1], [0], [0], [1], [0, 0, 1, 1], [], []>} : vector<8x128xbf16>, vector<128x1024xbf16>, vector<8x1024xf32> -> vector<8x1024xf32>
    %7 = arith.addf %3, %6 : vector<8x1024xf32>
    %c0_6 = arith.constant 0 : index
    %c0_7 = arith.constant 0 : index
    %8 = vector.load %arg7[%c0_6, %c0_7] : memref<8x1024xf32, #tpu.memory_space<vmem>>, vector<8x1024xf32>
    tpu.vector_store %arg7[%c0_6, %c0_7], %7 {strides = array<i32>} : memref<8x1024xf32, #tpu.memory_space<vmem>>, vector<8x1024xf32>,
    %c1_i32 = arith.constant 1 : i32
    %9 = arith.cmpi eq, %arg0, %c1_i32 : i32
    %10 = arith.extui %9 : i1 to i32
    %c0_i32_8 = arith.constant 0 : i32
    %11 = arith.cmpi ne, %10, %c0_i32_8 : i32
    scf.if %11 {
      %c0_9 = arith.constant 0 : index
      %c0_10 = arith.constant 0 : index
      %12 = vector.load %arg7[%c0_9, %c0_10] : memref<8x1024xf32, #tpu.memory_space<vmem>>, vector<8x1024xf32>
      %cst_11 = arith.constant dense<0.000000e+00> : vector<1024xf32>
      %13 = vector.multi_reduction <add>, %12, %cst_11 [0] : vector<8x1024xf32> to vector<1024xf32>
      %14 = vector.shape_cast %13 : vector<1024xf32> to vector<1x1024xf32>
      %15 = arith.mulf %12, %12 : vector<8x1024xf32>
      %cst_12 = arith.constant dense<0.000000e+00> : vector<1024xf32>
      %16 = vector.multi_reduction <add>, %15, %cst_12 [0] : vector<8x1024xf32> to vector<1024xf32>
      %17 = vector.shape_cast %16 : vector<1024xf32> to vector<1x1024xf32>
      %cst_13 = arith.constant 1.250000e-01 : f32
      %18 = vector.broadcast %cst_13 : f32 to vector<1x1024xf32>
      %19 = arith.mulf %14, %18 : vector<1x1024xf32>
      %cst_14 = arith.constant 1.250000e-01 : f32
      %20 = vector.broadcast %cst_14 : f32 to vector<1x1024xf32>
      %21 = arith.mulf %17, %20 : vector<1x1024xf32>
      %22 = arith.mulf %19, %19 : vector<1x1024xf32>
      %23 = arith.subf %21, %22 : vector<1x1024xf32>
      %cst_15 = arith.constant 0.000000e+00 : f32
      %24 = vector.broadcast %cst_15 : f32 to vector<1x1024xf32>
      %25 = arith.maximumf %23, %24 : vector<1x1024xf32>
      %26 = vector.broadcast %19 : vector<1x1024xf32> to vector<8x1024xf32>
      %27 = arith.subf %12, %26 : vector<8x1024xf32>
      %cst_16 = arith.constant 9.99999974E-6 : f32
      %28 = vector.broadcast %cst_16 : f32 to vector<1x1024xf32>
      %29 = arith.addf %25, %28 : vector<1x1024xf32>
      %30 = math.rsqrt %29 : vector<1x1024xf32>
      %31 = vector.broadcast %30 : vector<1x1024xf32> to vector<8x1024xf32>
      %32 = arith.mulf %27, %31 : vector<8x1024xf32>
      %cst_17 = arith.constant 2.000000e-01 : f32
      %33 = vector.broadcast %cst_17 : f32 to vector<8x1024xf32>
      %34 = arith.mulf %33, %32 : vector<8x1024xf32>
      %35 = arith.maximumf %32, %34 : vector<8x1024xf32>
      %36 = arith.truncf %35 : vector<8x1024xf32> to vector<8x1024xbf16>
      %c0_18 = arith.constant 0 : index
      %c0_19 = arith.constant 0 : index
      %37 = vector.load %arg3[%c0_18, %c0_19] : memref<1024x1024xbf16, #tpu.memory_space<vmem>>, vector<1024x1024xbf16>
      %cst_20 = arith.constant dense<0.000000e+00> : vector<8x1024xf32>
      %38 = tpu.matmul %36, %37, %cst_20 {dimension_numbers = #tpu.dot_dimension_numbers<[1], [0], [0], [1], [0, 0, 1, 1], [], []>} : vector<8x1024xbf16>, vector<1024x1024xbf16>, vector<8x1024xf32> -> vector<8x1024xf32>
      %cst_21 = arith.constant dense<0.000000e+00> : vector<1024xf32>
      %39 = vector.multi_reduction <add>, %38, %cst_21 [0] : vector<8x1024xf32> to vector<1024xf32>
      %40 = vector.shape_cast %39 : vector<1024xf32> to vector<1x1024xf32>
      %41 = arith.mulf %38, %38 : vector<8x1024xf32>
      %cst_22 = arith.constant dense<0.000000e+00> : vector<1024xf32>
      %42 = vector.multi_reduction <add>, %41, %cst_22 [0] : vector<8x1024xf32> to vector<1024xf32>
      %43 = vector.shape_cast %42 : vector<1024xf32> to vector<1x1024xf32>
      %cst_23 = arith.constant 1.250000e-01 : f32
      %44 = vector.broadcast %cst_23 : f32 to vector<1x1024xf32>
      %45 = arith.mulf %40, %44 : vector<1x1024xf32>
      %cst_24 = arith.constant 1.250000e-01 : f32
      %46 = vector.broadcast %cst_24 : f32 to vector<1x1024xf32>
      %47 = arith.mulf %43, %46 : vector<1x1024xf32>
      %48 = arith.mulf %45, %45 : vector<1x1024xf32>
      %49 = arith.subf %47, %48 : vector<1x1024xf32>
      %cst_25 = arith.constant 0.000000e+00 : f32
      %50 = vector.broadcast %cst_25 : f32 to vector<1x1024xf32>
      %51 = arith.maximumf %49, %50 : vector<1x1024xf32>
      %52 = vector.broadcast %45 : vector<1x1024xf32> to vector<8x1024xf32>
      %53 = arith.subf %38, %52 : vector<8x1024xf32>
      %cst_26 = arith.constant 9.99999974E-6 : f32
      %54 = vector.broadcast %cst_26 : f32 to vector<1x1024xf32>
      %55 = arith.addf %51, %54 : vector<1x1024xf32>
      %56 = math.rsqrt %55 : vector<1x1024xf32>
      %57 = vector.broadcast %56 : vector<1x1024xf32> to vector<8x1024xf32>
      %58 = arith.mulf %53, %57 : vector<8x1024xf32>
      %cst_27 = arith.constant 2.000000e-01 : f32
      %59 = vector.broadcast %cst_27 : f32 to vector<8x1024xf32>
      %60 = arith.mulf %59, %58 : vector<8x1024xf32>
      %61 = arith.maximumf %58, %60 : vector<8x1024xf32>
      %c0_28 = arith.constant 0 : index
      %c0_29 = arith.constant 0 : index
      %62 = vector.load %arg4[%c0_28, %c0_29] : memref<1x1024xf32, #tpu.memory_space<vmem>>, vector<1x1024xf32>
      %63 = vector.broadcast %62 : vector<1x1024xf32> to vector<8x1024xf32>
      %64 = arith.mulf %61, %63 : vector<8x1024xf32>
      %cst_30 = arith.constant dense<0.000000e+00> : vector<8xf32>
      %65 = vector.multi_reduction <add>, %64, %cst_30 [1] : vector<8x1024xf32> to vector<8xf32>
      %c0_31 = arith.constant 0 : index
      %c0_32 = arith.constant 0 : index
      %66 = memref.load %arg5[%c0_31, %c0_32] : memref<1x1xf32, #tpu.memory_space<smem>>
      %67 = vector.broadcast %66 : f32 to vector<8xf32>
      %68 = arith.addf %65, %67 : vector<8xf32>
      %69 = arith.negf %68 : vector<8xf32>
      %70 = math.exp %69 : vector<8xf32>
      %cst_33 = arith.constant 1.000000e+00 : f32
      %71 = vector.broadcast %cst_33 : f32 to vector<8xf32>
      %72 = arith.addf %71, %70 : vector<8xf32>
      %73 = arith.divf %71, %72 : vector<8xf32>
      %74 = vector.shape_cast %73 : vector<8xf32> to vector<1x8xf32>
      %c0_34 = arith.constant 0 : index
      %c0_35 = arith.constant 0 : index
      %75 = vector.load %arg6[%c0_34, %c0_35] : memref<1x8xf32, #tpu.memory_space<vmem>>, vector<1x8xf32>
      tpu.vector_store %arg6[%c0_34, %c0_35], %74 {strides = array<i32>} : memref<1x8xf32, #tpu.memory_space<vmem>>, vector<1x8xf32>,
    } else {
    }
    return
  }
  func.func @transform_0(%arg0: i32) -> (i32, i32) {
    %c0_i32 = arith.constant 0 : i32
    %c0_i32_0 = arith.constant 0 : i32
    return %c0_i32, %arg0 : i32, i32
  }
  func.func @transform_1(%arg0: i32) -> (i32, i32) {
    %c0_i32 = arith.constant 0 : i32
    %c0_i32_0 = arith.constant 0 : i32
    return %arg0, %c0_i32 : i32, i32
  }
  func.func @transform_2(%arg0: i32) -> (i32, i32) {
    %c0_i32 = arith.constant 0 : i32
    %c0_i32_0 = arith.constant 0 : i32
    %c0_i32_1 = arith.constant 0 : i32
    return %c0_i32, %c0_i32_0 : i32, i32
  }
  func.func @transform_3(%arg0: i32) -> (i32, i32) {
    %c0_i32 = arith.constant 0 : i32
    %c0_i32_0 = arith.constant 0 : i32
    %c0_i32_1 = arith.constant 0 : i32
    return %c0_i32, %c0_i32_0 : i32, i32
  }
  func.func @transform_4(%arg0: i32) -> (i32, i32) {
    %c0_i32 = arith.constant 0 : i32
    %c0_i32_0 = arith.constant 0 : i32
    %c0_i32_1 = arith.constant 0 : i32
    return %c0_i32, %c0_i32_0 : i32, i32
  }
  func.func @transform_5(%arg0: i32) -> (i32, i32) {
    %c0_i32 = arith.constant 0 : i32
    %c0_i32_0 = arith.constant 0 : i32
    %c0_i32_1 = arith.constant 0 : i32
    return %c0_i32, %c0_i32_0 : i32, i32
  }
}

</mosaic_0001>

<bundles_post_ra>
// kernel: tpu_custom_call.1
= control target key start
LH: loop header
LB: loop body
LE: loop exit
PB: predicated region body
PF: predicated region fallthrough
CT: control target
= control target key end

     0   :  { %s6868_s0 = inlined_call_operand.hbm [shape: bf16[8,256], index: 0, kind: input, shape index: {}]   ;;  %s6869_s1 = inlined_call_operand.hbm [shape: bf16[256,1024], index: 1, kind: input, shape index: {}]   ;;  %s6870_s2 = inlined_call_operand.hbm [shape: bf16[1024,1024], index: 2, kind: input, shape index: {}]   ;;  %s6871_s3 = inlined_call_operand.hbm [shape: f32[1,1024], index: 3, kind: input, shape index: {}]   ;;  %s6872_s4 = inlined_call_operand.<no memory space> [shape: f32[1,1], index: 4, kind: input, shape index: {}]   ;;  %s6873_s5 = inlined_call_operand.hbm [shape: f32[1,8], index: 5, kind: output, shape index: {}]  }
   0x1   :  { %10 = sst [smem:[#allocation3]] %s6872_s4 }
   0x2   :  { %11 = vsyncpa [#allocation5], 0 }
   0x3   :  { %13 = vsyncpa [#allocation5 + $0x1], 0 }
   0x4   :  { %14 = vsyncpa [#allocation8], 0 }
   0x5   :  { %16 = vsyncpa [#allocation8 + $0x1], 0 }
   0x6   :  { %17 = vsyncpa [#allocation11], 0 }
   0x7   :  { %18 = vsyncpa [#allocation6], 0  ;;  %s6190_s20 = smov 0   ;;  %s6192_s21 = smov 0  }
   0x8   :  { %s6194_s22 = smov 0   ;;  %s6196_s23 = smov 0  }
   0x9 LB: > { %s6209_s4 = sadd.s32 4294967295, %s6146_s23   ;;  %p44_p0 = scmp.ne.s32.totalorder %s6138_s21, %s6134_s20  ;;  %s6146_s23 = sphi %s6196_s23, %s6891_s23   ;;  %s6142_s22 = sphi %s6194_s22, %s6890_s22   ;;  %s6138_s21 = sphi %s6192_s21, %s6889_s21   ;;  %s6134_s20 = sphi %s6190_s20, %s6888_s20  }
   0xa   : > { %p6874_p1 = scmp.eq.s32.totalorder %s6209_s4, 0  ;;  %p5194_p2 = scmp.ge.s32.totalorder %s6146_s23, 1 }
   0xb   : > { %p165_p3 = scmp.lt.s32.totalorder %s6146_s23, 3  ;;  %s6148_s26 = smov [#allocation9]  }
   0xc   : > { %p6218_p5 = por %p6874_p1, %p44_p0  ;;  %s177_s27 = sshll.u32 %s6148_s26, 4  ;;  %s178_s27 = int_to_ptr.vmem [resolvable:$true] %s177_s27 }
   0xd   : > { %p6222_p6 = pnand %p5194_p2, %p165_p3  ;;  %s6149_s29 = smov [#allocation10]  }
   0xe   : > { %s6877_s24 = scalar_select %p6218_p5, 1, 0 }
   0xf   : > { %s6878_s25 = scalar_select %p6222_p6, 1, 0 }
  0x10   : > { %p5858_p7 = pneg %p6222_p6  ;;  %s191_s30 = sshll.u32 %s6149_s29, 4  ;;  %s6234_s30 = int_to_ptr.vmem [resolvable:$true] %s191_s30 }
  0x11   : > { %s5954_s8 = scalar_lea.hbm %s6870_s2, 65536 }
  0x12   : > { %p6230_p8 = pnand %p5858_p7, %p6874_p1  ;;  %p5955_p9 = scmp.ne.s32.totalorder %s6870_s2, %s5954_s8 }
  0x13   : > { %p5961_p13 = scmp.lt.u32.totalorder %s5954_s8, %s6870_s2 }
  0x14   : > { %p5956_p10 = pneg %p6230_p8 }
  0x16   : > { %p5957_p11 = pnand %p5956_p10, %p5955_p9 }
  0x18   : > { %p5958_p12 = pneg %p5957_p11 }
  0x1a   : > { %p5963_p0 = pnand %p5961_p13, %p5958_p12 }
  0x1c   : > { %5966 = shalt.err (!%p5963_p0)
}
  0x1d   : > { %s5967_s13 = scalar_lea.vmem %s178_s27, 65536  ;;  %p5975_p4 = scmp.lt.s32.totalorder %s178_s27, %s178_s27 }
  0x1e   : > { %p5968_p2 = scmp.ne.s32.totalorder %s178_s27, %s5967_s13  ;;  %p5976_p1 = scmp.lt.s32.totalorder %s5967_s13, %s5967_s13 }
  0x20   : > { %p5970_p3 = pnand %p5968_p2, %p5956_p10  ;;  %p5977_p5 = por %p5976_p1, %p5975_p4 }
  0x22   : > { %p5971_p7 = pneg %p5970_p3 }
  0x24   : > { %p5978_p6 = pnand %p5977_p5, %p5971_p7 }
  0x26   : > { %5981 = shalt.err (!%p5978_p6)
}
  0x27   : > { %s6150_s14 = smov 512   ;;  %s6151_s15 = smov 32  }
  0x28   : > { %5861 = dma.hbm_to_vmem [thread:$0]  (!%p6230_p8), %s6870_s2, 65536, %s178_s27, [#allocation8], %s6150_s14, %s6150_s14, %s6151_s15  }
  0x29   : > { %s5982_s20 = scalar_lea.hbm %s6871_s3, 128 }
  0x2a   : > { %p5983_p1 = scmp.ne.s32.totalorder %s6871_s3, %s5982_s20  ;;  %p5989_p6 = scmp.lt.u32.totalorder %s5982_s20, %s6871_s3 }
  0x2c   : > { %p5985_p4 = pnand %p5983_p1, %p5956_p10 }
  0x2e   : > { %p5986_p5 = pneg %p5985_p4 }
  0x30   : > { %p5991_p9 = pnand %p5989_p6, %p5986_p5 }
  0x32   : > { %5994 = shalt.err (!%p5991_p9)
}
  0x33   : > { %s5995_s27 = scalar_lea.vmem %s6234_s30, 128  ;;  %p6003_p0 = scmp.lt.s32.totalorder %s6234_s30, %s6234_s30 }
  0x34   : > { %p5996_p11 = scmp.ne.s32.totalorder %s6234_s30, %s5995_s27  ;;  %p6004_p2 = scmp.lt.s32.totalorder %s5995_s27, %s5995_s27 }
  0x36   : > { %p5998_p12 = pnand %p5996_p11, %p5956_p10  ;;  %p6005_p3 = por %p6004_p2, %p6003_p0 }
  0x38   : > { %p5999_p13 = pneg %p5998_p12 }
  0x3a   : > { %p6006_p7 = pnand %p6005_p3, %p5999_p13 }
  0x3c   : > { %6009 = shalt.err (!%p6006_p7)
}
  0x3d   : > { %5864 = dma.hbm_to_vmem [thread:$0]  (!%p6230_p8), %s6871_s3, 128, %s6234_s30, [#allocation11]  }
  0x3e   : > { %s6287_s10 = sadd.s32 1, %s6146_s23   ;;  %s31_s11 = sadd.s32 1, %s6142_s22 }
  0x3f   : > { %s28_s28 = ssub.s32 %s6146_s23, %s6287_s10  ;;  %p38_p10 = scmp.ne.s32.totalorder %s6142_s22, %s6138_s21 }
  0x40   : > { %p29_p1 = scmp.eq.s32.totalorder %s28_s28, 0  ;;  %p39_p4 = scmp.eq.s32.totalorder %s6146_s23, 0 }
  0x41   : > { %p5874_p5 = scmp.lt.s32.totalorder %s6146_s23, 2  ;;  %s6297_s12 = sand.u32 1, %s6142_s22  }
  0x42   : > { %s6300_s13 = scalar_select %p29_p1, %s6142_s22, %s31_s11  }
  0x43   : > { %p40_p6 = por %p39_p4, %p38_p10  ;;  %s5198_s16 = sshll.u32 %s6297_s12, 2 }
  0x44   : > { %s5199_s17 = sshll.u32 %s6146_s23, 6  ;;  %s209_s20 = scalar_lea.vmem [#allocation4], %s5198_s16 }
  0x45   : > { %s6307_s19 = scalar_lea.hbm %s6868_s0, %s5199_s17  ;;  %s216_s26 = sshll.u32 %s209_s20, 4  ;;  %s6313_s26 = int_to_ptr.vmem [resolvable:$true] %s216_s26 }
  0x46   : > { %p6309_p8 = pnand %p5874_p5, %p40_p6  ;;  %s5200_s6 = sshll.u32 %s6297_s12, 9 }
  0x47   : > { %s206_s7 = scalar_lea.sflag [#allocation5], %s6297_s12  ;;  %s6010_s27 = scalar_lea.hbm %s6307_s19, 64 }
  0x48   : > { %p6011_p9 = scmp.ne.s32.totalorder %s6307_s19, %s6010_s27  ;;  %p6012_p11 = pneg %p6309_p8 }
  0x49   : > { %s6015_s11 = scalar_lea.hbm %s6868_s0, 128  ;;  %p6016_p0 = scmp.lt.u32.totalorder %s6307_s19, %s6868_s0 }
  0x4a   : > { %p6013_p12 = pnand %p6012_p11, %p6011_p9  ;;  %p6017_p2 = scmp.lt.u32.totalorder %s6015_s11, %s6010_s27 }
  0x4b   : > { %p6019_p7 = scmp.lt.u32.totalorder %s6010_s27, %s6307_s19 }
  0x4c   : > { %p6014_p13 = pneg %p6013_p12  ;;  %p6018_p3 = por %p6017_p2, %p6016_p0 }
  0x4e   : > { %p6020_p10 = por %p6019_p7, %p6018_p3 }
  0x50   : > { %p6021_p1 = pnand %p6020_p10, %p6014_p13 }
  0x52   : > { %6024 = shalt.err (!%p6021_p1)
}
  0x53   : > { %s6025_s17 = scalar_lea.vmem %s6313_s26, 64  ;;  %s6152_s30 = smov [#allocation4]  }
  0x54   : > { %p6026_p4 = scmp.ne.s32.totalorder %s6313_s26, %s6025_s17  ;;  %s6030_s18 = sshll.u32 %s6152_s30, 4  ;;  %s6031_s18 = int_to_ptr.vmem [resolvable:$false] %s6030_s18 }
  0x55   : > { %s6032_s20 = scalar_lea.vmem %s6031_s18, 128  ;;  %p6033_p9 = scmp.lt.s32.totalorder %s6313_s26, %s6031_s18 }
  0x56   : > { %p6028_p5 = pnand %p6026_p4, %p6012_p11  ;;  %p6034_p12 = scmp.lt.s32.totalorder %s6032_s20, %s6025_s17 }
  0x58   : > { %p6029_p6 = pneg %p6028_p5  ;;  %p6035_p0 = por %p6034_p12, %p6033_p9 }
  0x5a   : > { %p6036_p2 = pnand %p6035_p0, %p6029_p6 }
  0x5c   : > { %6039 = shalt.err (!%p6036_p2)
}
  0x5d   : > { %5868 = dma.hbm_to_vmem [thread:$0]  (!%p6309_p8), %s6307_s19, 64, %s6313_s26, %s206_s7  }
  0x5e   : > { %s227_s27 = scalar_lea.vmem [#allocation7], %s5200_s6  ;;  %s223_s9 = sand.u32 1, %s6146_s23  }
  0x5f   : > { %s235_s8 = sshll.u32 %s227_s27, 4  ;;  %s5793_s11 = sshll.u32 %s6146_s23, 13  ;;  %s6345_s8 = int_to_ptr.vmem [resolvable:$true] %s235_s8 }
  0x60   : > { %s6351_s17 = scalar_lea.hbm %s6869_s1, %s5793_s11  ;;  %s6353_s30 = scalar_lea.sflag [#allocation8], %s223_s9 }
  0x61   : > { %s6040_s18 = scalar_lea.hbm %s6351_s17, 8192  ;;  %s6045_s23 = scalar_lea.hbm %s6869_s1, 16384 }
  0x62   : > { %p6041_p13 = scmp.ne.s32.totalorder %s6351_s17, %s6040_s18  ;;  %p6046_p10 = scmp.lt.u32.totalorder %s6351_s17, %s6869_s1 }
  0x63   : > { %p6047_p1 = scmp.lt.u32.totalorder %s6045_s23, %s6040_s18  ;;  %p6049_p5 = scmp.lt.u32.totalorder %s6040_s18, %s6351_s17 }
  0x64   : > { %p6043_p3 = pnand %p6041_p13, %p6012_p11 }
  0x65   : > { %p6048_p4 = por %p6047_p1, %p6046_p10 }
  0x66   : > { %p6044_p7 = pneg %p6043_p3 }
  0x67   : > { %p6050_p6 = por %p6049_p5, %p6048_p4 }
  0x69   : > { %p6051_p9 = pnand %p6050_p6, %p6044_p7 }
  0x6b   : > { %6054 = shalt.err (!%p6051_p9)
}
  0x6c   : > { %s6055_s7 = scalar_lea.vmem %s6345_s8, 8192  ;;  %s6153_s20 = smov [#allocation7]  }
  0x6d   : > { %p6056_p12 = scmp.ne.s32.totalorder %s6345_s8, %s6055_s7  ;;  %s6060_s27 = sshll.u32 %s6153_s20, 4  ;;  %s6061_s27 = int_to_ptr.vmem [resolvable:$false] %s6060_s27 }
  0x6e   : > { %s6062_s9 = scalar_lea.vmem %s6061_s27, 16384  ;;  %p6063_p13 = scmp.lt.s32.totalorder %s6345_s8, %s6061_s27 }
  0x6f   : > { %p6058_p0 = pnand %p6056_p12, %p6012_p11  ;;  %p6064_p3 = scmp.lt.s32.totalorder %s6062_s9, %s6055_s7 }
  0x71   : > { %p6059_p2 = pneg %p6058_p0  ;;  %p6065_p10 = por %p6064_p3, %p6063_p13 }
  0x73   : > { %p6066_p1 = pnand %p6065_p10, %p6059_p2 }
  0x75   : > { %6069 = shalt.err (!%p6066_p1)
}
  0x76   : > { %5871 = dma.hbm_to_vmem [thread:$0]  (!%p6309_p8), %s6351_s17, 8192, %s6345_s8, %s6353_s30, %s6150_s14, %s6150_s14, %s6151_s15  }
  0x77   : > { %p6881_p11 = scmp.ne.s32.totalorder %s6878_s25, 0 }
  0x78   : > { %s249_s11 = sand.u32 (!%p6881_p11), 1, %s6138_s21   ;;  %p6882_p7 = scmp.ne.s32.totalorder (!%p6881_p11), %s6877_s24, 0 }
  0x79   : > { %247 = sbr.rel (%p6881_p11) target bundleno = 1381 (0x565), region = 40  ;;  %s5205_s28 = sshll.u32 (!%p6881_p11), %s249_s11, 2 }
  0x7a   : > { %s250_s16 = scalar_lea.sflag (!%p6881_p11), [#allocation5], %s249_s11  ;;  %s6385_s18 = scalar_lea.vmem (!%p6881_p11), [#allocation4], %s5205_s28 }
  0x80   : > { %6113 = dma.done.wait (%p6882_p7), %s250_s16, 64  }
  0x81   : > { %6115 = vsyncadd (%p6882_p7), %s250_s16, 4294967232  ;;  %s258_s29 = sand.u32 1, %s6209_s4   ;;  %s5206_s12 = sshll.u32 %s249_s11, 9 }
  0x82   : > { %s259_s14 = scalar_lea.sflag [#allocation8], %s258_s29  ;;  %s6392_s15 = scalar_lea.vmem [#allocation7], %s5206_s12 }
  0x83   : > { %6117 = dma.done.wait (%p6882_p7), %s259_s14, 8192  }
  0x84   : > { %6119 = vsyncadd (%p6882_p7), %s259_s14, 4294959104  ;;  %p6883_p8 = scmp.eq.s32.totalorder %s6209_s4, 0 }
  0x86   : > { %6121 = dma.done.wait (%p6883_p8), [#allocation8], 65536   ;;  %p6884_p4 = pmov %p6883_p8 }
  0x88   : > { %6123 = vsyncadd (%p6884_p4), [#allocation8], 4294901760  ;;  %p6885_p5 = pmov %p6884_p4 }
  0x89   : > { %p6886_p6 = pmov %p6884_p4 }
  0x8a   : > { %6125 = dma.done.wait (%p6885_p5), [#allocation11], 128  }
  0x8b   : > { %6127 = vsyncadd (%p6886_p6), [#allocation11], 4294967168  ;;  %p6887_p9 = scmp.ne.s32.totalorder %s6209_s4, 0 }
  0x8c   : > { %v6154_v0 = vmov (!%p6887_p9), 0.0  }
  0x8d   : > { %302 = sbr.rel (%p6887_p9) target bundleno = 148 (0x94), region = 60  ;;  %303 = vst [vmem:[#allocation2] sm:$0xff] (!%p6887_p9), %v6154_v0  ;;  %304 = vst [vmem:[#allocation2 + $0x8] sm:$0xff] (!%p6887_p9), %v6154_v0 }
  0x8e   : > { %305 = vst [vmem:[#allocation2 + $0x10] sm:$0xff] (!%p6887_p9), %v6154_v0  ;;  %306 = vst [vmem:[#allocation2 + $0x18] sm:$0xff] (!%p6887_p9), %v6154_v0 }
  0x8f   : > { %307 = vst [vmem:[#allocation2 + $0x20] sm:$0xff] (!%p6887_p9), %v6154_v0  ;;  %308 = vst [vmem:[#allocation2 + $0x28] sm:$0xff] (!%p6887_p9), %v6154_v0 }
  0x90   : > { %309 = vst [vmem:[#allocation2 + $0x30] sm:$0xff] (!%p6887_p9), %v6154_v0  ;;  %310 = vst [vmem:[#allocation2 + $0x38] sm:$0xff] (!%p6887_p9), %v6154_v0 }
  0x94 PF: > { %v320_v1 = vld [vmem:[%s6392_s15] sm:$0xff]  ;;  %v321_v3 = vld [vmem:[%s6392_s15 + $0x8] sm:$0xff]  ;;  %v6155_v9 = vmov 0   ;;  %v322_v0 = vld [vmem:[%s6392_s15 + $0x10] sm:$0xff]  ;;  %p5274_p12 = scmp.ne.s32.totalorder %s6209_s4, 1 }
  0x95   : > { %v324_v2 = vld [vmem:[%s6392_s15 + $0x20] sm:$0xff]  ;;  %v325_v5 = vld [vmem:[%s6392_s15 + $0x28] sm:$0xff]  ;;  %736 = vmatprep.mubr.bf16.mxu0 %v6155_v9  ;;  %777 = vmatprep.mubr.bf16.mxu1 %v6155_v9  ;;  %s5075_s24 = sld [smem:[#allocation3]] (!%p5274_p12)  ;;  %vm5092_vm0 = vcmask (!%p5274_p12), 57344  }
  0x96   : > { %v5211_v4 = vcombine.high %v320_v1, %v324_v2  ;;  %v5210_v6 = vcombine.low %v320_v1, %v324_v2  ;;  %v328_v7 = vld [vmem:[%s6392_s15 + $0x40] sm:$0xff]  ;;  %v5213_v10 = vcombine.high %v321_v3, %v325_v5  ;;  %v5212_v11 = vcombine.low %v321_v3, %v325_v5  ;;  %v329_v13 = vld [vmem:[%s6392_s15 + $0x48] sm:$0xff]  ;;  %v326_v1 = vld [vmem:[%s6392_s15 + $0x30] sm:$0xff] }
  0x97   : > { %v332_v8 = vld [vmem:[%s6392_s15 + $0x60] sm:$0xff]  ;;  %v333_v14 = vld [vmem:[%s6392_s15 + $0x68] sm:$0xff]  ;;  %v323_v2 = vld [vmem:[%s6392_s15 + $0x18] sm:$0xff] }
  0x98   : > { %v5219_v12 = vcombine.high %v328_v7, %v332_v8  ;;  %v336_v15 = vld [vmem:[%s6392_s15 + $0x80] sm:$0xff]  ;;  %704 = vmatprep.subr.bf16.mxu0 %v5211_v4  ;;  %v5221_v16 = vcombine.high %v329_v13, %v333_v14  ;;  %v337_v18 = vld [vmem:[%s6392_s15 + $0x88] sm:$0xff]  ;;  %745 = vmatprep.subr.bf16.mxu1 %v5213_v10  ;;  %v5218_v20 = vcombine.low %v328_v7, %v332_v8  ;;  %v327_v3 = vld [vmem:[%s6392_s15 + $0x38] sm:$0xff] }
  0x99   : > { %v340_v17 = vld [vmem:[%s6392_s15 + $0xa0] sm:$0xff]  ;;  %v341_v19 = vld [vmem:[%s6392_s15 + $0xa8] sm:$0xff]  ;;  %705 = vmatpush1.bf16.msra.mxu0 %v5210_v6  ;;  %746 = vmatpush1.bf16.msra.mxu1 %v5212_v11  ;;  %v5220_v21 = vcombine.low %v329_v13, %v333_v14  ;;  %v5215_v6 = vcombine.high %v322_v0, %v326_v1  ;;  %v5217_v7 = vcombine.high %v323_v2, %v327_v3  ;;  %v330_v8 = vld [vmem:[%s6392_s15 + $0x50] sm:$0xff] }
  0x9a   : > { %706 = vmatprep.subr.bf16.mxu0 %v5219_v12  ;;  %v5227_v22 = vcombine.high %v336_v15, %v340_v17  ;;  %747 = vmatprep.subr.bf16.mxu1 %v5221_v16  ;;  %v5229_v23 = vcombine.high %v337_v18, %v341_v19  ;;  %v344_v24 = vld [vmem:[%s6392_s15 + $0xc0] sm:$0xff]  ;;  %v345_v26 = vld [vmem:[%s6392_s15 + $0xc8] sm:$0xff]  ;;  %v5226_v28 = vcombine.low %v336_v15, %v340_v17  ;;  %v334_v10 = vld [vmem:[%s6392_s15 + $0x70] sm:$0xff] }
  0x9b   : > { %v348_v25 = vld [vmem:[%s6392_s15 + $0xe0] sm:$0xff]  ;;  %v349_v27 = vld [vmem:[%s6392_s15 + $0xe8] sm:$0xff]  ;;  %v5228_v29 = vcombine.low %v337_v18, %v341_v19  ;;  %v331_v11 = vld [vmem:[%s6392_s15 + $0x58] sm:$0xff]  ;;  %v5214_v14 = vcombine.low %v322_v0, %v326_v1  ;;  %v5216_v15 = vcombine.low %v323_v2, %v327_v3  ;;  %v5223_v16 = vcombine.high %v330_v8, %v334_v10 }
  0x9c   : > { %v5235_v30 = vcombine.high %v344_v24, %v348_v25  ;;  %v5237_v31 = vcombine.high %v345_v26, %v349_v27  ;;  %v352_v32 = vld [vmem:[%s6392_s15 + $0x100] sm:$0xff]  ;;  %v353_v34 = vld [vmem:[%s6392_s15 + $0x108] sm:$0xff]  ;;  %v5234_v36 = vcombine.low %v344_v24, %v348_v25  ;;  %v5236_v37 = vcombine.low %v345_v26, %v349_v27  ;;  %v335_v12 = vld [vmem:[%s6392_s15 + $0x78] sm:$0xff] }
  0x9d   : > { %707 = vmatpush1.bf16.msra.mxu0 %v5218_v20  ;;  %748 = vmatpush1.bf16.msra.mxu1 %v5220_v21  ;;  %v356_v33 = vld [vmem:[%s6392_s15 + $0x120] sm:$0xff]  ;;  %v357_v35 = vld [vmem:[%s6392_s15 + $0x128] sm:$0xff]  ;;  %v6451_v13 = vld [vmem:[%s6385_s18] sm:$0xf]  ;;  %v5225_v17 = vcombine.high %v331_v11, %v335_v12 }
  0x9e   : > { %708 = vmatprep.subr.bf16.mxu0 %v5227_v22  ;;  %749 = vmatprep.subr.bf16.mxu1 %v5229_v23  ;;  %v5243_v38 = vcombine.high %v352_v32, %v356_v33  ;;  %v5245_v39 = vcombine.high %v353_v34, %v357_v35  ;;  %v360_v40 = vld [vmem:[%s6392_s15 + $0x140] sm:$0xff]  ;;  %v361_v42 = vld [vmem:[%s6392_s15 + $0x148] sm:$0xff]  ;;  %v5242_v44 = vcombine.low %v352_v32, %v356_v33  ;;  %v338_v18 = vld [vmem:[%s6392_s15 + $0x90] sm:$0xff] }
  0x9f   : > { %v364_v41 = vld [vmem:[%s6392_s15 + $0x160] sm:$0xff]  ;;  %v365_v43 = vld [vmem:[%s6392_s15 + $0x168] sm:$0xff]  ;;  %v5244_v45 = vcombine.low %v353_v34, %v357_v35  ;;  %v342_v19 = vld [vmem:[%s6392_s15 + $0xb0] sm:$0xff]  ;;  %v5222_v22 = vcombine.low %v330_v8, %v334_v10  ;;  %v5224_v23 = vcombine.low %v331_v11, %v335_v12 }
  0xa0   : > { %v5251_v46 = vcombine.high %v360_v40, %v364_v41  ;;  %v5253_v47 = vcombine.high %v361_v42, %v365_v43  ;;  %v368_v48 = vld [vmem:[%s6392_s15 + $0x180] sm:$0xff]  ;;  %v369_v50 = vld [vmem:[%s6392_s15 + $0x188] sm:$0xff]  ;;  %v5250_v52 = vcombine.low %v360_v40, %v364_v41  ;;  %v5252_v53 = vcombine.low %v361_v42, %v365_v43  ;;  %v339_v20 = vld [vmem:[%s6392_s15 + $0x98] sm:$0xff] }
  0xa1   : > { %709 = vmatpush1.bf16.msra.mxu0 %v5226_v28  ;;  %750 = vmatpush1.bf16.msra.mxu1 %v5228_v29  ;;  %v372_v49 = vld [vmem:[%s6392_s15 + $0x1a0] sm:$0xff]  ;;  %v373_v51 = vld [vmem:[%s6392_s15 + $0x1a8] sm:$0xff]  ;;  %v343_v21 = vld [vmem:[%s6392_s15 + $0xb8] sm:$0xff]  ;;  %v5231_v24 = vcombine.high %v338_v18, %v342_v19 }
  0xa2   : > { %710 = vmatprep.subr.bf16.mxu0 %v5235_v30  ;;  %751 = vmatprep.subr.bf16.mxu1 %v5237_v31  ;;  %v5259_v54 = vcombine.high %v368_v48, %v372_v49  ;;  %v5261_v55 = vcombine.high %v369_v50, %v373_v51  ;;  %v376_v56 = vld [vmem:[%s6392_s15 + $0x1c0] sm:$0xff]  ;;  %v377_v58 = vld [vmem:[%s6392_s15 + $0x1c8] sm:$0xff]  ;;  %v5258_v60 = vcombine.low %v368_v48, %v372_v49  ;;  %v346_v26 = vld [vmem:[%s6392_s15 + $0xd0] sm:$0xff] }
  0xa3   : > { %v380_v57 = vld [vmem:[%s6392_s15 + $0x1e0] sm:$0xff]  ;;  %v381_v59 = vld [vmem:[%s6392_s15 + $0x1e8] sm:$0xff]  ;;  %v5260_v61 = vcombine.low %v369_v50, %v373_v51  ;;  %v5233_v25 = vcombine.high %v339_v20, %v343_v21  ;;  %v350_v27 = vld [vmem:[%s6392_s15 + $0xf0] sm:$0xff]  ;;  %v5230_v30 = vcombine.low %v338_v18, %v342_v19  ;;  %v5232_v31 = vcombine.low %v339_v20, %v343_v21 }
  0xa4   : > { %v5267_v62 = vcombine.high %v376_v56, %v380_v57  ;;  %v5269_v63 = vcombine.high %v377_v58, %v381_v59  ;;  %v5266_v4 = vcombine.low %v376_v56, %v380_v57  ;;  %v5268_v5 = vcombine.low %v377_v58, %v381_v59  ;;  %v347_v28 = vld [vmem:[%s6392_s15 + $0xd8] sm:$0xff]  ;;  %v354_v34 = vld [vmem:[%s6392_s15 + $0x110] sm:$0xff]  ;;  %v317_v21 = vld [vmem:[#allocation2 + $0x30] sm:$0xff] }
  0xa5   : > { %711 = vmatpush1.bf16.msra.mxu0 %v5234_v36  ;;  %752 = vmatpush1.bf16.msra.mxu1 %v5236_v37  ;;  %v351_v29 = vld [vmem:[%s6392_s15 + $0xf8] sm:$0xff]  ;;  %v5239_v32 = vcombine.high %v346_v26, %v350_v27  ;;  %v358_v35 = vld [vmem:[%s6392_s15 + $0x130] sm:$0xff] }
  0xa6   : > { %712 = vmatprep.subr.bf16.mxu0 %v5243_v38  ;;  %753 = vmatprep.subr.bf16.mxu1 %v5245_v39  ;;  %v5241_v33 = vcombine.high %v347_v28, %v351_v29  ;;  %v355_v36 = vld [vmem:[%s6392_s15 + $0x118] sm:$0xff]  ;;  %v5238_v38 = vcombine.low %v346_v26, %v350_v27  ;;  %v5247_v39 = vcombine.high %v354_v34, %v358_v35  ;;  %v362_v41 = vld [vmem:[%s6392_s15 + $0x150] sm:$0xff] }
  0xa7   : > { %v359_v37 = vld [vmem:[%s6392_s15 + $0x138] sm:$0xff]  ;;  %v366_v42 = vld [vmem:[%s6392_s15 + $0x170] sm:$0xff] }
  0xa8   : > { %v5249_v40 = vcombine.high %v355_v36, %v359_v37  ;;  %v363_v43 = vld [vmem:[%s6392_s15 + $0x158] sm:$0xff]  ;;  %v370_v49 = vld [vmem:[%s6392_s15 + $0x190] sm:$0xff] }
  0xa9   : > { %713 = vmatpush1.bf16.msra.mxu0 %v5242_v44  ;;  %754 = vmatpush1.bf16.msra.mxu1 %v5244_v45  ;;  %v367_v44 = vld [vmem:[%s6392_s15 + $0x178] sm:$0xff]  ;;  %v5246_v45 = vcombine.low %v354_v34, %v358_v35  ;;  %v374_v50 = vld [vmem:[%s6392_s15 + $0x1b0] sm:$0xff] }
  0xaa   : > { %714 = vmatprep.subr.bf16.mxu0 %v5251_v46  ;;  %755 = vmatprep.subr.bf16.mxu1 %v5253_v47  ;;  %v5248_v46 = vcombine.low %v355_v36, %v359_v37  ;;  %v5255_v47 = vcombine.high %v362_v41, %v366_v42  ;;  %v5257_v48 = vcombine.high %v363_v43, %v367_v44  ;;  %v371_v51 = vld [vmem:[%s6392_s15 + $0x198] sm:$0xff]  ;;  %v378_v57 = vld [vmem:[%s6392_s15 + $0x1d0] sm:$0xff]  ;;  %v1096_v36 = vld [vmem:[#allocation9] sm:$0xff] (!%p5274_p12) }
  0xab   : > { %v382_v58 = vld [vmem:[%s6392_s15 + $0x1f0] sm:$0xff]  ;;  %v379_v59 = vld [vmem:[%s6392_s15 + $0x1d8] sm:$0xff]  ;;  %v1100_v37 = vld [vmem:[#allocation9 + $0x20] sm:$0xff] (!%p5274_p12) }
  0xac   : > { %v5270_v1 = vcombine.low %v378_v57, %v382_v58  ;;  %v311_v3 = vld [vmem:[#allocation2] sm:$0xff] }
  0xad   : > { %715 = vmatpush1.bf16.msra.mxu0 %v5250_v52  ;;  %756 = vmatpush1.bf16.msra.mxu1 %v5252_v53  ;;  %v375_v52 = vld [vmem:[%s6392_s15 + $0x1b8] sm:$0xff]  ;;  %v5254_v53 = vcombine.low %v362_v41, %v366_v42  ;;  %v1104_v41 = vld [vmem:[#allocation9 + $0x40] sm:$0xff] (!%p5274_p12) }
  0xae   : > { %716 = vmatprep.subr.bf16.mxu0 %v5259_v54  ;;  %757 = vmatprep.subr.bf16.mxu1 %v5261_v55  ;;  %v5256_v54 = vcombine.low %v363_v43, %v367_v44  ;;  %v5263_v55 = vcombine.high %v370_v49, %v374_v50  ;;  %v5265_v56 = vcombine.high %v371_v51, %v375_v52  ;;  %v1108_v42 = vld [vmem:[#allocation9 + $0x60] sm:$0xff] (!%p5274_p12) }
  0xb1   : > { %717 = vmatpush1.bf16.msra.mxu0 %v5258_v60  ;;  %758 = vmatpush1.bf16.msra.mxu1 %v5260_v61  ;;  %v383_v60 = vld [vmem:[%s6392_s15 + $0x1f8] sm:$0xff]  ;;  %v5262_v61 = vcombine.low %v370_v49, %v374_v50  ;;  %v1116_v50 = vld [vmem:[#allocation9 + $0xa0] sm:$0xff] (!%p5274_p12) }
  0xb2   : > { %718 = vmatprep.subr.bf16.mxu0 %v5267_v62  ;;  %759 = vmatprep.subr.bf16.mxu1 %v5269_v63  ;;  %v5264_v62 = vcombine.low %v371_v51, %v375_v52  ;;  %v5271_v63 = vcombine.high %v378_v57, %v382_v58  ;;  %v5273_v0 = vcombine.high %v379_v59, %v383_v60  ;;  %v1113_v51 = vld [vmem:[#allocation9 + $0x88] sm:$0xff] (!%p5274_p12)  ;;  %v1120_v57 = vld [vmem:[#allocation9 + $0xc0] sm:$0xff] (!%p5274_p12) }
  0xb3   : > { %v5272_v2 = vcombine.low %v379_v59, %v383_v60  ;;  %v1117_v52 = vld [vmem:[#allocation9 + $0xa8] sm:$0xff] (!%p5274_p12)  ;;  %v1124_v58 = vld [vmem:[#allocation9 + $0xe0] sm:$0xff] (!%p5274_p12) }
  0xb4   : > { %v1121_v59 = vld [vmem:[#allocation9 + $0xc8] sm:$0xff] (!%p5274_p12) }
  0xb5   : > { %719 = vmatpush1.bf16.msra.mxu0 %v5266_v4  ;;  %760 = vmatpush1.bf16.msra.mxu1 %v5268_v5  ;;  %v313_v4 = vld [vmem:[#allocation2 + $0x10] sm:$0xff]  ;;  %v312_v5 = vld [vmem:[#allocation2 + $0x8] sm:$0xff] }
  0xb6   : > { %786 = vmatprep.subr.bf16.mxu0 %v5215_v6  ;;  %827 = vmatprep.subr.bf16.mxu1 %v5217_v7  ;;  %v314_v7 = vld [vmem:[#allocation2 + $0x18] sm:$0xff]  ;;  %v1125_v60 = vld [vmem:[#allocation9 + $0xe8] sm:$0xff] (!%p5274_p12) }
  0xb8   : > { %737 = vmatmul.mubr.bf16.vlgmr.msra.gmra.mrb[0].mxu0 %v6451_v13  ;;  %778 = vmatmul.mubr.bf16.vlgmr.msra.gmra.mrb[0].mxu1 %v6451_v13 }
  0xb9   : > { %787 = vmatpush1.bf16.msra.mxu0 %v5214_v14  ;;  %828 = vmatpush1.bf16.msra.mxu1 %v5216_v15 }
  0xba   : > { %788 = vmatprep.subr.bf16.mxu0 %v5223_v16  ;;  %829 = vmatprep.subr.bf16.mxu1 %v5225_v17 }
  0xbb   : > { %818 = vmatprep.mubr.bf16.mxu0 %v6155_v9  ;;  %859 = vmatprep.mubr.bf16.mxu1 %v6155_v9  ;;  %v5240_v9 = vcombine.low %v347_v28, %v351_v29 }
  0xbd   : > { %789 = vmatpush1.bf16.msra.mxu0 %v5222_v22  ;;  %830 = vmatpush1.bf16.msra.mxu1 %v5224_v23  ;;  %v316_v22 = vld [vmem:[#allocation2 + $0x28] sm:$0xff] }
  0xbe   : > { %790 = vmatprep.subr.bf16.mxu0 %v5231_v24  ;;  %831 = vmatprep.subr.bf16.mxu1 %v5233_v25  ;;  %v318_v24 = vld [vmem:[#allocation2 + $0x38] sm:$0xff] }
  0xc1   : > { %791 = vmatpush1.bf16.msra.mxu0 %v5230_v30  ;;  %832 = vmatpush1.bf16.msra.mxu1 %v5232_v31 }
  0xc2   : > { %792 = vmatprep.subr.bf16.mxu0 %v5239_v32  ;;  %833 = vmatprep.subr.bf16.mxu1 %v5241_v33 }
  0xc5   : > { %793 = vmatpush1.bf16.msra.mxu0 %v5238_v38  ;;  %834 = vmatpush1.bf16.msra.mxu1 %v5240_v9  ;;  %v1097_v38 = vld [vmem:[#allocation9 + $0x8] sm:$0xff] (!%p5274_p12)  ;;  %v5276_v9 = vcombine.high (!%p5274_p12), %v1096_v36, %v1100_v37 }
  0xc6   : > { %794 = vmatprep.subr.bf16.mxu0 %v5247_v39  ;;  %835 = vmatprep.subr.bf16.mxu1 %v5249_v40  ;;  %v1101_v39 = vld [vmem:[#allocation9 + $0x28] sm:$0xff] (!%p5274_p12)  ;;  %v5275_v40 = vcombine.low (!%p5274_p12), %v1096_v36, %v1100_v37 }
  0xc7   : > { %v5278_v43 = vcombine.high (!%p5274_p12), %v1097_v38, %v1101_v39  ;;  %v5277_v44 = vcombine.low (!%p5274_p12), %v1097_v38, %v1101_v39 }
  0xc9   : > { %795 = vmatpush1.bf16.msra.mxu0 %v5246_v45  ;;  %836 = vmatpush1.bf16.msra.mxu1 %v5248_v46  ;;  %v5284_v45 = vcombine.high (!%p5274_p12), %v1104_v41, %v1108_v42  ;;  %v1105_v46 = vld [vmem:[#allocation9 + $0x48] sm:$0xff] (!%p5274_p12) }
  0xca   : > { %796 = vmatprep.subr.bf16.mxu0 %v5255_v47  ;;  %837 = vmatprep.subr.bf16.mxu1 %v5257_v48  ;;  %v1109_v47 = vld [vmem:[#allocation9 + $0x68] sm:$0xff] (!%p5274_p12)  ;;  %v1112_v48 = vld [vmem:[#allocation9 + $0x80] sm:$0xff] (!%p5274_p12) }
  0xcb   : > { %v5286_v49 = vcombine.high (!%p5274_p12), %v1105_v46, %v1109_v47 }
  0xcd   : > { %797 = vmatpush1.bf16.msra.mxu0 %v5254_v53  ;;  %838 = vmatpush1.bf16.msra.mxu1 %v5256_v54  ;;  %v5283_v53 = vcombine.low (!%p5274_p12), %v1104_v41, %v1108_v42  ;;  %v5285_v54 = vcombine.low (!%p5274_p12), %v1105_v46, %v1109_v47  ;;  %v1160_v41 = vld [vmem:[#allocation9 + $0x200] sm:$0xff] (!%p5274_p12) }
  0xce   : > { %798 = vmatprep.subr.bf16.mxu0 %v5263_v55  ;;  %839 = vmatprep.subr.bf16.mxu1 %v5265_v56  ;;  %v5292_v55 = vcombine.high (!%p5274_p12), %v1112_v48, %v1116_v50  ;;  %v5294_v56 = vcombine.high (!%p5274_p12), %v1113_v51, %v1117_v52  ;;  %v1164_v42 = vld [vmem:[#allocation9 + $0x220] sm:$0xff] (!%p5274_p12) }
  0xd1   : > { %799 = vmatpush1.bf16.msra.mxu0 %v5262_v61  ;;  %840 = vmatpush1.bf16.msra.mxu1 %v5264_v62  ;;  %v5291_v61 = vcombine.low (!%p5274_p12), %v1112_v48, %v1116_v50  ;;  %v5293_v62 = vcombine.low (!%p5274_p12), %v1113_v51, %v1117_v52 }
  0xd2   : > { %800 = vmatprep.subr.bf16.mxu0 %v5271_v63  ;;  %841 = vmatprep.subr.bf16.mxu1 %v5273_v0  ;;  %v5300_v63 = vcombine.high (!%p5274_p12), %v1120_v57, %v1124_v58  ;;  %v5302_v0 = vcombine.high (!%p5274_p12), %v1121_v59, %v1125_v60 }
  0xd5   : > { %801 = vmatpush1.bf16.msra.mxu0 %v5270_v1  ;;  %842 = vmatpush1.bf16.msra.mxu1 %v5272_v2  ;;  %v1128_v1 = vld [vmem:[#allocation9 + $0x100] sm:$0xff] (!%p5274_p12) }
  0xd6   : > { %4168 = vmatprep.subr.bf16.mxu0 (!%p5274_p12), %v5276_v9  ;;  %4332 = vmatprep.subr.bf16.mxu1 (!%p5274_p12), %v5278_v43  ;;  %v1132_v2 = vld [vmem:[#allocation9 + $0x120] sm:$0xff] (!%p5274_p12)  ;;  %v1161_v43 = vld [vmem:[#allocation9 + $0x208] sm:$0xff] (!%p5274_p12) }
  0xd8   : > { %819 = vmatmul.mubr.bf16.vlgmr.msra.gmra.mrb[4].mxu0 %v6451_v13  ;;  %860 = vmatmul.mubr.bf16.vlgmr.msra.gmra.mrb[4].mxu1 %v6451_v13  ;;  %v315_v13 = vld [vmem:[#allocation2 + $0x20] sm:$0xff] }
  0xd9   : > { %4169 = vmatpush1.bf16.msra.mxu0 (!%p5274_p12), %v5275_v40  ;;  %4333 = vmatpush1.bf16.msra.mxu1 (!%p5274_p12), %v5277_v44  ;;  %v1165_v44 = vld [vmem:[#allocation9 + $0x228] sm:$0xff] (!%p5274_p12) }
  0xda   : > { %4170 = vmatprep.subr.bf16.mxu0 (!%p5274_p12), %v5284_v45  ;;  %4334 = vmatprep.subr.bf16.mxu1 (!%p5274_p12), %v5286_v49 }
  0xdd   : > { %4171 = vmatpush1.bf16.msra.mxu0 (!%p5274_p12), %v5283_v53  ;;  %4335 = vmatpush1.bf16.msra.mxu1 (!%p5274_p12), %v5285_v54 }
  0xde   : > { %4172 = vmatprep.subr.bf16.mxu0 (!%p5274_p12), %v5292_v55  ;;  %4336 = vmatprep.subr.bf16.mxu1 (!%p5274_p12), %v5294_v56  ;;  %v5340_v55 = vcombine.high (!%p5274_p12), %v1160_v41, %v1164_v42  ;;  %v5342_v56 = vcombine.high (!%p5274_p12), %v1161_v43, %v1165_v44 }
  0xe1   : > { %4173 = vmatpush1.bf16.msra.mxu0 (!%p5274_p12), %v5291_v61  ;;  %4337 = vmatpush1.bf16.msra.mxu1 (!%p5274_p12), %v5293_v62 }
  0xe2   : > { %4174 = vmatprep.subr.bf16.mxu0 (!%p5274_p12), %v5300_v63  ;;  %4338 = vmatprep.subr.bf16.mxu1 (!%p5274_p12), %v5302_v0 }
 0x18b   : > { %v738_v6 = vpop.f32.mrb[0].mxu0  ;;  %v779_v10 = vpop.f32.mrb[0].mxu1 }
 0x18c   : > { %v868_v8 = vadd.f32 %v738_v6, %v311_v3  ;;  %v740_v11 = vpop.f32.mrb[1].mxu0  ;;  %v870_v12 = vadd.f32 %v779_v10, %v313_v4  ;;  %v781_v15 = vpop.f32.mrb[1].mxu1  ;;  %v1129_v3 = vld [vmem:[#allocation9 + $0x108] sm:$0xff] (!%p5274_p12)  ;;  %v5301_v6 = vcombine.low (!%p5274_p12), %v1121_v59, %v1125_v60  ;;  %v1136_v10 = vld [vmem:[#allocation9 + $0x140] sm:$0xff] (!%p5274_p12) }
 0x18d   : > { %v869_v14 = vadd.f32 %v740_v11, %v312_v5  ;;  %v742_v16 = vpop.f32.mrb[2].mxu0  ;;  %v871_v17 = vadd.f32 %v781_v15, %v314_v7  ;;  %v783_v18 = vpop.f32.mrb[2].mxu1  ;;  %v1133_v4 = vld [vmem:[#allocation9 + $0x128] sm:$0xff] (!%p5274_p12)  ;;  %v5299_v5 = vcombine.low (!%p5274_p12), %v1120_v57, %v1124_v58  ;;  %v5308_v7 = vcombine.high (!%p5274_p12), %v1128_v1, %v1132_v2  ;;  %v1140_v11 = vld [vmem:[#allocation9 + $0x160] sm:$0xff] (!%p5274_p12) }
 0x18e   : > { %876 = vst [vmem:[#allocation2] sm:$0xff] %v868_v8  ;;  %v743_v19 = vpop.f32.mrb[3].mxu0  ;;  %878 = vst [vmem:[#allocation2 + $0x10] sm:$0xff] %v870_v12  ;;  %v784_v20 = vpop.f32.mrb[3].mxu1  ;;  %v5310_v8 = vcombine.high (!%p5274_p12), %v1129_v3, %v1133_v4  ;;  %v1137_v12 = vld [vmem:[#allocation9 + $0x148] sm:$0xff] (!%p5274_p12)  ;;  %v5307_v15 = vcombine.low (!%p5274_p12), %v1128_v1, %v1132_v2  ;;  %4339 = vmatpush1.bf16.msra.mxu1 (!%p5274_p12), %v5301_v6  ;;  %v5309_v16 = vcombine.low (!%p5274_p12), %v1129_v3, %v1133_v4  ;;  %v1168_v57 = vld [vmem:[#allocation9 + $0x240] sm:$0xff] (!%p5274_p12) }
 0x18f   : > { %877 = vst [vmem:[#allocation2 + $0x8] sm:$0xff] %v869_v14  ;;  %879 = vst [vmem:[#allocation2 + $0x18] sm:$0xff] %v871_v17  ;;  %v1141_v14 = vld [vmem:[#allocation9 + $0x168] sm:$0xff] (!%p5274_p12)  ;;  %4175 = vmatpush1.bf16.msra.mxu0 (!%p5274_p12), %v5299_v5  ;;  %v5316_v17 = vcombine.high (!%p5274_p12), %v1136_v10, %v1140_v11  ;;  %v1144_v19 = vld [vmem:[#allocation9 + $0x180] sm:$0xff] (!%p5274_p12)  ;;  %v5339_v1 = vcombine.low (!%p5274_p12), %v1160_v41, %v1164_v42  ;;  %v5341_v6 = vcombine.low (!%p5274_p12), %v1161_v43, %v1165_v44 }
 0x190   : > { %4176 = vmatprep.subr.bf16.mxu0 (!%p5274_p12), %v5308_v7  ;;  %4340 = vmatprep.subr.bf16.mxu1 (!%p5274_p12), %v5310_v8  ;;  %v5318_v18 = vcombine.high (!%p5274_p12), %v1137_v12, %v1141_v14  ;;  %v1148_v20 = vld [vmem:[#allocation9 + $0x1a0] sm:$0xff] (!%p5274_p12)  ;;  %v1169_v59 = vld [vmem:[#allocation9 + $0x248] sm:$0xff] (!%p5274_p12) }
 0x191   : > { %v1172_v58 = vld [vmem:[#allocation9 + $0x260] sm:$0xff] (!%p5274_p12)  ;;  %v1173_v60 = vld [vmem:[#allocation9 + $0x268] sm:$0xff] (!%p5274_p12) }
 0x192   : > { %4341 = vmatpush1.bf16.msra.mxu1 (!%p5274_p12), %v5309_v16  ;;  %v5348_v7 = vcombine.high (!%p5274_p12), %v1168_v57, %v1172_v58  ;;  %v5350_v8 = vcombine.high (!%p5274_p12), %v1169_v59, %v1173_v60  ;;  %v1196_v41 = vld [vmem:[#allocation9 + $0x320] sm:$0xff] (!%p5274_p12)  ;;  %v1193_v43 = vld [vmem:[#allocation9 + $0x308] sm:$0xff] (!%p5274_p12) }
 0x193   : > { %4177 = vmatpush1.bf16.msra.mxu0 (!%p5274_p12), %v5307_v15  ;;  %4342 = vmatprep.subr.bf16.mxu1 (!%p5274_p12), %v5318_v18  ;;  %v1181_v18 = vld [vmem:[#allocation9 + $0x2a8] sm:$0xff] (!%p5274_p12) }
 0x194   : > { %4178 = vmatprep.subr.bf16.mxu0 (!%p5274_p12), %v5316_v17  ;;  %v1177_v17 = vld [vmem:[#allocation9 + $0x288] sm:$0xff] (!%p5274_p12) }
 0x195   : > { %v1197_v44 = vld [vmem:[#allocation9 + $0x328] sm:$0xff] (!%p5274_p12) }
 0x1a9   : > { %887 = sbr.rel (%p5274_p12) target bundleno = 1356 (0x54c), region = 64 }
 0x1ab   : > { %v820_v23 = vpop.f32.mrb[4].mxu0  ;;  %v861_v26 = vpop.f32.mrb[4].mxu1 }
 0x1ac   : > { %v872_v25 = vadd.f32 %v820_v23, %v315_v13  ;;  %v822_v27 = vpop.f32.mrb[5].mxu0  ;;  %v874_v28 = vadd.f32 %v861_v26, %v317_v21  ;;  %v863_v30 = vpop.f32.mrb[5].mxu1  ;;  %v1145_v13 = vld [vmem:[#allocation9 + $0x188] sm:$0xff] (!%p5274_p12)  ;;  %v5317_v23 = vcombine.low (!%p5274_p12), %v1137_v12, %v1141_v14  ;;  %v6484_v26 = vld [vmem:[#allocation2 + $0x8] sm:$0xff] (!%p5274_p12) }
 0x1ad   : > { %v873_v29 = vadd.f32 %v822_v27, %v316_v22  ;;  %v824_v31 = vpop.f32.mrb[6].mxu0  ;;  %v875_v32 = vadd.f32 %v863_v30, %v318_v24  ;;  %v865_v33 = vpop.f32.mrb[6].mxu1  ;;  %v1149_v21 = vld [vmem:[#allocation9 + $0x1a8] sm:$0xff] (!%p5274_p12)  ;;  %v5315_v22 = vcombine.low (!%p5274_p12), %v1136_v10, %v1140_v11  ;;  %v5324_v24 = vcombine.high (!%p5274_p12), %v1144_v19, %v1148_v20  ;;  %v1176_v10 = vld [vmem:[#allocation9 + $0x280] sm:$0xff] (!%p5274_p12) }
 0x1ae   : > { %880 = vst [vmem:[#allocation2 + $0x20] sm:$0xff] %v872_v25  ;;  %v825_v34 = vpop.f32.mrb[7].mxu0  ;;  %882 = vst [vmem:[#allocation2 + $0x30] sm:$0xff] %v874_v28  ;;  %v866_v35 = vpop.f32.mrb[7].mxu1  ;;  %v1152_v25 = vld [vmem:[#allocation9 + $0x1c0] sm:$0xff] (!%p5274_p12)  ;;  %v5326_v27 = vcombine.high (!%p5274_p12), %v1145_v13, %v1149_v21  ;;  %v1157_v30 = vld [vmem:[#allocation9 + $0x1e8] sm:$0xff] (!%p5274_p12)  ;;  %v5323_v33 = vcombine.low (!%p5274_p12), %v1144_v19, %v1148_v20  ;;  %4343 = vmatpush1.bf16.msra.mxu1 (!%p5274_p12), %v5317_v23  ;;  %v5325_v9 = vcombine.low (!%p5274_p12), %v1145_v13, %v1149_v21 }
 0x1af   : > { %881 = vst [vmem:[#allocation2 + $0x28] sm:$0xff] %v873_v29  ;;  %883 = vst [vmem:[#allocation2 + $0x38] sm:$0xff] %v875_v32  ;;  %v1156_v28 = vld [vmem:[#allocation9 + $0x1e0] sm:$0xff] (!%p5274_p12)  ;;  %v1153_v29 = vld [vmem:[#allocation9 + $0x1c8] sm:$0xff] (!%p5274_p12)  ;;  %v902_v31 = vrot.slane (!%p5274_p12), %v6484_v26, 4  ;;  %v945_v32 = vmul.f32 (!%p5274_p12), %v6484_v26, %v6484_v26  ;;  %4179 = vmatpush1.bf16.msra.mxu0 (!%p5274_p12), %v5315_v22  ;;  %v5347_v19 = vcombine.low (!%p5274_p12), %v1168_v57, %v1172_v58 }
 0x1b0   : > { %v6489_v34 = vld [vmem:[#allocation2] sm:$0xff]  ;;  %4180 = vmatprep.subr.bf16.mxu0 %v5324_v24  ;;  %v5332_v39 = vcombine.high %v1152_v25, %v1156_v28  ;;  %v5334_v40 = vcombine.high %v1153_v29, %v1157_v30  ;;  %4344 = vmatprep.subr.bf16.mxu1 %v5326_v27  ;;  %v5331_v49 = vcombine.low %v1152_v25, %v1156_v28  ;;  %v1180_v11 = vld [vmem:[#allocation9 + $0x2a0] sm:$0xff] }
 0x1b1   : > { %v903_v35 = vadd.f32 %v902_v31, %v6484_v26  ;;  %v958_v36 = vrot.slane %v945_v32, 4  ;;  %v896_v37 = vrot.slane %v6489_v34, 4  ;;  %v944_v38 = vmul.f32 %v6489_v34, %v6489_v34  ;;  %v1184_v27 = vld [vmem:[#allocation9 + $0x2c0] sm:$0xff]  ;;  %v1185_v31 = vld [vmem:[#allocation9 + $0x2c8] sm:$0xff] }
 0x1b2   : > { %4345 = vmatpush1.bf16.msra.mxu1 %v5325_v9  ;;  %v5333_v54 = vcombine.low %v1153_v29, %v1157_v30  ;;  %v5349_v22 = vcombine.low %v1169_v59, %v1173_v60  ;;  %v5356_v23 = vcombine.high %v1176_v10, %v1180_v11  ;;  %v5358_v25 = vcombine.high %v1177_v17, %v1181_v18  ;;  %v1188_v28 = vld [vmem:[#allocation9 + $0x2e0] sm:$0xff] }
 0x1b3   : > { %v904_v45 = vrot.slane %v903_v35, 2  ;;  %v959_v46 = vadd.f32 %v958_v36, %v945_v32  ;;  %v897_v47 = vadd.f32 %v896_v37, %v6489_v34  ;;  %v952_v48 = vrot.slane %v944_v38, 4  ;;  %4181 = vmatpush1.bf16.msra.mxu0 %v5323_v33  ;;  %4346 = vmatprep.subr.bf16.mxu1 %v5334_v40  ;;  %v1189_v32 = vld [vmem:[#allocation9 + $0x2e8] sm:$0xff]  ;;  %v1192_v40 = vld [vmem:[#allocation9 + $0x300] sm:$0xff] }
 0x1b4   : > { %4182 = vmatprep.subr.bf16.mxu0 %v5332_v39  ;;  %v5357_v37 = vcombine.low %v1177_v17, %v1181_v18  ;;  %v5366_v39 = vcombine.high %v1185_v31, %v1189_v32  ;;  %v5373_v57 = vcombine.low %v1193_v43, %v1197_v44  ;;  %v1221_v17 = vld [vmem:[#allocation9 + $0x3e8] sm:$0xff] }
 0x1b5   : > { %v905_v50 = vadd.f32 %v904_v45, %v903_v35  ;;  %v960_v51 = vrot.slane %v959_v46, 2  ;;  %v898_v52 = vrot.slane %v897_v47, 2  ;;  %v953_v53 = vadd.f32 %v952_v48, %v944_v38 }
 0x1b6   : > { %4347 = vmatpush1.bf16.msra.mxu1 %v5333_v54  ;;  %v5355_v35 = vcombine.low %v1176_v10, %v1180_v11  ;;  %v5364_v38 = vcombine.high %v1184_v27, %v1188_v28  ;;  %v5372_v48 = vcombine.high %v1192_v40, %v1196_v41  ;;  %v1201_v54 = vld [vmem:[#allocation9 + $0x348] sm:$0xff] }
 0x1b7   : > { %v906_v61 = vrot.slane %v905_v50, 1  ;;  %v961_v62 = vadd.f32 %v960_v51, %v959_v46  ;;  %v899_v63 = vadd.f32 %v898_v52, %v897_v47  ;;  %v954_v0 = vrot.slane %v953_v53, 2  ;;  %4183 = vmatpush1.bf16.msra.mxu0 %v5331_v49  ;;  %4348 = vmatprep.subr.bf16.mxu1 %v5342_v56  ;;  %v1200_v51 = vld [vmem:[#allocation9 + $0x340] sm:$0xff] }
 0x1b8   : > { %4184 = vmatprep.subr.bf16.mxu0 %v5340_v55  ;;  %v5363_v46 = vcombine.low %v1184_v27, %v1188_v28  ;;  %v5365_v47 = vcombine.low %v1185_v31, %v1189_v32  ;;  %v1204_v52 = vld [vmem:[#allocation9 + $0x360] sm:$0xff]  ;;  %v1205_v55 = vld [vmem:[#allocation9 + $0x368] sm:$0xff]  ;;  %v5371_v56 = vcombine.low %v1192_v40, %v1196_v41 }
 0x1b9   : > { %v907_v2 = vadd.f32 %v906_v61, %v905_v50  ;;  %v962_v3 = vrot.slane %v961_v62, 1  ;;  %v900_v4 = vrot.slane %v899_v63, 1  ;;  %v955_v5 = vadd.f32 %v954_v0, %v953_v53  ;;  %v6504_v53 = vld [vmem:[#allocation2 + $0x18] sm:$0xff]  ;;  %v1208_v61 = vld [vmem:[#allocation9 + $0x380] sm:$0xff]  ;;  %v1209_v0 = vld [vmem:[#allocation9 + $0x388] sm:$0xff] }
 0x1ba   : > { %4349 = vmatpush1.bf16.msra.mxu1 %v5341_v6  ;;  %v5374_v50 = vcombine.high %v1193_v43, %v1197_v44  ;;  %v5380_v58 = vcombine.high %v1200_v51, %v1204_v52  ;;  %v914_v59 = vrot.slane %v6504_v53, 4  ;;  %v5382_v60 = vcombine.high %v1201_v54, %v1205_v55  ;;  %v1228_v31 = vld [vmem:[#allocation9 + $0x420] sm:$0xff] }
 0x1bb   : > { %v963_v12 = vadd.f32 %v962_v3, %v961_v62  ;;  %v6496_v14 = vmul.f32 0.125, %v907_v2  ;;  %v901_v15 = vadd.f32 %v900_v4, %v899_v63  ;;  %v956_v16 = vrot.slane %v955_v5, 1  ;;  %4185 = vmatpush1.bf16.msra.mxu0 %v5339_v1  ;;  %4350 = vmatprep.subr.bf16.mxu1 %v5350_v8  ;;  %v1212_v62 = vld [vmem:[#allocation9 + $0x3a0] sm:$0xff]  ;;  %v1213_v1 = vld [vmem:[#allocation9 + $0x3a8] sm:$0xff] }
 0x1bc   : > { %4186 = vmatprep.subr.bf16.mxu0 %v5348_v7  ;;  %v947_v63 = vmul.f32 %v6504_v53, %v6504_v53  ;;  %v915_v3 = vadd.f32 %v914_v59, %v6504_v53  ;;  %v5379_v4 = vcombine.low %v1200_v51, %v1204_v52  ;;  %v5381_v6 = vcombine.low %v1201_v54, %v1205_v55  ;;  %v1216_v8 = vld [vmem:[#allocation9 + $0x3c0] sm:$0xff]  ;;  %v1233_v52 = vld [vmem:[#allocation9 + $0x448] sm:$0xff] }
 0x1bd   : > { %v1009_v20 = vmul.f32 0.125, %v963_v12  ;;  %v1017_v13 = vmul.f32 %v6496_v14, %v6496_v14  ;;  %v957_v21 = vadd.f32 %v956_v16, %v955_v5  ;;  %v6500_v24 = vmul.f32 0.125, %v901_v15  ;;  %v1220_v15 = vld [vmem:[#allocation9 + $0x3e0] sm:$0xff]  ;;  %v1217_v16 = vld [vmem:[#allocation9 + $0x3c8] sm:$0xff] }
 0x1be   : > { %4351 = vmatpush1.bf16.msra.mxu1 %v5349_v22  ;;  %v1041_v2 = vsub.f32 %v6484_v26, %v6496_v14  ;;  %v970_v5 = vrot.slane %v947_v63, 4  ;;  %v5388_v7 = vcombine.high %v1208_v61, %v1212_v62  ;;  %v916_v10 = vrot.slane %v915_v3, 2  ;;  %v1237_v54 = vld [vmem:[#allocation9 + $0x468] sm:$0xff] }
 0x1bf   : > { %v1025_v29 = vsub.f32 %v1009_v20, %v1017_v13  ;;  %v1008_v30 = vmul.f32 0.125, %v957_v21  ;;  %v1016_v33 = vmul.f32 %v6500_v24, %v6500_v24  ;;  %4187 = vmatpush1.bf16.msra.mxu0 %v5347_v19  ;;  %4352 = vmatprep.subr.bf16.mxu1 %v5358_v25  ;;  %v5390_v12 = vcombine.high %v1209_v0, %v1213_v1  ;;  %v6514_v20 = vld [vmem:[#allocation2 + $0x10] sm:$0xff] }
 0x1c0   : > { %4188 = vmatprep.subr.bf16.mxu0 %v5356_v23  ;;  %v1040_v26 = vsub.f32 %v6489_v34, %v6500_v24  ;;  %v971_v14 = vadd.f32 %v970_v5, %v947_v63  ;;  %v917_v19 = vadd.f32 %v916_v10, %v915_v3  ;;  %v5387_v13 = vcombine.low %v1208_v61, %v1212_v62  ;;  %v1225_v34 = vld [vmem:[#allocation9 + $0x408] sm:$0xff]  ;;  %v1240_v62 = vld [vmem:[#allocation9 + $0x480] sm:$0xff] }
 0x1c1   : > { %v1033_v36 = vmax.f32 %v1025_v29, 0.0  ;;  %v1024_v9 = vsub.f32 %v1008_v30, %v1016_v33  ;;  %v5389_v21 = vcombine.low %v1209_v0, %v1213_v1  ;;  %v5396_v25 = vcombine.high %v1216_v8, %v1220_v15  ;;  %v1224_v29 = vld [vmem:[#allocation9 + $0x400] sm:$0xff]  ;;  %v1229_v24 = vld [vmem:[#allocation9 + $0x428] sm:$0xff] }
 0x1c2   : > { %4353 = vmatpush1.bf16.msra.mxu1 %v5357_v37  ;;  %v972_v22 = vrot.slane %v971_v14, 2  ;;  %v5398_v27 = vcombine.high %v1217_v16, %v1221_v17  ;;  %v918_v30 = vrot.slane %v917_v19, 1  ;;  %v5404_v43 = vcombine.high %v1224_v29, %v1228_v31  ;;  %v1244_v63 = vld [vmem:[#allocation9 + $0x4a0] sm:$0xff]  ;;  %v1241_v3 = vld [vmem:[#allocation9 + $0x488] sm:$0xff] }
 0x1c3   : > { %v1049_v42 = vadd.f32 1e-05, %v1033_v36  ;;  %v1032_v45 = vmax.f32 %v1024_v9, 0.0  ;;  %4189 = vmatpush1.bf16.msra.mxu0 %v5355_v35  ;;  %4354 = vmatprep.subr.bf16.mxu1 %v5366_v39  ;;  %v908_v35 = vrot.slane %v6514_v20, 4  ;;  %v946_v36 = vmul.f32 %v6514_v20, %v6514_v20 }
 0x1c4   : > { %4190 = vmatprep.subr.bf16.mxu0 %v5364_v38  ;;  %v973_v33 = vadd.f32 %v972_v22, %v971_v14  ;;  %v919_v38 = vadd.f32 %v918_v30, %v917_v19  ;;  %v5395_v9 = vcombine.low %v1216_v8, %v1220_v15  ;;  %v5397_v39 = vcombine.low %v1217_v16, %v1221_v17  ;;  %v1253_v14 = vld [vmem:[#allocation9 + $0x4e8] sm:$0xff]  ;;  %v6532_v19 = vld [vmem:[#allocation2 + $0x28] sm:$0xff] }
 0x1c5   : > { %5918 = vrsqrt.f32 %v1049_v42  ;;  %v1048_v49 = vadd.f32 1e-05, %v1032_v45  ;;  %v5406_v44 = vcombine.high %v1225_v34, %v1229_v24  ;;  %v964_v51 = vrot.slane %v946_v36, 4  ;;  %v1261_v30 = vld [vmem:[#allocation9 + $0x528] sm:$0xff] }
 0x1c6   : > { %4355 = vmatpush1.bf16.msra.mxu1 %v5365_v47  ;;  %v974_v41 = vrot.slane %v973_v33, 1  ;;  %v6521_v45 = vmul.f32 0.125, %v919_v38  ;;  %v1232_v47 = vld [vmem:[#allocation9 + $0x440] sm:$0xff]  ;;  %v5405_v59 = vcombine.low %v1225_v34, %v1229_v24  ;;  %v5414_v61 = vcombine.high %v1233_v52, %v1237_v54 }
 0x1c7   : > { %5920 = vrsqrt.f32 %v1048_v49  ;;  %4191 = vmatpush1.bf16.msra.mxu0 %v5363_v46  ;;  %4356 = vmatprep.subr.bf16.mxu1 %v5374_v50  ;;  %v909_v50 = vadd.f32 %v908_v35, %v6514_v20  ;;  %v5420_v8 = vcombine.high %v1240_v62, %v1244_v63  ;;  %v1264_v35 = vld [vmem:[#allocation9 + $0x540] sm:$0xff] }
 0x1c8   : > { %4192 = vmatprep.subr.bf16.mxu0 %v5372_v48  ;;  %v1236_v48 = vld [vmem:[#allocation9 + $0x460] sm:$0xff]  ;;  %v975_v49 = vadd.f32 %v974_v41, %v973_v33  ;;  %v1019_v55 = vmul.f32 %v6521_v45, %v6521_v45 }
 0x1c9   : > { %v910_v1 = vrot.slane %v909_v50, 2  ;;  %v5411_v5 = vcombine.low %v1232_v47, %v1236_v48 }
 0x1ca   : > { %4357 = vmatpush1.bf16.msra.mxu1 %v5373_v57 }
 0x1cb   : > { %4193 = vmatpush1.bf16.msra.mxu0 %v5371_v56  ;;  %4358 = vmatprep.subr.bf16.mxu1 %v5382_v60  ;;  %v5403_v56 = vcombine.low %v1224_v29, %v1228_v31  ;;  %v5412_v60 = vcombine.high %v1232_v47, %v1236_v48  ;;  %v911_v16 = vadd.f32 %v910_v1, %v909_v50  ;;  %v1257_v29 = vld [vmem:[#allocation9 + $0x508] sm:$0xff]  ;;  %v926_v31 = vrot.slane %v6532_v19, 4 }
 0x1cc   : > { %4194 = vmatprep.subr.bf16.mxu0 %v5380_v58  ;;  %v1011_v58 = vmul.f32 0.125, %v975_v49  ;;  %v5438_v33 = vcombine.high %v1257_v29, %v1261_v30 }
 0x1cd   : > { %v927_v41 = vadd.f32 %v926_v31, %v6532_v19 }
 0x1ce   : > { %4359 = vmatpush1.bf16.msra.mxu1 %v5381_v6  ;;  %v1027_v0 = vsub.f32 %v1011_v58, %v1019_v55 }
 0x1cf   : > { %v5919_v11 = vpop.eup %5918  ;;  %4195 = vmatpush1.bf16.msra.mxu0 %v5379_v4  ;;  %4360 = vmatprep.subr.bf16.mxu1 %v5390_v12  ;;  %v1245_v4 = vld [vmem:[#allocation9 + $0x4a8] sm:$0xff]  ;;  %v1252_v12 = vld [vmem:[#allocation9 + $0x4e0] sm:$0xff]  ;;  %v928_v48 = vrot.slane %v927_v41, 2 }
 0x1d0   : > { %v1065_v18 = vmul.f32 %v5919_v11, %v1041_v2  ;;  %4196 = vmatprep.subr.bf16.mxu0 %v5388_v7  ;;  %v965_v2 = vadd.f32 %v964_v51, %v946_v36  ;;  %v1035_v6 = vmax.f32 %v1027_v0, 0.0  ;;  %v5413_v7 = vcombine.low %v1233_v52, %v1237_v54  ;;  %v1248_v11 = vld [vmem:[#allocation9 + $0x4c0] sm:$0xff] }
 0x1d1   : > { %v5921_v23 = vpop.eup %5920  ;;  %v5422_v10 = vcombine.high %v1241_v3, %v1245_v4  ;;  %v5427_v34 = vcombine.low %v1248_v11, %v1252_v12  ;;  %v1268_v36 = vld [vmem:[#allocation9 + $0x560] sm:$0xff] }
 0x1d2   : > { %v1073_v28 = vmul.f32 0.2, %v1065_v18  ;;  %v1064_v32 = vmul.f32 %v5921_v23, %v1040_v26  ;;  %4361 = vmatpush1.bf16.msra.mxu1 %v5389_v21  ;;  %v1051_v15 = vadd.f32 1e-05, %v1035_v6  ;;  %v966_v17 = vrot.slane %v965_v2, 2  ;;  %v1249_v26 = vld [vmem:[#allocation9 + $0x4c8] sm:$0xff] }
 0x1d3   : > { %4197 = vmatpush1.bf16.msra.mxu0 %v5387_v13  ;;  %4362 = vmatprep.subr.bf16.mxu1 %v5398_v27  ;;  %v5421_v13 = vcombine.low %v1241_v3, %v1245_v4  ;;  %v5428_v21 = vcombine.high %v1248_v11, %v1252_v12  ;;  %v5430_v22 = vcombine.high %v1249_v26, %v1253_v14  ;;  %v1256_v23 = vld [vmem:[#allocation9 + $0x500] sm:$0xff]  ;;  %v912_v27 = vrot.slane %v911_v16, 1 }
 0x1d4   : > { %v1081_v37 = vmax.f32 %v1065_v18, %v1073_v28  ;;  %v1072_v40 = vmul.f32 0.2, %v1064_v32  ;;  %4198 = vmatprep.subr.bf16.mxu0 %v5396_v25  ;;  %v5419_v18 = vcombine.low %v1240_v62, %v1244_v63  ;;  %5922 = vrsqrt.f32 %v1051_v15  ;;  %v1260_v25 = vld [vmem:[#allocation9 + $0x520] sm:$0xff] }
 0x1d5   : > { %v967_v28 = vadd.f32 %v966_v17, %v965_v2  ;;  %v5429_v24 = vcombine.low %v1249_v26, %v1253_v14  ;;  %v5444_v47 = vcombine.high %v1264_v35, %v1268_v36  ;;  %v1272_v52 = vld [vmem:[#allocation9 + $0x580] sm:$0xff] }
 0x1d6   : > { %v6519_v42 = vpack.c.bf16 %v1081_v37, %v1081_v37  ;;  %v1080_v46 = vmax.f32 %v1064_v32, %v1072_v40  ;;  %4363 = vmatpush1.bf16.msra.mxu1 %v5397_v39  ;;  %v5436_v32 = vcombine.high %v1256_v23, %v1260_v25  ;;  %v913_v37 = vadd.f32 %v912_v27, %v911_v16  ;;  %v1269_v39 = vld [vmem:[#allocation9 + $0x568] sm:$0xff]  ;;  %v1276_v54 = vld [vmem:[#allocation9 + $0x5a0] sm:$0xff] }
 0x1d7   : > { %4199 = vmatpush1.bf16.msra.mxu0 %v5395_v9  ;;  %4373 = vmatprep.subr.bf16.mxu1 %v5406_v44  ;;  %v968_v38 = vrot.slane %v967_v28, 1  ;;  %v1265_v9 = vld [vmem:[#allocation9 + $0x548] sm:$0xff]  ;;  %v1043_v40 = vsub.f32 %v6504_v53, %v6521_v45  ;;  %v5435_v44 = vcombine.low %v1256_v23, %v1260_v25  ;;  %v5452_v63 = vcombine.high %v1272_v52, %v1276_v54  ;;  %v1280_v4 = vld [vmem:[#allocation9 + $0x5c0] sm:$0xff] }
 0x1d8   : > { %4200 = vmatprep.mubr.bf16.mxu0 %v6519_v42  ;;  %4364 = vmatprep.mubr.bf16.mxu1 %v6519_v42  ;;  %v6528_v57 = vpack.c.bf16 %v1080_v46, %v1080_v46  ;;  %v5437_v46 = vcombine.low %v1257_v29, %v1261_v30  ;;  %v5446_v51 = vcombine.high %v1265_v9, %v1269_v39  ;;  %v6540_v53 = vmul.f32 0.125, %v913_v37  ;;  %v1273_v45 = vld [vmem:[#allocation9 + $0x588] sm:$0xff]  ;;  %v1292_v23 = vld [vmem:[#allocation9 + $0x620] sm:$0xff] }
 0x1d9   : > { %4209 = vmatprep.subr.bf16.mxu0 %v5404_v43  ;;  %v949_v43 = vmul.f32 %v6532_v19, %v6532_v19  ;;  %v969_v55 = vadd.f32 %v968_v38, %v967_v28  ;;  %v5445_v62 = vcombine.low %v1265_v9, %v1269_v39  ;;  %v5451_v16 = vcombine.low %v1272_v52, %v1276_v54  ;;  %v1289_v27 = vld [vmem:[#allocation9 + $0x608] sm:$0xff] }
 0x1da   : > { %4201 = vmatmul.mubr.bf16.vlgmr.msra.gmra.mrb[0].mxu0 %v6528_v57  ;;  %4365 = vmatmul.mubr.bf16.vlgmr.msra.gmra.mrb[0].mxu1 %v6528_v57  ;;  %v1293_v28 = vld [vmem:[#allocation9 + $0x628] sm:$0xff] }
 0x1db   : > { %4210 = vmatpush1.bf16.msra.mxu0 %v5403_v56  ;;  %4374 = vmatpush1.bf16.msra.mxu1 %v5405_v59  ;;  %v982_v49 = vrot.slane %v949_v43, 4  ;;  %v1277_v56 = vld [vmem:[#allocation9 + $0x5a8] sm:$0xff]  ;;  %v929_v59 = vadd.f32 %v928_v48, %v927_v41  ;;  %v1010_v6 = vmul.f32 0.125, %v969_v55  ;;  %v5469_v41 = vcombine.low %v1289_v27, %v1293_v28  ;;  %v1308_v48 = vld [vmem:[#allocation9 + $0x6a0] sm:$0xff] }
 0x1dc   : > { %4211 = vmatprep.subr.bf16.mxu0 %v5412_v60  ;;  %4375 = vmatprep.subr.bf16.mxu1 %v5414_v61  ;;  %v5443_v61 = vcombine.low %v1264_v35, %v1268_v36  ;;  %v5454_v3 = vcombine.high %v1273_v45, %v1277_v56  ;;  %v5453_v17 = vcombine.low %v1273_v45, %v1277_v56  ;;  %v1296_v35 = vld [vmem:[#allocation9 + $0x640] sm:$0xff]  ;;  %v1297_v38 = vld [vmem:[#allocation9 + $0x648] sm:$0xff] }
 0x1dd   : > { %v983_v60 = vadd.f32 %v982_v49, %v949_v43  ;;  %v930_v1 = vrot.slane %v929_v59, 1  ;;  %v1300_v36 = vld [vmem:[#allocation9 + $0x660] sm:$0xff]  ;;  %v1301_v9 = vld [vmem:[#allocation9 + $0x668] sm:$0xff] }
 0x1de   : > { %v5923_v50 = vpop.eup %5922  ;;  %v5476_v43 = vcombine.high %v1296_v35, %v1300_v36  ;;  %v5475_v52 = vcombine.low %v1296_v35, %v1300_v36  ;;  %v5477_v54 = vcombine.low %v1297_v38, %v1301_v9  ;;  %v1348_v35 = vld [vmem:[#allocation9 + $0x7e0] sm:$0xff] }
 0x1df   : > { %4212 = vmatpush1.bf16.msra.mxu0 %v5411_v5  ;;  %4376 = vmatpush1.bf16.msra.mxu1 %v5413_v7  ;;  %v1067_v58 = vmul.f32 %v5923_v50, %v1043_v40  ;;  %v984_v2 = vrot.slane %v983_v60, 2  ;;  %v1284_v5 = vld [vmem:[#allocation9 + $0x5e0] sm:$0xff]  ;;  %v1018_v7 = vmul.f32 %v6540_v53, %v6540_v53  ;;  %v931_v12 = vadd.f32 %v930_v1, %v929_v59  ;;  %v1305_v50 = vld [vmem:[#allocation9 + $0x688] sm:$0xff] }
 0x1e0   : > { %4213 = vmatprep.subr.bf16.mxu0 %v5420_v8  ;;  %4377 = vmatprep.subr.bf16.mxu1 %v5422_v10  ;;  %v1281_v8 = vld [vmem:[#allocation9 + $0x5c8] sm:$0xff]  ;;  %v5460_v26 = vcombine.high %v1280_v4, %v1284_v5  ;;  %v5459_v31 = vcombine.low %v1280_v4, %v1284_v5  ;;  %v1316_v59 = vld [vmem:[#allocation9 + $0x6e0] sm:$0xff] }
 0x1e1   : > { %v1075_v0 = vmul.f32 0.2, %v1067_v58  ;;  %v1285_v10 = vld [vmem:[#allocation9 + $0x5e8] sm:$0xff]  ;;  %v985_v15 = vadd.f32 %v984_v2, %v983_v60  ;;  %v1026_v25 = vsub.f32 %v1010_v6, %v1018_v7  ;;  %v1320_v2 = vld [vmem:[#allocation9 + $0x700] sm:$0xff] }
 0x1e2   : > { %v1313_v60 = vld [vmem:[#allocation9 + $0x6c8] sm:$0xff] }
 0x1e3   : > { %4214 = vmatpush1.bf16.msra.mxu0 %v5419_v18  ;;  %4378 = vmatpush1.bf16.msra.mxu1 %v5421_v13  ;;  %v1083_v11 = vmax.f32 %v1067_v58, %v1075_v0  ;;  %v986_v18 = vrot.slane %v985_v15, 1  ;;  %v6546_v13 = vmul.f32 0.125, %v931_v12  ;;  %v1034_v37 = vmax.f32 %v1026_v25, 0.0  ;;  %v1312_v58 = vld [vmem:[#allocation9 + $0x6c0] sm:$0xff]  ;;  %v1321_v4 = vld [vmem:[#allocation9 + $0x708] sm:$0xff] }
 0x1e4   : > { %4215 = vmatprep.subr.bf16.mxu0 %v5428_v21  ;;  %4379 = vmatprep.subr.bf16.mxu1 %v5430_v22  ;;  %v5462_v21 = vcombine.high %v1281_v8, %v1285_v10  ;;  %v1288_v22 = vld [vmem:[#allocation9 + $0x600] sm:$0xff]  ;;  %v5492_v0 = vcombine.high %v1312_v58, %v1316_v59  ;;  %v1325_v5 = vld [vmem:[#allocation9 + $0x728] sm:$0xff]  ;;  %v5491_v6 = vcombine.low %v1312_v58, %v1316_v59 }
 0x1e5   : > { %v6544_v14 = vpack.c.bf16 %v1083_v11, %v1083_v11  ;;  %v987_v29 = vadd.f32 %v986_v18, %v985_v15  ;;  %v1021_v30 = vmul.f32 %v6546_v13, %v6546_v13  ;;  %v5467_v40 = vcombine.low %v1288_v22, %v1292_v23  ;;  %v1328_v11 = vld [vmem:[#allocation9 + $0x740] sm:$0xff]  ;;  %v1329_v15 = vld [vmem:[#allocation9 + $0x748] sm:$0xff] }
 0x1e6   : > { %v1050_v49 = vadd.f32 1e-05, %v1034_v37  ;;  %v1332_v12 = vld [vmem:[#allocation9 + $0x760] sm:$0xff]  ;;  %v1345_v37 = vld [vmem:[#allocation9 + $0x7c8] sm:$0xff] }
 0x1e7   : > { %4216 = vmatpush1.bf16.msra.mxu0 %v5427_v34  ;;  %4380 = vmatpush1.bf16.msra.mxu1 %v5429_v24  ;;  %v5461_v34 = vcombine.low %v1281_v8, %v1285_v10  ;;  %v5468_v24 = vcombine.high %v1288_v22, %v1292_v23  ;;  %v5502_v10 = vcombine.high %v1321_v4, %v1325_v5  ;;  %v1336_v25 = vld [vmem:[#allocation9 + $0x780] sm:$0xff] }
 0x1e8   : > { %4217 = vmatprep.subr.bf16.mxu0 %v5436_v32  ;;  %4381 = vmatprep.subr.bf16.mxu1 %v5438_v33  ;;  %v1013_v32 = vmul.f32 0.125, %v987_v29  ;;  %v5470_v33 = vcombine.high %v1289_v27, %v1293_v28  ;;  %5924 = vrsqrt.f32 %v1050_v49  ;;  %v5508_v22 = vcombine.high %v1328_v11, %v1332_v12  ;;  %v1340_v27 = vld [vmem:[#allocation9 + $0x7a0] sm:$0xff]  ;;  %v6561_v49 = vld [vmem:[#allocation2 + $0x38] sm:$0xff] }
 0x1e9   : > { %4241 = vmatprep.mubr.bf16.mxu0 %v6544_v14  ;;  %4405 = vmatprep.mubr.bf16.mxu1 %v6544_v14  ;;  %v1045_v28 = vsub.f32 %v6532_v19, %v6546_v13  ;;  %v5515_v19 = vcombine.low %v1336_v25, %v1340_v27  ;;  %v951_v58 = vmul.f32 %v6561_v49, %v6561_v49 }
 0x1ea   : > { %v1029_v39 = vsub.f32 %v1013_v32, %v1021_v30  ;;  %v1337_v30 = vld [vmem:[#allocation9 + $0x788] sm:$0xff] }
 0x1eb   : > { %4218 = vmatpush1.bf16.msra.mxu0 %v5435_v44  ;;  %4382 = vmatpush1.bf16.msra.mxu1 %v5437_v46  ;;  %v5478_v46 = vcombine.high %v1297_v38, %v1301_v9  ;;  %v1349_v38 = vld [vmem:[#allocation9 + $0x7e8] sm:$0xff] }
 0x1ec   : > { %4219 = vmatprep.subr.bf16.mxu0 %v5444_v47  ;;  %4383 = vmatprep.subr.bf16.mxu1 %v5446_v51  ;;  %v1037_v44 = vmax.f32 %v1029_v39, 0.0  ;;  %v1304_v47 = vld [vmem:[#allocation9 + $0x680] sm:$0xff]  ;;  %v1309_v51 = vld [vmem:[#allocation9 + $0x6a8] sm:$0xff]  ;;  %v6556_v39 = vld [vmem:[#allocation2 + $0x20] sm:$0xff] }
 0x1ed   : > { %v5484_v55 = vcombine.high %v1304_v47, %v1308_v48  ;;  %v5486_v56 = vcombine.high %v1305_v50, %v1309_v51 }
 0x1ee   : > { %v1053_v45 = vadd.f32 1e-05, %v1037_v44  ;;  %v1356_v44 = vld [vmem:[#allocation9 + $0x820] sm:$0xff] }
 0x1ef   : > { %4220 = vmatpush1.bf16.msra.mxu0 %v5443_v61  ;;  %4384 = vmatpush1.bf16.msra.mxu1 %v5445_v62  ;;  %v1317_v61 = vld [vmem:[#allocation9 + $0x6e8] sm:$0xff]  ;;  %v5483_v62 = vcombine.low %v1304_v47, %v1308_v48  ;;  %v920_v47 = vrot.slane %v6556_v39, 4  ;;  %v948_v48 = vmul.f32 %v6556_v39, %v6556_v39 }
 0x1f0   : > { %4221 = vmatprep.subr.bf16.mxu0 %v5452_v63  ;;  %4385 = vmatprep.subr.bf16.mxu1 %v5454_v3  ;;  %v5485_v63 = vcombine.low %v1305_v50, %v1309_v51  ;;  %5926 = vrsqrt.f32 %v1053_v45  ;;  %v5494_v1 = vcombine.high %v1313_v60, %v1317_v61  ;;  %v1324_v3 = vld [vmem:[#allocation9 + $0x720] sm:$0xff]  ;;  %v5493_v7 = vcombine.low %v1313_v60, %v1317_v61  ;;  %v1353_v50 = vld [vmem:[#allocation9 + $0x808] sm:$0xff] }
 0x1f1   : > { %v5500_v8 = vcombine.high %v1320_v2, %v1324_v3  ;;  %v5499_v18 = vcombine.low %v1320_v2, %v1324_v3  ;;  %v1357_v51 = vld [vmem:[#allocation9 + $0x828] sm:$0xff]  ;;  %v1360_v60 = vld [vmem:[#allocation9 + $0x840] sm:$0xff] }
 0x1f2   : > { %v5534_v59 = vcombine.high %v1353_v50, %v1357_v51  ;;  %v1364_v61 = vld [vmem:[#allocation9 + $0x860] sm:$0xff]  ;;  %v1361_v2 = vld [vmem:[#allocation9 + $0x848] sm:$0xff] }
 0x1f3   : > { %4222 = vmatpush1.bf16.msra.mxu0 %v5451_v16  ;;  %4386 = vmatpush1.bf16.msra.mxu1 %v5453_v17  ;;  %v1333_v16 = vld [vmem:[#allocation9 + $0x768] sm:$0xff]  ;;  %v1042_v17 = vsub.f32 %v6514_v20, %v6540_v53  ;;  %v5507_v20 = vcombine.low %v1328_v11, %v1332_v12  ;;  %v1368_v11 = vld [vmem:[#allocation9 + $0x880] sm:$0xff] }
 0x1f4   : > { %4223 = vmatprep.subr.bf16.mxu0 %v5460_v26  ;;  %4387 = vmatprep.subr.bf16.mxu1 %v5462_v21  ;;  %v5925_v26 = vpop.eup %5924  ;;  %v5501_v21 = vcombine.low %v1321_v4, %v1325_v5  ;;  %v5510_v23 = vcombine.high %v1329_v15, %v1333_v16  ;;  %v5509_v53 = vcombine.low %v1329_v15, %v1333_v16  ;;  %v1365_v3 = vld [vmem:[#allocation9 + $0x868] sm:$0xff]  ;;  %v1372_v12 = vld [vmem:[#allocation9 + $0x8a0] sm:$0xff] }
 0x1f5   : > { %v5533_v5 = vcombine.low %v1353_v50, %v1357_v51  ;;  %v1392_v51 = vld [vmem:[#allocation9 + $0x940] sm:$0xff] }
 0x1f7   : > { %4224 = vmatpush1.bf16.msra.mxu0 %v5459_v31  ;;  %4388 = vmatpush1.bf16.msra.mxu1 %v5461_v34  ;;  %v1341_v31 = vld [vmem:[#allocation9 + $0x7a8] sm:$0xff]  ;;  %v1066_v34 = vmul.f32 %v5925_v26, %v1042_v17 }
 0x1f8   : > { %4225 = vmatprep.subr.bf16.mxu0 %v5468_v24  ;;  %4389 = vmatprep.subr.bf16.mxu1 %v5470_v33  ;;  %v5516_v24 = vcombine.high %v1336_v25, %v1340_v27  ;;  %v5518_v32 = vcombine.high %v1337_v30, %v1341_v31  ;;  %v1344_v33 = vld [vmem:[#allocation9 + $0x7c0] sm:$0xff]  ;;  %v5517_v13 = vcombine.low %v1337_v30, %v1341_v31  ;;  %v1369_v26 = vld [vmem:[#allocation9 + $0x888] sm:$0xff] }
 0x1f9   : > { %v1074_v9 = vmul.f32 0.2, %v1066_v34  ;;  %v1380_v30 = vld [vmem:[#allocation9 + $0x8e0] sm:$0xff] }
 0x1fa   : > { %v5927_v29 = vpop.eup %5926 }
 0x1fb   : > { %4226 = vmatpush1.bf16.msra.mxu0 %v5467_v40  ;;  %4390 = vmatpush1.bf16.msra.mxu1 %v5469_v41  ;;  %v1069_v36 = vmul.f32 %v5927_v29, %v1045_v28  ;;  %v5524_v40 = vcombine.high %v1344_v33, %v1348_v35  ;;  %v5526_v41 = vcombine.high %v1345_v37, %v1349_v38  ;;  %v1376_v29 = vld [vmem:[#allocation9 + $0x8c0] sm:$0xff] }
 0x1fc   : > { %4227 = vmatprep.subr.bf16.mxu0 %v5476_v43  ;;  %4391 = vmatprep.subr.bf16.mxu1 %v5478_v46  ;;  %v1352_v43 = vld [vmem:[#allocation9 + $0x800] sm:$0xff] }
 0x1fd   : > { %v1077_v46 = vmul.f32 0.2, %v1069_v36  ;;  %v5532_v45 = vcombine.high %v1352_v43, %v1356_v44  ;;  %v5531_v4 = vcombine.low %v1352_v43, %v1356_v44  ;;  %v5555_v43 = vcombine.low %v1376_v29, %v1380_v30 }
 0x1ff   : > { %4228 = vmatpush1.bf16.msra.mxu0 %v5475_v52  ;;  %4392 = vmatpush1.bf16.msra.mxu1 %v5477_v54  ;;  %v1082_v52 = vmax.f32 %v1066_v34, %v1074_v9  ;;  %v5523_v54 = vcombine.low %v1344_v33, %v1348_v35  ;;  %v5556_v33 = vcombine.high %v1376_v29, %v1380_v30  ;;  %v1388_v9 = vld [vmem:[#allocation9 + $0x920] sm:$0xff] }
 0x200   : > { %4229 = vmatprep.subr.bf16.mxu0 %v5484_v55  ;;  %4393 = vmatprep.subr.bf16.mxu1 %v5486_v56  ;;  %v5525_v55 = vcombine.low %v1345_v37, %v1349_v38  ;;  %v938_v56 = vrot.slane %v6561_v49, 4  ;;  %v1384_v38 = vld [vmem:[#allocation9 + $0x900] sm:$0xff] }
 0x203   : > { %4230 = vmatpush1.bf16.msra.mxu0 %v5483_v62  ;;  %4394 = vmatpush1.bf16.msra.mxu1 %v5485_v63  ;;  %v1085_v62 = vmax.f32 %v1069_v36, %v1077_v46  ;;  %v921_v63 = vadd.f32 %v920_v47, %v6556_v39  ;;  %v5564_v46 = vcombine.high %v1384_v38, %v1388_v9 }
 0x204   : > { %4231 = vmatprep.subr.bf16.mxu0 %v5492_v0  ;;  %4395 = vmatprep.subr.bf16.mxu1 %v5494_v1  ;;  %v976_v0 = vrot.slane %v948_v48, 4  ;;  %v6567_v1 = vpack.c.bf16 %v1082_v52, %v1082_v52  ;;  %v1396_v52 = vld [vmem:[#allocation9 + $0x960] sm:$0xff] }
 0x205   : > { %v6570_v15 = vpack.c.bf16 %v1085_v62, %v1085_v62  ;;  %v922_v16 = vrot.slane %v921_v63, 2 }
 0x206   : > { %v977_v17 = vadd.f32 %v976_v0, %v948_v48  ;;  %v1400_v0 = vld [vmem:[#allocation9 + $0x980] sm:$0xff] }
 0x207   : > { %4232 = vmatpush1.bf16.msra.mxu0 %v5491_v6  ;;  %4396 = vmatpush1.bf16.msra.mxu1 %v5493_v7  ;;  %v5540_v6 = vcombine.high %v1360_v60, %v1364_v61  ;;  %v939_v7 = vadd.f32 %v938_v56, %v6561_v49  ;;  %v923_v31 = vadd.f32 %v922_v16, %v921_v63  ;;  %v1397_v56 = vld [vmem:[#allocation9 + $0x968] sm:$0xff] }
 0x208   : > { %4233 = vmatprep.subr.bf16.mxu0 %v5500_v8  ;;  %4397 = vmatprep.subr.bf16.mxu1 %v5502_v10  ;;  %v994_v8 = vrot.slane %v951_v58, 4  ;;  %v5542_v10 = vcombine.high %v1361_v2, %v1365_v3  ;;  %v978_v34 = vrot.slane %v977_v17, 2 }
 0x209   : > { %v940_v25 = vrot.slane %v939_v7, 2 }
 0x20a   : > { %v995_v27 = vadd.f32 %v994_v8, %v951_v58  ;;  %v5563_v58 = vcombine.low %v1384_v38, %v1388_v9  ;;  %v1424_v9 = vld [vmem:[#allocation9 + $0xa40] sm:$0xff] }
 0x20b   : > { %4234 = vmatpush1.bf16.msra.mxu0 %v5499_v18  ;;  %4398 = vmatpush1.bf16.msra.mxu1 %v5501_v21  ;;  %v1373_v18 = vld [vmem:[#allocation9 + $0x8a8] sm:$0xff]  ;;  %v5539_v21 = vcombine.low %v1360_v60, %v1364_v61  ;;  %v941_v35 = vadd.f32 %v940_v25, %v939_v7  ;;  %v5572_v60 = vcombine.high %v1392_v51, %v1396_v52 }
 0x20c   : > { %4235 = vmatprep.subr.bf16.mxu0 %v5508_v22  ;;  %4399 = vmatprep.subr.bf16.mxu1 %v5510_v23  ;;  %v5541_v22 = vcombine.low %v1361_v2, %v1365_v3  ;;  %v5548_v23 = vcombine.high %v1368_v11, %v1372_v12  ;;  %v5550_v28 = vcombine.high %v1369_v26, %v1373_v18  ;;  %v996_v36 = vrot.slane %v995_v27, 2  ;;  %v1404_v2 = vld [vmem:[#allocation9 + $0x9a0] sm:$0xff] }
 0x20d   : > { %v942_v47 = vrot.slane %v941_v35, 1  ;;  %v5571_v7 = vcombine.low %v1392_v51, %v1396_v52  ;;  %v5579_v25 = vcombine.low %v1400_v0, %v1404_v2  ;;  %v1436_v51 = vld [vmem:[#allocation9 + $0xaa0] sm:$0xff] }
 0x20e   : > { %v997_v48 = vadd.f32 %v996_v36, %v995_v27 }
 0x20f   : > { %4236 = vmatpush1.bf16.msra.mxu0 %v5507_v20  ;;  %4400 = vmatpush1.bf16.msra.mxu1 %v5509_v53  ;;  %v1377_v20 = vld [vmem:[#allocation9 + $0x8c8] sm:$0xff]  ;;  %v943_v61 = vadd.f32 %v942_v47, %v941_v35 }
 0x210   : > { %4237 = vmatprep.subr.bf16.mxu0 %v5516_v24  ;;  %4401 = vmatprep.subr.bf16.mxu1 %v5518_v32  ;;  %v1381_v53 = vld [vmem:[#allocation9 + $0x8e8] sm:$0xff]  ;;  %v5547_v24 = vcombine.low %v1368_v11, %v1372_v12  ;;  %v5549_v32 = vcombine.low %v1369_v26, %v1373_v18  ;;  %v998_v62 = vrot.slane %v997_v48, 1  ;;  %v1412_v26 = vld [vmem:[#allocation9 + $0x9e0] sm:$0xff] }
 0x211   : > { %v5558_v37 = vcombine.high %v1377_v20, %v1381_v53  ;;  %v5557_v44 = vcombine.low %v1377_v20, %v1381_v53  ;;  %v6578_v12 = vmul.f32 0.125, %v943_v61  ;;  %v1420_v20 = vld [vmem:[#allocation9 + $0xa20] sm:$0xff] }
 0x212   : > { %v999_v11 = vadd.f32 %v998_v62, %v997_v48  ;;  %v1440_v61 = vld [vmem:[#allocation9 + $0xac0] sm:$0xff] }
 0x213   : > { %4238 = vmatpush1.bf16.msra.mxu0 %v5515_v19  ;;  %4402 = vmatpush1.bf16.msra.mxu1 %v5517_v13  ;;  %v924_v19 = vrot.slane %v923_v31, 1  ;;  %v979_v13 = vadd.f32 %v978_v34, %v977_v17  ;;  %v1408_v17 = vld [vmem:[#allocation9 + $0x9c0] sm:$0xff]  ;;  %v1023_v30 = vmul.f32 %v6578_v12, %v6578_v12 }
 0x214   : > { %4239 = vmatprep.subr.bf16.mxu0 %v5524_v40  ;;  %4403 = vmatprep.subr.bf16.mxu1 %v5526_v41  ;;  %v1385_v40 = vld [vmem:[#allocation9 + $0x908] sm:$0xff]  ;;  %v1015_v29 = vmul.f32 0.125, %v999_v11  ;;  %v1416_v34 = vld [vmem:[#allocation9 + $0xa00] sm:$0xff] }
 0x215   : > { %v1389_v41 = vld [vmem:[#allocation9 + $0x928] sm:$0xff]  ;;  %v5596_v36 = vcombine.high %v1416_v34, %v1420_v20  ;;  %v1444_v62 = vld [vmem:[#allocation9 + $0xae0] sm:$0xff] }
 0x216   : > { %v5566_v50 = vcombine.high %v1385_v40, %v1389_v41  ;;  %v1453_v11 = vld [vmem:[#allocation9 + $0xb28] sm:$0xff] }
 0x217   : > { %4240 = vmatpush1.bf16.msra.mxu0 %v5523_v54  ;;  %4404 = vmatpush1.bf16.msra.mxu1 %v5525_v55  ;;  %v925_v54 = vadd.f32 %v924_v19, %v923_v31  ;;  %v980_v55 = vrot.slane %v979_v13, 1  ;;  %v1428_v19 = vld [vmem:[#allocation9 + $0xa60] sm:$0xff] }
 0x218   : > { %4250 = vmatprep.subr.bf16.mxu0 %v5532_v45  ;;  %4414 = vmatprep.subr.bf16.mxu1 %v5534_v59  ;;  %v1393_v45 = vld [vmem:[#allocation9 + $0x948] sm:$0xff]  ;;  %v5565_v59 = vcombine.low %v1385_v40, %v1389_v41 }
 0x219   : > { %v5574_v63 = vcombine.high %v1393_v45, %v1397_v56  ;;  %v981_v3 = vadd.f32 %v980_v55, %v979_v13  ;;  %v5573_v8 = vcombine.low %v1393_v45, %v1397_v56  ;;  %v1425_v40 = vld [vmem:[#allocation9 + $0xa48] sm:$0xff]  ;;  %v5603_v45 = vcombine.low %v1424_v9, %v1428_v19 }
 0x21a   : > { %4242 = vmatmul.mubr.bf16.vlgmr.msra.gmra.mrb[0].mxu0 %v6567_v1  ;;  %4406 = vmatmul.mubr.bf16.vlgmr.msra.gmra.mrb[0].mxu1 %v6567_v1  ;;  %v1429_v41 = vld [vmem:[#allocation9 + $0xa68] sm:$0xff] }
 0x21b   : > { %4251 = vmatpush1.bf16.msra.mxu0 %v5531_v4  ;;  %4415 = vmatpush1.bf16.msra.mxu1 %v5533_v5  ;;  %v6576_v4 = vmul.f32 0.125, %v925_v54  ;;  %v1401_v5 = vld [vmem:[#allocation9 + $0x988] sm:$0xff]  ;;  %v1012_v18 = vmul.f32 0.125, %v981_v3  ;;  %v5606_v48 = vcombine.high %v1425_v40, %v1429_v41  ;;  %v5605_v56 = vcombine.low %v1425_v40, %v1429_v41 }
 0x21c   : > { %4252 = vmatprep.subr.bf16.mxu0 %v5540_v6  ;;  %4416 = vmatprep.subr.bf16.mxu1 %v5542_v10  ;;  %v1405_v6 = vld [vmem:[#allocation9 + $0x9a8] sm:$0xff]  ;;  %v5580_v10 = vcombine.high %v1400_v0, %v1404_v2 }
 0x21d   : > { %4282 = vmatprep.mubr.bf16.mxu0 %v6570_v15  ;;  %4446 = vmatprep.mubr.bf16.mxu1 %v6570_v15  ;;  %v5582_v16 = vcombine.high %v1401_v5, %v1405_v6  ;;  %v5581_v27 = vcombine.low %v1401_v5, %v1405_v6  ;;  %v1433_v54 = vld [vmem:[#allocation9 + $0xa88] sm:$0xff]  ;;  %v5620_v5 = vcombine.high %v1440_v61, %v1444_v62 }
 0x21e   : > { %v1437_v55 = vld [vmem:[#allocation9 + $0xaa8] sm:$0xff] }
 0x21f   : > { %4253 = vmatpush1.bf16.msra.mxu0 %v5539_v21  ;;  %4417 = vmatpush1.bf16.msra.mxu1 %v5541_v22  ;;  %v1020_v21 = vmul.f32 %v6576_v4, %v6576_v4  ;;  %v1409_v22 = vld [vmem:[#allocation9 + $0x9c8] sm:$0xff]  ;;  %v5613_v3 = vcombine.low %v1433_v54, %v1437_v55 }
 0x220   : > { %4254 = vmatprep.subr.bf16.mxu0 %v5548_v23  ;;  %4418 = vmatprep.subr.bf16.mxu1 %v5550_v28  ;;  %v1413_v23 = vld [vmem:[#allocation9 + $0x9e8] sm:$0xff]  ;;  %v5588_v28 = vcombine.high %v1408_v17, %v1412_v26 }
 0x221   : > { %v5590_v31 = vcombine.high %v1409_v22, %v1413_v23  ;;  %v1028_v53 = vsub.f32 %v1012_v18, %v1020_v21  ;;  %v5589_v35 = vcombine.low %v1409_v22, %v1413_v23  ;;  %v1445_v0 = vld [vmem:[#allocation9 + $0xae8] sm:$0xff]  ;;  %v1456_v21 = vld [vmem:[#allocation9 + $0xb40] sm:$0xff] }
 0x222   : > { %v1460_v22 = vld [vmem:[#allocation9 + $0xb60] sm:$0xff]  ;;  %v1457_v23 = vld [vmem:[#allocation9 + $0xb48] sm:$0xff] }
 0x223   : > { %4255 = vmatpush1.bf16.msra.mxu0 %v5547_v24  ;;  %4419 = vmatpush1.bf16.msra.mxu1 %v5549_v32  ;;  %v1417_v24 = vld [vmem:[#allocation9 + $0xa08] sm:$0xff]  ;;  %v1036_v13 = vmax.f32 %v1028_v53, 0.0  ;;  %v1468_v53 = vld [vmem:[#allocation9 + $0xba0] sm:$0xff] }
 0x224   : > { %4256 = vmatprep.subr.bf16.mxu0 %v5556_v33  ;;  %4420 = vmatprep.subr.bf16.mxu1 %v5558_v37  ;;  %v1421_v32 = vld [vmem:[#allocation9 + $0xa28] sm:$0xff]  ;;  %v5587_v33 = vcombine.low %v1408_v17, %v1412_v26  ;;  %v1031_v37 = vsub.f32 %v1015_v29, %v1023_v30 }
 0x225   : > { %v5598_v38 = vcombine.high %v1417_v24, %v1421_v32  ;;  %v1052_v52 = vadd.f32 1e-05, %v1036_v13  ;;  %v1473_v40 = vld [vmem:[#allocation9 + $0xbc8] sm:$0xff] }
 0x226   : > { %v1039_v47 = vmax.f32 %v1031_v37, 0.0  ;;  %v1477_v41 = vld [vmem:[#allocation9 + $0xbe8] sm:$0xff] }
 0x227   : > { %4257 = vmatpush1.bf16.msra.mxu0 %v5555_v43  ;;  %4421 = vmatpush1.bf16.msra.mxu1 %v5557_v44  ;;  %v5595_v43 = vcombine.low %v1416_v34, %v1420_v20  ;;  %v5597_v44 = vcombine.low %v1417_v24, %v1421_v32  ;;  %5928 = vrsqrt.f32 %v1052_v52  ;;  %v1464_v20 = vld [vmem:[#allocation9 + $0xb80] sm:$0xff]  ;;  %v1047_v24 = vsub.f32 %v6561_v49, %v6578_v12 }
 0x228   : > { %4258 = vmatprep.subr.bf16.mxu0 %v5564_v46  ;;  %4422 = vmatprep.subr.bf16.mxu1 %v5566_v50  ;;  %v5604_v46 = vcombine.high %v1424_v9, %v1428_v19  ;;  %v1432_v50 = vld [vmem:[#allocation9 + $0xa80] sm:$0xff]  ;;  %v5644_v37 = vcombine.high %v1464_v20, %v1468_v53  ;;  %v5643_v49 = vcombine.low %v1464_v20, %v1468_v53 }
 0x229   : > { %v5611_v2 = vcombine.low %v1432_v50, %v1436_v51  ;;  %v1472_v9 = vld [vmem:[#allocation9 + $0xbc0] sm:$0xff] }
 0x22a   : > { %v1476_v19 = vld [vmem:[#allocation9 + $0xbe0] sm:$0xff] }
 0x22b   : > { %4259 = vmatpush1.bf16.msra.mxu0 %v5563_v58  ;;  %4423 = vmatpush1.bf16.msra.mxu1 %v5565_v59  ;;  %v5612_v58 = vcombine.high %v1432_v50, %v1436_v51  ;;  %v1055_v59 = vadd.f32 1e-05, %v1039_v47  ;;  %v5654_v47 = vcombine.high %v1473_v40, %v1477_v41  ;;  %v1484_v50 = vld [vmem:[#allocation9 + $0xc20] sm:$0xff] }
 0x22c   : > { %4260 = vmatprep.subr.bf16.mxu0 %v5572_v60  ;;  %4424 = vmatprep.subr.bf16.mxu1 %v5574_v63  ;;  %v5614_v60 = vcombine.high %v1433_v54, %v1437_v55  ;;  %v1441_v63 = vld [vmem:[#allocation9 + $0xac8] sm:$0xff] }
 0x22d   : > { %5930 = vrsqrt.f32 %v1055_v59  ;;  %v5622_v6 = vcombine.high %v1441_v63, %v1445_v0  ;;  %v5621_v17 = vcombine.low %v1441_v63, %v1445_v0  ;;  %v1481_v55 = vld [vmem:[#allocation9 + $0xc08] sm:$0xff]  ;;  %v5653_v59 = vcombine.low %v1473_v40, %v1477_v41  ;;  %v1492_v63 = vld [vmem:[#allocation9 + $0xc60] sm:$0xff] }
 0x22f   : > { %4261 = vmatpush1.bf16.msra.mxu0 %v5571_v7  ;;  %4425 = vmatpush1.bf16.msra.mxu1 %v5573_v8  ;;  %v1448_v7 = vld [vmem:[#allocation9 + $0xb00] sm:$0xff] }
 0x230   : > { %4262 = vmatprep.subr.bf16.mxu0 %v5580_v10  ;;  %4426 = vmatprep.subr.bf16.mxu1 %v5582_v16  ;;  %v1452_v8 = vld [vmem:[#allocation9 + $0xb20] sm:$0xff]  ;;  %v1449_v10 = vld [vmem:[#allocation9 + $0xb08] sm:$0xff]  ;;  %v5619_v16 = vcombine.low %v1440_v61, %v1444_v62 }
 0x231   : > { %v5628_v26 = vcombine.high %v1448_v7, %v1452_v8  ;;  %v5630_v18 = vcombine.high %v1449_v10, %v1453_v11  ;;  %v5627_v29 = vcombine.low %v1448_v7, %v1452_v8  ;;  %v5629_v30 = vcombine.low %v1449_v10, %v1453_v11  ;;  %v1488_v62 = vld [vmem:[#allocation9 + $0xc40] sm:$0xff]  ;;  %v1493_v7 = vld [vmem:[#allocation9 + $0xc68] sm:$0xff] }
 0x232   : > { %v5668_v11 = vcombine.high %v1488_v62, %v1492_v63 }
 0x233   : > { %4263 = vmatpush1.bf16.msra.mxu0 %v5579_v25  ;;  %4427 = vmatpush1.bf16.msra.mxu1 %v5581_v27  ;;  %v1461_v25 = vld [vmem:[#allocation9 + $0xb68] sm:$0xff]  ;;  %v1044_v27 = vsub.f32 %v6556_v39, %v6576_v4  ;;  %v5635_v39 = vcombine.low %v1456_v21, %v1460_v22 }
 0x234   : > { %4264 = vmatprep.subr.bf16.mxu0 %v5588_v28  ;;  %4428 = vmatprep.subr.bf16.mxu1 %v5590_v31  ;;  %v5929_v28 = vpop.eup %5928  ;;  %v5636_v31 = vcombine.high %v1456_v21, %v1460_v22  ;;  %v5638_v34 = vcombine.high %v1457_v23, %v1461_v25  ;;  %v5637_v4 = vcombine.low %v1457_v23, %v1461_v25  ;;  %v1497_v23 = vld [vmem:[#allocation9 + $0xc88] sm:$0xff] }
 0x235   : > { %v1501_v25 = vld [vmem:[#allocation9 + $0xca8] sm:$0xff] }
 0x237   : > { %4265 = vmatpush1.bf16.msra.mxu0 %v5587_v33  ;;  %4429 = vmatpush1.bf16.msra.mxu1 %v5589_v35  ;;  %v5931_v32 = vpop.eup %5930  ;;  %v1465_v33 = vld [vmem:[#allocation9 + $0xb88] sm:$0xff] }
 0x238   : > { %4266 = vmatprep.subr.bf16.mxu0 %v5596_v36  ;;  %4430 = vmatprep.subr.bf16.mxu1 %v5598_v38  ;;  %v1469_v35 = vld [vmem:[#allocation9 + $0xba8] sm:$0xff]  ;;  %v1068_v36 = vmul.f32 %v5929_v28, %v1044_v27  ;;  %v1071_v13 = vmul.f32 %v5931_v32, %v1047_v24  ;;  %v5667_v27 = vcombine.low %v1488_v62, %v1492_v63 }
 0x239   : > { %v5646_v38 = vcombine.high %v1465_v33, %v1469_v35  ;;  %v5645_v12 = vcombine.low %v1465_v33, %v1469_v35  ;;  %v1505_v24 = vld [vmem:[#allocation9 + $0xcc8] sm:$0xff]  ;;  %v5677_v35 = vcombine.low %v1497_v23, %v1501_v25 }
 0x23a   : > { %v1079_v51 = vmul.f32 0.2, %v1071_v13  ;;  %v1509_v32 = vld [vmem:[#allocation9 + $0xce8] sm:$0xff] }
 0x23b   : > { %4267 = vmatpush1.bf16.msra.mxu0 %v5595_v43  ;;  %4431 = vmatpush1.bf16.msra.mxu1 %v5597_v44  ;;  %v1076_v43 = vmul.f32 0.2, %v1068_v36  ;;  %v6588_v44 = vld [vmem:[#allocation2 + $0x30] sm:$0xff]  ;;  %v5685_v41 = vcombine.low %v1505_v24, %v1509_v32 }
 0x23c   : > { %4268 = vmatprep.subr.bf16.mxu0 %v5604_v46  ;;  %4432 = vmatprep.subr.bf16.mxu1 %v5606_v48  ;;  %v5652_v46 = vcombine.high %v1472_v9, %v1476_v19  ;;  %v1480_v48 = vld [vmem:[#allocation9 + $0xc00] sm:$0xff]  ;;  %v932_v52 = vrot.slane %v6588_v44, 4  ;;  %v950_v54 = vmul.f32 %v6588_v44, %v6588_v44  ;;  %v1087_v0 = vmax.f32 %v1071_v13, %v1079_v51  ;;  %v1517_v13 = vld [vmem:[#allocation9 + $0xd28] sm:$0xff] }
 0x23d   : > { %v5659_v8 = vcombine.low %v1480_v48, %v1484_v50  ;;  %v1525_v51 = vld [vmem:[#allocation9 + $0xd68] sm:$0xff] }
 0x23e   : > { %v1533_v62 = vld [vmem:[#allocation9 + $0xda8] sm:$0xff] }
 0x23f   : > { %4269 = vmatpush1.bf16.msra.mxu0 %v5603_v45  ;;  %4433 = vmatpush1.bf16.msra.mxu1 %v5605_v56  ;;  %v1485_v45 = vld [vmem:[#allocation9 + $0xc28] sm:$0xff]  ;;  %v1084_v56 = vmax.f32 %v1068_v36, %v1076_v43 }
 0x240   : > { %4270 = vmatprep.subr.bf16.mxu0 %v5612_v58  ;;  %4434 = vmatprep.subr.bf16.mxu1 %v5614_v60  ;;  %v5651_v58 = vcombine.low %v1472_v9, %v1476_v19  ;;  %v5660_v60 = vcombine.high %v1480_v48, %v1484_v50  ;;  %v5662_v61 = vcombine.high %v1481_v55, %v1485_v45  ;;  %v1513_v19 = vld [vmem:[#allocation9 + $0xd08] sm:$0xff] }
 0x241   : > { %v5661_v10 = vcombine.low %v1481_v55, %v1485_v45  ;;  %v1521_v50 = vld [vmem:[#allocation9 + $0xd48] sm:$0xff] }
 0x242   : > { %v5702_v45 = vcombine.high %v1521_v50, %v1525_v51 }
 0x243   : > { %4271 = vmatpush1.bf16.msra.mxu0 %v5611_v2  ;;  %4435 = vmatpush1.bf16.msra.mxu1 %v5613_v3  ;;  %v933_v2 = vadd.f32 %v932_v52, %v6588_v44  ;;  %v988_v3 = vrot.slane %v950_v54, 4 }
 0x244   : > { %4272 = vmatprep.subr.bf16.mxu0 %v5620_v5  ;;  %4436 = vmatprep.subr.bf16.mxu1 %v5622_v6  ;;  %v6594_v5 = vpack.c.bf16 %v1084_v56, %v1084_v56  ;;  %v1489_v6 = vld [vmem:[#allocation9 + $0xc48] sm:$0xff]  ;;  %v1528_v56 = vld [vmem:[#allocation9 + $0xd80] sm:$0xff] }
 0x245   : > { %v934_v21 = vrot.slane %v933_v2, 2  ;;  %v989_v22 = vadd.f32 %v988_v3, %v950_v54  ;;  %v5669_v28 = vcombine.low %v1489_v6, %v1493_v7  ;;  %v5693_v54 = vcombine.low %v1513_v19, %v1517_v13 }
 0x247   : > { %4273 = vmatpush1.bf16.msra.mxu0 %v5619_v16  ;;  %4437 = vmatpush1.bf16.msra.mxu1 %v5621_v17  ;;  %v5670_v16 = vcombine.high %v1489_v6, %v1493_v7  ;;  %v1496_v17 = vld [vmem:[#allocation9 + $0xc80] sm:$0xff]  ;;  %v935_v20 = vadd.f32 %v934_v21, %v933_v2  ;;  %v990_v53 = vrot.slane %v989_v22, 2 }
 0x248   : > { %4274 = vmatprep.subr.bf16.mxu0 %v5628_v26  ;;  %4438 = vmatprep.subr.bf16.mxu1 %v5630_v18  ;;  %v1500_v26 = vld [vmem:[#allocation9 + $0xca0] sm:$0xff]  ;;  %v6596_v18 = vpack.c.bf16 %v1087_v0, %v1087_v0  ;;  %v5701_v0 = vcombine.low %v1521_v50, %v1525_v51  ;;  %v1573_v50 = vld [vmem:[#allocation9 + $0xee8] sm:$0xff] }
 0x249   : > { %v5675_v33 = vcombine.low %v1496_v17, %v1500_v26  ;;  %v991_v9 = vadd.f32 %v990_v53, %v989_v22  ;;  %v1536_v6 = vld [vmem:[#allocation9 + $0xdc0] sm:$0xff] }
 0x24a   : > { %v1540_v7 = vld [vmem:[#allocation9 + $0xde0] sm:$0xff] }
 0x24b   : > { %4275 = vmatpush1.bf16.msra.mxu0 %v5627_v29  ;;  %4439 = vmatpush1.bf16.msra.mxu1 %v5629_v30  ;;  %v5676_v29 = vcombine.high %v1496_v17, %v1500_v26  ;;  %v5678_v30 = vcombine.high %v1497_v23, %v1501_v25  ;;  %v992_v48 = vrot.slane %v991_v9, 1  ;;  %v5716_v21 = vcombine.high %v1536_v6, %v1540_v7  ;;  %v1544_v23 = vld [vmem:[#allocation9 + $0xe00] sm:$0xff] }
 0x24c   : > { %4276 = vmatprep.subr.bf16.mxu0 %v5636_v31  ;;  %4440 = vmatprep.subr.bf16.mxu1 %v5638_v34  ;;  %v1504_v31 = vld [vmem:[#allocation9 + $0xcc0] sm:$0xff] }
 0x24d   : > { %v1508_v34 = vld [vmem:[#allocation9 + $0xce0] sm:$0xff] }
 0x24e   : > { %v5684_v36 = vcombine.high %v1504_v31, %v1508_v34  ;;  %v5683_v40 = vcombine.low %v1504_v31, %v1508_v34  ;;  %v1548_v25 = vld [vmem:[#allocation9 + $0xe20] sm:$0xff] }
 0x24f   : > { %4277 = vmatpush1.bf16.msra.mxu0 %v5635_v39  ;;  %4441 = vmatpush1.bf16.msra.mxu1 %v5637_v4  ;;  %v5686_v39 = vcombine.high %v1505_v24, %v1509_v32  ;;  %v1512_v4 = vld [vmem:[#allocation9 + $0xd00] sm:$0xff]  ;;  %v5724_v34 = vcombine.high %v1544_v23, %v1548_v25 }
 0x250   : > { %4278 = vmatprep.subr.bf16.mxu0 %v5644_v37  ;;  %4442 = vmatprep.subr.bf16.mxu1 %v5646_v38  ;;  %v1516_v37 = vld [vmem:[#allocation9 + $0xd20] sm:$0xff]  ;;  %v936_v38 = vrot.slane %v935_v20, 1 }
 0x251   : > { %v5692_v43 = vcombine.high %v1512_v4, %v1516_v37  ;;  %v5691_v52 = vcombine.low %v1512_v4, %v1516_v37  ;;  %v1552_v53 = vld [vmem:[#allocation9 + $0xe40] sm:$0xff] }
 0x252   : > { %v1556_v24 = vld [vmem:[#allocation9 + $0xe60] sm:$0xff] }
 0x253   : > { %4279 = vmatpush1.bf16.msra.mxu0 %v5643_v49  ;;  %4443 = vmatpush1.bf16.msra.mxu1 %v5645_v12  ;;  %v5694_v49 = vcombine.high %v1513_v19, %v1517_v13  ;;  %v1520_v12 = vld [vmem:[#allocation9 + $0xd40] sm:$0xff]  ;;  %v5732_v4 = vcombine.high %v1552_v53, %v1556_v24  ;;  %v1561_v13 = vld [vmem:[#allocation9 + $0xe88] sm:$0xff] }
 0x254   : > { %4280 = vmatprep.subr.bf16.mxu0 %v5652_v46  ;;  %4444 = vmatprep.subr.bf16.mxu1 %v5654_v47  ;;  %v1524_v46 = vld [vmem:[#allocation9 + $0xd60] sm:$0xff]  ;;  %v937_v47 = vadd.f32 %v936_v38, %v935_v20 }
 0x255   : > { %v5700_v55 = vcombine.high %v1520_v12, %v1524_v46  ;;  %v5699_v63 = vcombine.low %v1520_v12, %v1524_v46  ;;  %v1560_v38 = vld [vmem:[#allocation9 + $0xe80] sm:$0xff] }
 0x256   : > { %v1568_v46 = vld [vmem:[#allocation9 + $0xec0] sm:$0xff] }
 0x257   : > { %4281 = vmatpush1.bf16.msra.mxu0 %v5651_v58  ;;  %4445 = vmatpush1.bf16.msra.mxu1 %v5653_v59  ;;  %v1532_v58 = vld [vmem:[#allocation9 + $0xda0] sm:$0xff]  ;;  %v993_v59 = vadd.f32 %v992_v48, %v991_v9  ;;  %v1569_v48 = vld [vmem:[#allocation9 + $0xec8] sm:$0xff] }
 0x258   : > { %4291 = vmatprep.subr.bf16.mxu0 %v5660_v60  ;;  %4455 = vmatprep.subr.bf16.mxu1 %v5662_v61  ;;  %v6602_v60 = vmul.f32 0.125, %v937_v47  ;;  %v1529_v61 = vld [vmem:[#allocation9 + $0xd88] sm:$0xff]  ;;  %v5708_v2 = vcombine.high %v1528_v56, %v1532_v58  ;;  %v5707_v17 = vcombine.low %v1528_v56, %v1532_v58  ;;  %v1564_v9 = vld [vmem:[#allocation9 + $0xea0] sm:$0xff] }
 0x259   : > { %v5710_v3 = vcombine.high %v1529_v61, %v1533_v62  ;;  %v5709_v26 = vcombine.low %v1529_v61, %v1533_v62  ;;  %v1572_v47 = vld [vmem:[#allocation9 + $0xee0] sm:$0xff]  ;;  %v5739_v51 = vcombine.low %v1560_v38, %v1564_v9  ;;  %v1577_v58 = vld [vmem:[#allocation9 + $0xf08] sm:$0xff]  ;;  %v5749_v62 = vcombine.low %v1569_v48, %v1573_v50 }
 0x25a   : > { %4283 = vmatmul.mubr.bf16.vlgmr.msra.gmra.mrb[0].mxu0 %v6594_v5  ;;  %4447 = vmatmul.mubr.bf16.vlgmr.msra.gmra.mrb[0].mxu1 %v6594_v5  ;;  %v1580_v56 = vld [vmem:[#allocation9 + $0xf20] sm:$0xff]  ;;  %v5747_v61 = vcombine.low %v1568_v46, %v1572_v47 }
 0x25b   : > { %4292 = vmatpush1.bf16.msra.mxu0 %v5659_v8  ;;  %4456 = vmatpush1.bf16.msra.mxu1 %v5661_v10  ;;  %v1014_v8 = vmul.f32 0.125, %v993_v59  ;;  %v1022_v10 = vmul.f32 %v6602_v60, %v6602_v60  ;;  %v1581_v59 = vld [vmem:[#allocation9 + $0xf28] sm:$0xff] }
 0x25c   : > { %4293 = vmatprep.subr.bf16.mxu0 %v5668_v11  ;;  %4457 = vmatprep.subr.bf16.mxu1 %v5670_v16  ;;  %v1537_v11 = vld [vmem:[#allocation9 + $0xdc8] sm:$0xff] }
 0x25d   : > { %4323 = vmatprep.mubr.bf16.mxu0 %v6596_v18  ;;  %4487 = vmatprep.mubr.bf16.mxu1 %v6596_v18  ;;  %v1541_v16 = vld [vmem:[#allocation9 + $0xde8] sm:$0xff] }
 0x25e   : > { %v5718_v22 = vcombine.high %v1537_v11, %v1541_v16  ;;  %v5717_v31 = vcombine.low %v1537_v11, %v1541_v16  ;;  %v5757_v16 = vcombine.low %v1577_v58, %v1581_v59 }
 0x25f   : > { %4294 = vmatpush1.bf16.msra.mxu0 %v5667_v27  ;;  %4458 = vmatpush1.bf16.msra.mxu1 %v5669_v28  ;;  %v1030_v27 = vsub.f32 %v1014_v8, %v1022_v10  ;;  %v1545_v28 = vld [vmem:[#allocation9 + $0xe08] sm:$0xff]  ;;  %v1046_v8 = vsub.f32 %v6588_v44, %v6602_v60 }
 0x260   : > { %4295 = vmatprep.subr.bf16.mxu0 %v5676_v29  ;;  %4459 = vmatprep.subr.bf16.mxu1 %v5678_v30  ;;  %v1549_v29 = vld [vmem:[#allocation9 + $0xe28] sm:$0xff]  ;;  %v5715_v30 = vcombine.low %v1536_v6, %v1540_v7 }
 0x261   : > { %v5726_v20 = vcombine.high %v1545_v28, %v1549_v29  ;;  %v1038_v32 = vmax.f32 %v1030_v27, 0.0  ;;  %v1585_v6 = vld [vmem:[#allocation9 + $0xf48] sm:$0xff] }
 0x262   : > { %v1589_v7 = vld [vmem:[#allocation9 + $0xf68] sm:$0xff] }
 0x263   : > { %4296 = vmatpush1.bf16.msra.mxu0 %v5675_v33  ;;  %4460 = vmatpush1.bf16.msra.mxu1 %v5677_v35  ;;  %v1553_v33 = vld [vmem:[#allocation9 + $0xe48] sm:$0xff]  ;;  %v1054_v19 = vadd.f32 1e-05, %v1038_v32 }
 0x264   : > { %4297 = vmatprep.subr.bf16.mxu0 %v5684_v36  ;;  %4461 = vmatprep.subr.bf16.mxu1 %v5686_v39  ;;  %v1557_v35 = vld [vmem:[#allocation9 + $0xe68] sm:$0xff]  ;;  %v5723_v36 = vcombine.low %v1544_v23, %v1548_v25  ;;  %v5725_v39 = vcombine.low %v1545_v28, %v1549_v29  ;;  %v5765_v29 = vcombine.low %v1585_v6, %v1589_v7 }
 0x265   : > { %v5734_v37 = vcombine.high %v1553_v33, %v1557_v35  ;;  %5932 = vrsqrt.f32 %v1054_v19  ;;  %v1593_v23 = vld [vmem:[#allocation9 + $0xf88] sm:$0xff] }
 0x266   : > { %v1597_v25 = vld [vmem:[#allocation9 + $0xfa8] sm:$0xff] }
 0x267   : > { %4298 = vmatpush1.bf16.msra.mxu0 %v5683_v40  ;;  %4462 = vmatpush1.bf16.msra.mxu1 %v5685_v41  ;;  %v1565_v40 = vld [vmem:[#allocation9 + $0xea8] sm:$0xff]  ;;  %v5731_v41 = vcombine.low %v1552_v53, %v1556_v24  ;;  %v5774_v60 = vcombine.high %v1593_v23, %v1597_v25  ;;  %v5773_v32 = vcombine.low %v1593_v23, %v1597_v25  ;;  %v1138_v23 = vld [vmem:[#allocation9 + $0x150] sm:$0xff] }
 0x268   : > { %4299 = vmatprep.subr.bf16.mxu0 %v5692_v43  ;;  %4463 = vmatprep.subr.bf16.mxu1 %v5694_v49  ;;  %v5733_v43 = vcombine.low %v1553_v33, %v1557_v35  ;;  %v5740_v49 = vcombine.high %v1560_v38, %v1564_v9  ;;  %v5742_v12 = vcombine.high %v1561_v13, %v1565_v40  ;;  %v1103_v38 = vld [vmem:[#allocation9 + $0x38] sm:$0xff]  ;;  %v1142_v25 = vld [vmem:[#allocation9 + $0x170] sm:$0xff] }
 0x26b   : > { %4300 = vmatpush1.bf16.msra.mxu0 %v5691_v52  ;;  %4464 = vmatpush1.bf16.msra.mxu1 %v5693_v54  ;;  %v5741_v52 = vcombine.low %v1561_v13, %v1565_v40  ;;  %v5748_v54 = vcombine.high %v1568_v46, %v1572_v47  ;;  %v1111_v46 = vld [vmem:[#allocation9 + $0x78] sm:$0xff] }
 0x26c   : > { %4301 = vmatprep.subr.bf16.mxu0 %v5700_v55  ;;  %4465 = vmatprep.subr.bf16.mxu1 %v5702_v45  ;;  %v5750_v55 = vcombine.high %v1569_v48, %v1573_v50  ;;  %v1576_v45 = vld [vmem:[#allocation9 + $0xf00] sm:$0xff] }
 0x26d   : > { %v5755_v11 = vcombine.low %v1576_v45, %v1580_v56 }
 0x26f   : > { %4302 = vmatpush1.bf16.msra.mxu0 %v5699_v63  ;;  %4466 = vmatpush1.bf16.msra.mxu1 %v5701_v0  ;;  %v5756_v63 = vcombine.high %v1576_v45, %v1580_v56  ;;  %v5758_v0 = vcombine.high %v1577_v58, %v1581_v59  ;;  %v5933_v10 = vpop.eup %5932  ;;  %v1119_v45 = vld [vmem:[#allocation9 + $0xb8] sm:$0xff] }
 0x270   : > { %4303 = vmatprep.subr.bf16.mxu0 %v5708_v2  ;;  %4467 = vmatprep.subr.bf16.mxu1 %v5710_v3  ;;  %v1584_v2 = vld [vmem:[#allocation9 + $0xf40] sm:$0xff]  ;;  %v1070_v27 = vmul.f32 %v5933_v10, %v1046_v8  ;;  %v1130_v10 = vld [vmem:[#allocation9 + $0x110] sm:$0xff] }
 0x271   : > { %v1588_v3 = vld [vmem:[#allocation9 + $0xf60] sm:$0xff] }
 0x272   : > { %v5763_v28 = vcombine.low %v1584_v2, %v1588_v3  ;;  %v1078_v53 = vmul.f32 0.2, %v1070_v27 }
 0x273   : > { %4304 = vmatpush1.bf16.msra.mxu0 %v5707_v17  ;;  %4468 = vmatpush1.bf16.msra.mxu1 %v5709_v26  ;;  %v5764_v17 = vcombine.high %v1584_v2, %v1588_v3  ;;  %v5766_v26 = vcombine.high %v1585_v6, %v1589_v7  ;;  %v1127_v2 = vld [vmem:[#allocation9 + $0xf8] sm:$0xff] }
 0x274   : > { %4305 = vmatprep.subr.bf16.mxu0 %v5716_v21  ;;  %4469 = vmatprep.subr.bf16.mxu1 %v5718_v22  ;;  %v1592_v21 = vld [vmem:[#allocation9 + $0xf80] sm:$0xff] }
 0x275   : > { %v1596_v22 = vld [vmem:[#allocation9 + $0xfa0] sm:$0xff] }
 0x276   : > { %v5772_v44 = vcombine.high %v1592_v21, %v1596_v22  ;;  %v5771_v24 = vcombine.low %v1592_v21, %v1596_v22 }
 0x277   : > { %4306 = vmatpush1.bf16.msra.mxu0 %v5715_v30  ;;  %4470 = vmatpush1.bf16.msra.mxu1 %v5717_v31  ;;  %v1600_v30 = vld [vmem:[#allocation9 + $0xfc0] sm:$0xff] }
 0x278   : > { %4307 = vmatprep.subr.bf16.mxu0 %v5724_v34  ;;  %4471 = vmatprep.subr.bf16.mxu1 %v5726_v20  ;;  %v1604_v31 = vld [vmem:[#allocation9 + $0xfe0] sm:$0xff]  ;;  %v1601_v34 = vld [vmem:[#allocation9 + $0xfc8] sm:$0xff] }
 0x279   : > { %v1605_v20 = vld [vmem:[#allocation9 + $0xfe8] sm:$0xff]  ;;  %v5780_v33 = vcombine.high %v1600_v30, %v1604_v31  ;;  %v5779_v9 = vcombine.low %v1600_v30, %v1604_v31  ;;  %v1146_v31 = vld [vmem:[#allocation9 + $0x190] sm:$0xff] }
 0x27a   : > { %v5782_v35 = vcombine.high %v1601_v34, %v1605_v20  ;;  %v5781_v19 = vcombine.low %v1601_v34, %v1605_v20  ;;  %v1150_v34 = vld [vmem:[#allocation9 + $0x1b0] sm:$0xff]  ;;  %v1147_v20 = vld [vmem:[#allocation9 + $0x198] sm:$0xff] }
 0x27b   : > { %4308 = vmatpush1.bf16.msra.mxu0 %v5723_v36  ;;  %4472 = vmatpush1.bf16.msra.mxu1 %v5725_v39  ;;  %v1098_v36 = vld [vmem:[#allocation9 + $0x10] sm:$0xff] }
 0x27c   : > { %4309 = vmatprep.subr.bf16.mxu0 %v5732_v4  ;;  %4473 = vmatprep.subr.bf16.mxu1 %v5734_v37  ;;  %v1102_v39 = vld [vmem:[#allocation9 + $0x30] sm:$0xff]  ;;  %v1086_v4 = vmax.f32 %v1070_v27, %v1078_v53  ;;  %v1099_v37 = vld [vmem:[#allocation9 + $0x18] sm:$0xff] }
 0x27d   : > { %v5280_v13 = vcombine.high %v1098_v36, %v1102_v39  ;;  %v5282_v40 = vcombine.high %v1099_v37, %v1103_v38  ;;  %v5279_v47 = vcombine.low %v1098_v36, %v1102_v39  ;;  %v5281_v48 = vcombine.low %v1099_v37, %v1103_v38  ;;  %v1139_v27 = vld [vmem:[#allocation9 + $0x158] sm:$0xff]  ;;  %v1154_v36 = vld [vmem:[#allocation9 + $0x1d0] sm:$0xff] }
 0x27e   : > { %v1151_v53 = vld [vmem:[#allocation9 + $0x1b8] sm:$0xff]  ;;  %v1158_v39 = vld [vmem:[#allocation9 + $0x1f0] sm:$0xff]  ;;  %v5327_v38 = vcombine.low %v1146_v31, %v1150_v34 }
 0x27f   : > { %4310 = vmatpush1.bf16.msra.mxu0 %v5731_v41  ;;  %4474 = vmatpush1.bf16.msra.mxu1 %v5733_v43  ;;  %v1106_v41 = vld [vmem:[#allocation9 + $0x50] sm:$0xff]  ;;  %v1159_v37 = vld [vmem:[#allocation9 + $0x1f8] sm:$0xff] }
 0x280   : > { %4311 = vmatprep.subr.bf16.mxu0 %v5740_v49  ;;  %4475 = vmatprep.subr.bf16.mxu1 %v5742_v12  ;;  %v1110_v43 = vld [vmem:[#allocation9 + $0x70] sm:$0xff]  ;;  %v6608_v49 = vpack.c.bf16 %v1086_v4, %v1086_v4  ;;  %v1107_v12 = vld [vmem:[#allocation9 + $0x58] sm:$0xff] }
 0x281   : > { %v5288_v50 = vcombine.high %v1106_v41, %v1110_v43  ;;  %v5287_v56 = vcombine.low %v1106_v41, %v1110_v43  ;;  %v5289_v58 = vcombine.low %v1107_v12, %v1111_v46  ;;  %v1155_v4 = vld [vmem:[#allocation9 + $0x1d8] sm:$0xff]  ;;  %v1166_v41 = vld [vmem:[#allocation9 + $0x230] sm:$0xff] }
 0x282   : > { %v1163_v43 = vld [vmem:[#allocation9 + $0x218] sm:$0xff] }
 0x283   : > { %4312 = vmatpush1.bf16.msra.mxu0 %v5739_v51  ;;  %4476 = vmatpush1.bf16.msra.mxu1 %v5741_v52  ;;  %v5290_v51 = vcombine.high %v1107_v12, %v1111_v46  ;;  %v1114_v52 = vld [vmem:[#allocation9 + $0x90] sm:$0xff]  ;;  %v1167_v12 = vld [vmem:[#allocation9 + $0x238] sm:$0xff]  ;;  %v5335_v46 = vcombine.low %v1154_v36, %v1158_v39 }
 0x284   : > { %4313 = vmatprep.subr.bf16.mxu0 %v5748_v54  ;;  %4477 = vmatprep.subr.bf16.mxu1 %v5750_v55  ;;  %v1118_v54 = vld [vmem:[#allocation9 + $0xb0] sm:$0xff]  ;;  %v1115_v55 = vld [vmem:[#allocation9 + $0x98] sm:$0xff] }
 0x285   : > { %v5296_v59 = vcombine.high %v1114_v52, %v1118_v54  ;;  %v5295_v3 = vcombine.low %v1114_v52, %v1118_v54  ;;  %v5297_v6 = vcombine.low %v1115_v55, %v1119_v45  ;;  %v1174_v52 = vld [vmem:[#allocation9 + $0x270] sm:$0xff]  ;;  %v1171_v54 = vld [vmem:[#allocation9 + $0x258] sm:$0xff] }
 0x287   : > { %4314 = vmatpush1.bf16.msra.mxu0 %v5747_v61  ;;  %4478 = vmatpush1.bf16.msra.mxu1 %v5749_v62  ;;  %v5298_v61 = vcombine.high %v1115_v55, %v1119_v45  ;;  %v1122_v62 = vld [vmem:[#allocation9 + $0xd0] sm:$0xff]  ;;  %v1175_v55 = vld [vmem:[#allocation9 + $0x278] sm:$0xff] }
 0x288   : > { %4315 = vmatprep.subr.bf16.mxu0 %v5756_v63  ;;  %4479 = vmatprep.subr.bf16.mxu1 %v5758_v0  ;;  %v1126_v63 = vld [vmem:[#allocation9 + $0xf0] sm:$0xff]  ;;  %v1123_v0 = vld [vmem:[#allocation9 + $0xd8] sm:$0xff] }
 0x289   : > { %v5304_v7 = vcombine.high %v1122_v62, %v1126_v63  ;;  %v5306_v8 = vcombine.high %v1123_v0, %v1127_v2  ;;  %v5305_v21 = vcombine.low %v1123_v0, %v1127_v2  ;;  %v1183_v0 = vld [vmem:[#allocation9 + $0x2b8] sm:$0xff] }
 0x28b   : > { %4316 = vmatpush1.bf16.msra.mxu0 %v5755_v11  ;;  %4480 = vmatpush1.bf16.msra.mxu1 %v5757_v16  ;;  %v1134_v11 = vld [vmem:[#allocation9 + $0x130] sm:$0xff]  ;;  %v1131_v16 = vld [vmem:[#allocation9 + $0x118] sm:$0xff] }
 0x28c   : > { %4317 = vmatprep.subr.bf16.mxu0 %v5764_v17  ;;  %4481 = vmatprep.subr.bf16.mxu1 %v5766_v26  ;;  %v1135_v17 = vld [vmem:[#allocation9 + $0x138] sm:$0xff]  ;;  %v5303_v26 = vcombine.low %v1122_v62, %v1126_v63  ;;  %v5312_v22 = vcombine.high %v1130_v10, %v1134_v11  ;;  %v1182_v62 = vld [vmem:[#allocation9 + $0x2b0] sm:$0xff] }
 0x28d   : > { %v1179_v63 = vld [vmem:[#allocation9 + $0x298] sm:$0xff] }
 0x28f   : > { %4318 = vmatpush1.bf16.msra.mxu0 %v5763_v28  ;;  %4482 = vmatpush1.bf16.msra.mxu1 %v5765_v29  ;;  %v1143_v28 = vld [vmem:[#allocation9 + $0x178] sm:$0xff]  ;;  %v5311_v29 = vcombine.low %v1130_v10, %v1134_v11  ;;  %v1190_v10 = vld [vmem:[#allocation9 + $0x2f0] sm:$0xff] }
 0x290   : > { %4319 = vmatprep.subr.bf16.mxu0 %v5772_v44  ;;  %4483 = vmatprep.subr.bf16.mxu1 %v5774_v60  ;;  %v5313_v44 = vcombine.low %v1131_v16, %v1135_v17  ;;  %v5320_v60 = vcombine.high %v1138_v23, %v1142_v25  ;;  %v5322_v30 = vcombine.high %v1139_v27, %v1143_v28  ;;  %v1187_v11 = vld [vmem:[#allocation9 + $0x2d8] sm:$0xff] }
 0x293   : > { %4320 = vmatpush1.bf16.msra.mxu0 %v5771_v24  ;;  %4484 = vmatpush1.bf16.msra.mxu1 %v5773_v32  ;;  %v5319_v24 = vcombine.low %v1138_v23, %v1142_v25  ;;  %v5321_v32 = vcombine.low %v1139_v27, %v1143_v28  ;;  %v1198_v23 = vld [vmem:[#allocation9 + $0x330] sm:$0xff]  ;;  %v1195_v25 = vld [vmem:[#allocation9 + $0x318] sm:$0xff] }
 0x294   : > { %4321 = vmatprep.subr.bf16.mxu0 %v5780_v33  ;;  %4485 = vmatprep.subr.bf16.mxu1 %v5782_v35  ;;  %v5328_v33 = vcombine.high %v1146_v31, %v1150_v34  ;;  %v5330_v35 = vcombine.high %v1147_v20, %v1151_v53  ;;  %v1199_v27 = vld [vmem:[#allocation9 + $0x338] sm:$0xff]  ;;  %v1206_v31 = vld [vmem:[#allocation9 + $0x370] sm:$0xff] }
 0x295   : > { %v1203_v34 = vld [vmem:[#allocation9 + $0x358] sm:$0xff] }
 0x297   : > { %4322 = vmatpush1.bf16.msra.mxu0 %v5779_v9  ;;  %4486 = vmatpush1.bf16.msra.mxu1 %v5781_v19  ;;  %v5329_v9 = vcombine.low %v1147_v20, %v1151_v53  ;;  %v5336_v19 = vcombine.high %v1154_v36, %v1158_v39  ;;  %v1207_v20 = vld [vmem:[#allocation9 + $0x378] sm:$0xff]  ;;  %v1214_v36 = vld [vmem:[#allocation9 + $0x3b0] sm:$0xff] }
 0x298   : > { %4496 = vmatprep.subr.bf16.mxu0 %v5280_v13  ;;  %4660 = vmatprep.subr.bf16.mxu1 %v5282_v40  ;;  %v5338_v13 = vcombine.high %v1155_v4, %v1159_v37  ;;  %v1162_v40 = vld [vmem:[#allocation9 + $0x210] sm:$0xff]  ;;  %v1211_v39 = vld [vmem:[#allocation9 + $0x398] sm:$0xff] }
 0x299   : > { %v5343_v45 = vcombine.low %v1162_v40, %v1166_v41 }
 0x29a   : > { %4324 = vmatmul.mubr.bf16.vlgmr.msra.gmra.mrb[0].mxu0 %v6608_v49  ;;  %4488 = vmatmul.mubr.bf16.vlgmr.msra.gmra.mrb[0].mxu1 %v6608_v49 }
 0x29b   : > { %4497 = vmatpush1.bf16.msra.mxu0 %v5279_v47  ;;  %4661 = vmatpush1.bf16.msra.mxu1 %v5281_v48  ;;  %v5337_v47 = vcombine.low %v1155_v4, %v1159_v37  ;;  %v5344_v48 = vcombine.high %v1162_v40, %v1166_v41  ;;  %v1215_v4 = vld [vmem:[#allocation9 + $0x3b8] sm:$0xff]  ;;  %v1222_v40 = vld [vmem:[#allocation9 + $0x3f0] sm:$0xff] }
 0x29c   : > { %4498 = vmatprep.subr.bf16.mxu0 %v5288_v50  ;;  %4662 = vmatprep.subr.bf16.mxu1 %v5290_v51  ;;  %v5346_v50 = vcombine.high %v1163_v43, %v1167_v12  ;;  %v1170_v51 = vld [vmem:[#allocation9 + $0x250] sm:$0xff]  ;;  %v1219_v41 = vld [vmem:[#allocation9 + $0x3d8] sm:$0xff] }
 0x29d   : > { %4528 = vmatprep.mubr.bf16.mxu0 %v6519_v42  ;;  %4692 = vmatprep.mubr.bf16.mxu1 %v6519_v42  ;;  %v5314_v42 = vcombine.high %v1131_v16, %v1135_v17  ;;  %v5351_v2 = vcombine.low %v1170_v51, %v1174_v52  ;;  %v1191_v16 = vld [vmem:[#allocation9 + $0x2f8] sm:$0xff] }
 0x29f   : > { %4499 = vmatpush1.bf16.msra.mxu0 %v5287_v56  ;;  %4663 = vmatpush1.bf16.msra.mxu1 %v5289_v58  ;;  %v5345_v56 = vcombine.low %v1163_v43, %v1167_v12  ;;  %v5352_v58 = vcombine.high %v1170_v51, %v1174_v52  ;;  %v1223_v43 = vld [vmem:[#allocation9 + $0x3f8] sm:$0xff]  ;;  %v1230_v51 = vld [vmem:[#allocation9 + $0x430] sm:$0xff] }
 0x2a0   : > { %4500 = vmatprep.subr.bf16.mxu0 %v5296_v59  ;;  %4664 = vmatprep.subr.bf16.mxu1 %v5298_v61  ;;  %v5354_v59 = vcombine.high %v1171_v54, %v1175_v55  ;;  %v1178_v61 = vld [vmem:[#allocation9 + $0x290] sm:$0xff]  ;;  %v1227_v52 = vld [vmem:[#allocation9 + $0x418] sm:$0xff] }
 0x2a1   : > { %v5359_v17 = vcombine.low %v1178_v61, %v1182_v62 }
 0x2a3   : > { %4501 = vmatpush1.bf16.msra.mxu0 %v5295_v3  ;;  %4665 = vmatpush1.bf16.msra.mxu1 %v5297_v6  ;;  %v5353_v3 = vcombine.low %v1171_v54, %v1175_v55  ;;  %v5360_v6 = vcombine.high %v1178_v61, %v1182_v62  ;;  %v1231_v54 = vld [vmem:[#allocation9 + $0x438] sm:$0xff]  ;;  %v1238_v61 = vld [vmem:[#allocation9 + $0x470] sm:$0xff] }
 0x2a4   : > { %4502 = vmatprep.subr.bf16.mxu0 %v5304_v7  ;;  %4666 = vmatprep.subr.bf16.mxu1 %v5306_v8  ;;  %v5362_v7 = vcombine.high %v1179_v63, %v1183_v0  ;;  %v1186_v8 = vld [vmem:[#allocation9 + $0x2d0] sm:$0xff]  ;;  %v1235_v62 = vld [vmem:[#allocation9 + $0x458] sm:$0xff] }
 0x2a5   : > { %v5367_v28 = vcombine.low %v1186_v8, %v1190_v10 }
 0x2a7   : > { %4503 = vmatpush1.bf16.msra.mxu0 %v5303_v26  ;;  %4667 = vmatpush1.bf16.msra.mxu1 %v5305_v21  ;;  %v5361_v26 = vcombine.low %v1179_v63, %v1183_v0  ;;  %v5368_v21 = vcombine.high %v1186_v8, %v1190_v10  ;;  %v1239_v63 = vld [vmem:[#allocation9 + $0x478] sm:$0xff]  ;;  %v1246_v8 = vld [vmem:[#allocation9 + $0x4b0] sm:$0xff] }
 0x2a8   : > { %4504 = vmatprep.subr.bf16.mxu0 %v5312_v22  ;;  %4668 = vmatprep.subr.bf16.mxu1 %v5314_v42  ;;  %v5370_v22 = vcombine.high %v1187_v11, %v1191_v16  ;;  %v1194_v42 = vld [vmem:[#allocation9 + $0x310] sm:$0xff]  ;;  %v1243_v10 = vld [vmem:[#allocation9 + $0x498] sm:$0xff] }
 0x2a9   : > { %v5375_v53 = vcombine.low %v1194_v42, %v1198_v23 }
 0x2ab   : > { %4505 = vmatpush1.bf16.msra.mxu0 %v5311_v29  ;;  %4669 = vmatpush1.bf16.msra.mxu1 %v5313_v44  ;;  %v5369_v29 = vcombine.low %v1187_v11, %v1191_v16  ;;  %v5376_v44 = vcombine.high %v1194_v42, %v1198_v23  ;;  %v1247_v11 = vld [vmem:[#allocation9 + $0x4b8] sm:$0xff]  ;;  %v1254_v42 = vld [vmem:[#allocation9 + $0x4f0] sm:$0xff] }
 0x2ac   : > { %4506 = vmatprep.subr.bf16.mxu0 %v5320_v60  ;;  %4670 = vmatprep.subr.bf16.mxu1 %v5322_v30  ;;  %v5378_v60 = vcombine.high %v1195_v25, %v1199_v27  ;;  %v1202_v30 = vld [vmem:[#allocation9 + $0x350] sm:$0xff]  ;;  %v1251_v23 = vld [vmem:[#allocation9 + $0x4d8] sm:$0xff] }
 0x2ad   : > { %v5383_v37 = vcombine.low %v1202_v30, %v1206_v31 }
 0x2af   : > { %4507 = vmatpush1.bf16.msra.mxu0 %v5319_v24  ;;  %4671 = vmatpush1.bf16.msra.mxu1 %v5321_v32  ;;  %v5377_v24 = vcombine.low %v1195_v25, %v1199_v27  ;;  %v5384_v32 = vcombine.high %v1202_v30, %v1206_v31  ;;  %v1255_v25 = vld [vmem:[#allocation9 + $0x4f8] sm:$0xff] }
 0x2b0   : > { %4508 = vmatprep.subr.bf16.mxu0 %v5328_v33  ;;  %4672 = vmatprep.subr.bf16.mxu1 %v5330_v35  ;;  %v5386_v33 = vcombine.high %v1203_v34, %v1207_v20  ;;  %v1210_v35 = vld [vmem:[#allocation9 + $0x390] sm:$0xff]  ;;  %v1259_v30 = vld [vmem:[#allocation9 + $0x518] sm:$0xff] }
 0x2b1   : > { %v5391_v12 = vcombine.low %v1210_v35, %v1214_v36  ;;  %v1263_v31 = vld [vmem:[#allocation9 + $0x538] sm:$0xff] }
 0x2b3   : > { %4509 = vmatpush1.bf16.msra.mxu0 %v5327_v38  ;;  %4673 = vmatpush1.bf16.msra.mxu1 %v5329_v9  ;;  %v5385_v38 = vcombine.low %v1203_v34, %v1207_v20  ;;  %v5392_v9 = vcombine.high %v1210_v35, %v1214_v36  ;;  %v5433_v20 = vcombine.low %v1251_v23, %v1255_v25  ;;  %v1271_v35 = vld [vmem:[#allocation9 + $0x578] sm:$0xff] }
 0x2b4   : > { %4510 = vmatprep.subr.bf16.mxu0 %v5336_v19  ;;  %4674 = vmatprep.subr.bf16.mxu1 %v5338_v13  ;;  %v5394_v19 = vcombine.high %v1211_v39, %v1215_v4  ;;  %v1218_v13 = vld [vmem:[#allocation9 + $0x3d0] sm:$0xff] }
 0x2b5   : > { %v5399_v55 = vcombine.low %v1218_v13, %v1222_v40 }
 0x2b7   : > { %4511 = vmatpush1.bf16.msra.mxu0 %v5335_v46  ;;  %4675 = vmatpush1.bf16.msra.mxu1 %v5337_v47  ;;  %v5393_v46 = vcombine.low %v1211_v39, %v1215_v4  ;;  %v5400_v47 = vcombine.high %v1218_v13, %v1222_v40  ;;  %v5441_v39 = vcombine.low %v1259_v30, %v1263_v31  ;;  %v1279_v13 = vld [vmem:[#allocation9 + $0x5b8] sm:$0xff] }
 0x2b8   : > { %4512 = vmatprep.subr.bf16.mxu0 %v5344_v48  ;;  %4676 = vmatprep.subr.bf16.mxu1 %v5346_v50  ;;  %v5402_v48 = vcombine.high %v1219_v41, %v1223_v43  ;;  %v1226_v50 = vld [vmem:[#allocation9 + $0x410] sm:$0xff] }
 0x2b9   : > { %v5407_v0 = vcombine.low %v1226_v50, %v1230_v51 }
 0x2bb   : > { %4513 = vmatpush1.bf16.msra.mxu0 %v5343_v45  ;;  %4677 = vmatpush1.bf16.msra.mxu1 %v5345_v56  ;;  %v5401_v45 = vcombine.low %v1219_v41, %v1223_v43  ;;  %v5408_v56 = vcombine.high %v1226_v50, %v1230_v51  ;;  %v1287_v50 = vld [vmem:[#allocation9 + $0x5f8] sm:$0xff] }
 0x2bc   : > { %4514 = vmatprep.subr.bf16.mxu0 %v5352_v58  ;;  %4678 = vmatprep.subr.bf16.mxu1 %v5354_v59  ;;  %v5410_v58 = vcombine.high %v1227_v52, %v1231_v54  ;;  %v1234_v59 = vld [vmem:[#allocation9 + $0x450] sm:$0xff] }
 0x2bd   : > { %v5415_v16 = vcombine.low %v1234_v59, %v1238_v61 }
 0x2bf   : > { %4515 = vmatpush1.bf16.msra.mxu0 %v5351_v2  ;;  %4679 = vmatpush1.bf16.msra.mxu1 %v5353_v3  ;;  %v5409_v2 = vcombine.low %v1227_v52, %v1231_v54  ;;  %v5416_v3 = vcombine.high %v1234_v59, %v1238_v61  ;;  %v1295_v59 = vld [vmem:[#allocation9 + $0x638] sm:$0xff] }
 0x2c0   : > { %4516 = vmatprep.subr.bf16.mxu0 %v5360_v6  ;;  %4680 = vmatprep.subr.bf16.mxu1 %v5362_v7  ;;  %v5418_v6 = vcombine.high %v1235_v62, %v1239_v63  ;;  %v1242_v7 = vld [vmem:[#allocation9 + $0x490] sm:$0xff] }
 0x2c1   : > { %v5423_v27 = vcombine.low %v1242_v7, %v1246_v8 }
 0x2c3   : > { %4517 = vmatpush1.bf16.msra.mxu0 %v5359_v17  ;;  %4681 = vmatpush1.bf16.msra.mxu1 %v5361_v26  ;;  %v5417_v17 = vcombine.low %v1235_v62, %v1239_v63  ;;  %v5424_v26 = vcombine.high %v1242_v7, %v1246_v8  ;;  %v1303_v7 = vld [vmem:[#allocation9 + $0x678] sm:$0xff] }
 0x2c4   : > { %4518 = vmatprep.subr.bf16.mxu0 %v5368_v21  ;;  %4682 = vmatprep.subr.bf16.mxu1 %v5370_v22  ;;  %v5426_v21 = vcombine.high %v1243_v10, %v1247_v11  ;;  %v1250_v22 = vld [vmem:[#allocation9 + $0x4d0] sm:$0xff] }
 0x2c5   : > { %v5431_v34 = vcombine.low %v1250_v22, %v1254_v42 }
 0x2c7   : > { %4519 = vmatpush1.bf16.msra.mxu0 %v5367_v28  ;;  %4683 = vmatpush1.bf16.msra.mxu1 %v5369_v29  ;;  %v5432_v28 = vcombine.high %v1250_v22, %v1254_v42  ;;  %v5434_v29 = vcombine.high %v1251_v23, %v1255_v25  ;;  %v1311_v22 = vld [vmem:[#allocation9 + $0x6b8] sm:$0xff] }
 0x2c8   : > { %4520 = vmatprep.subr.bf16.mxu0 %v5376_v44  ;;  %4684 = vmatprep.subr.bf16.mxu1 %v5378_v60  ;;  %v1258_v44 = vld [vmem:[#allocation9 + $0x510] sm:$0xff] }
 0x2c9   : > { %v1262_v60 = vld [vmem:[#allocation9 + $0x530] sm:$0xff] }
 0x2ca   : > { %v5439_v36 = vcombine.low %v1258_v44, %v1262_v60 }
 0x2cb   : > { %4521 = vmatpush1.bf16.msra.mxu0 %v5375_v53  ;;  %4685 = vmatpush1.bf16.msra.mxu1 %v5377_v24  ;;  %v5440_v53 = vcombine.high %v1258_v44, %v1262_v60  ;;  %v1266_v24 = vld [vmem:[#allocation9 + $0x550] sm:$0xff]  ;;  %v1319_v44 = vld [vmem:[#allocation9 + $0x6f8] sm:$0xff] }
 0x2cc   : > { %4522 = vmatprep.subr.bf16.mxu0 %v5384_v32  ;;  %4686 = vmatprep.subr.bf16.mxu1 %v5386_v33  ;;  %v1270_v32 = vld [vmem:[#allocation9 + $0x570] sm:$0xff]  ;;  %v1267_v33 = vld [vmem:[#allocation9 + $0x558] sm:$0xff] }
 0x2cd   : > { %v5448_v4 = vcombine.high %v1266_v24, %v1270_v32  ;;  %v5447_v40 = vcombine.low %v1266_v24, %v1270_v32  ;;  %v5449_v41 = vcombine.low %v1267_v33, %v1271_v35  ;;  %v1327_v24 = vld [vmem:[#allocation9 + $0x738] sm:$0xff] }
 0x2cf   : > { %4523 = vmatpush1.bf16.msra.mxu0 %v5383_v37  ;;  %4687 = vmatpush1.bf16.msra.mxu1 %v5385_v38  ;;  %v5450_v37 = vcombine.high %v1267_v33, %v1271_v35  ;;  %v1274_v38 = vld [vmem:[#allocation9 + $0x590] sm:$0xff] }
 0x2d0   : > { %4524 = vmatprep.subr.bf16.mxu0 %v5392_v9  ;;  %4688 = vmatprep.subr.bf16.mxu1 %v5394_v19  ;;  %v1278_v9 = vld [vmem:[#allocation9 + $0x5b0] sm:$0xff]  ;;  %v1275_v19 = vld [vmem:[#allocation9 + $0x598] sm:$0xff] }
 0x2d1   : > { %v5456_v43 = vcombine.high %v1274_v38, %v1278_v9  ;;  %v5455_v51 = vcombine.low %v1274_v38, %v1278_v9  ;;  %v5457_v52 = vcombine.low %v1275_v19, %v1279_v13  ;;  %v1335_v38 = vld [vmem:[#allocation9 + $0x778] sm:$0xff] }
 0x2d3   : > { %4525 = vmatpush1.bf16.msra.mxu0 %v5391_v12  ;;  %4689 = vmatpush1.bf16.msra.mxu1 %v5393_v46  ;;  %v5458_v12 = vcombine.high %v1275_v19, %v1279_v13  ;;  %v1282_v46 = vld [vmem:[#allocation9 + $0x5d0] sm:$0xff] }
 0x2d4   : > { %4526 = vmatprep.subr.bf16.mxu0 %v5400_v47  ;;  %4690 = vmatprep.subr.bf16.mxu1 %v5402_v48  ;;  %v1286_v47 = vld [vmem:[#allocation9 + $0x5f0] sm:$0xff]  ;;  %v1283_v48 = vld [vmem:[#allocation9 + $0x5d8] sm:$0xff] }
 0x2d5   : > { %v5464_v54 = vcombine.high %v1282_v46, %v1286_v47  ;;  %v5463_v61 = vcombine.low %v1282_v46, %v1286_v47  ;;  %v5465_v62 = vcombine.low %v1283_v48, %v1287_v50  ;;  %v1343_v46 = vld [vmem:[#allocation9 + $0x7b8] sm:$0xff] }
 0x2d7   : > { %4527 = vmatpush1.bf16.msra.mxu0 %v5399_v55  ;;  %4691 = vmatpush1.bf16.msra.mxu1 %v5401_v45  ;;  %v5466_v55 = vcombine.high %v1283_v48, %v1287_v50  ;;  %v1290_v45 = vld [vmem:[#allocation9 + $0x610] sm:$0xff] }
 0x2d8   : > { %4537 = vmatprep.subr.bf16.mxu0 %v5408_v56  ;;  %4701 = vmatprep.subr.bf16.mxu1 %v5410_v58  ;;  %v1294_v56 = vld [vmem:[#allocation9 + $0x630] sm:$0xff]  ;;  %v1291_v58 = vld [vmem:[#allocation9 + $0x618] sm:$0xff] }
 0x2d9   : > { %v5472_v63 = vcombine.high %v1290_v45, %v1294_v56  ;;  %v5471_v8 = vcombine.low %v1290_v45, %v1294_v56  ;;  %v1351_v45 = vld [vmem:[#allocation9 + $0x7f8] sm:$0xff] }
 0x2da   : > { %4529 = vmatmul.mubr.bf16.vlgmr.msra.gmra.mrb[4].mxu0 %v6528_v57  ;;  %4693 = vmatmul.mubr.bf16.vlgmr.msra.gmra.mrb[4].mxu1 %v6528_v57  ;;  %v5425_v57 = vcombine.low %v1243_v10, %v1247_v11  ;;  %v5473_v10 = vcombine.low %v1291_v58, %v1295_v59 }
 0x2db   : > { %4538 = vmatpush1.bf16.msra.mxu0 %v5407_v0  ;;  %4702 = vmatpush1.bf16.msra.mxu1 %v5409_v2  ;;  %v5474_v0 = vcombine.high %v1291_v58, %v1295_v59  ;;  %v1298_v2 = vld [vmem:[#allocation9 + $0x650] sm:$0xff] }
 0x2dc   : > { %4539 = vmatprep.subr.bf16.mxu0 %v5416_v3  ;;  %4703 = vmatprep.subr.bf16.mxu1 %v5418_v6  ;;  %v1302_v3 = vld [vmem:[#allocation9 + $0x670] sm:$0xff]  ;;  %v1299_v6 = vld [vmem:[#allocation9 + $0x658] sm:$0xff] }
 0x2dd   : > { %4569 = vmatprep.mubr.bf16.mxu0 %v6544_v14  ;;  %4733 = vmatprep.mubr.bf16.mxu1 %v6544_v14  ;;  %v5442_v14 = vcombine.high %v1259_v30, %v1263_v31  ;;  %v5480_v11 = vcombine.high %v1298_v2, %v1302_v3  ;;  %v5479_v42 = vcombine.low %v1298_v2, %v1302_v3  ;;  %v1359_v2 = vld [vmem:[#allocation9 + $0x838] sm:$0xff] }
 0x2de   : > { %v5481_v23 = vcombine.low %v1299_v6, %v1303_v7 }
 0x2df   : > { %4540 = vmatpush1.bf16.msra.mxu0 %v5415_v16  ;;  %4704 = vmatpush1.bf16.msra.mxu1 %v5417_v17  ;;  %v5482_v16 = vcombine.high %v1299_v6, %v1303_v7  ;;  %v1306_v17 = vld [vmem:[#allocation9 + $0x690] sm:$0xff] }
 0x2e0   : > { %4541 = vmatprep.subr.bf16.mxu0 %v5424_v26  ;;  %4705 = vmatprep.subr.bf16.mxu1 %v5426_v21  ;;  %v1310_v26 = vld [vmem:[#allocation9 + $0x6b0] sm:$0xff]  ;;  %v1307_v21 = vld [vmem:[#allocation9 + $0x698] sm:$0xff] }
 0x2e1   : > { %v5488_v25 = vcombine.high %v1306_v17, %v1310_v26  ;;  %v5487_v60 = vcombine.low %v1306_v17, %v1310_v26  ;;  %v5489_v30 = vcombine.low %v1307_v21, %v1311_v22  ;;  %v1367_v17 = vld [vmem:[#allocation9 + $0x878] sm:$0xff] }
 0x2e3   : > { %4542 = vmatpush1.bf16.msra.mxu0 %v5423_v27  ;;  %4706 = vmatpush1.bf16.msra.mxu1 %v5425_v57  ;;  %v5490_v27 = vcombine.high %v1307_v21, %v1311_v22  ;;  %v1314_v57 = vld [vmem:[#allocation9 + $0x6d0] sm:$0xff] }
 0x2e4   : > { %4543 = vmatprep.subr.bf16.mxu0 %v5432_v28  ;;  %4707 = vmatprep.subr.bf16.mxu1 %v5434_v29  ;;  %v1318_v28 = vld [vmem:[#allocation9 + $0x6f0] sm:$0xff]  ;;  %v1315_v29 = vld [vmem:[#allocation9 + $0x6d8] sm:$0xff] }
 0x2e5   : > { %v5496_v31 = vcombine.high %v1314_v57, %v1318_v28  ;;  %v5495_v32 = vcombine.low %v1314_v57, %v1318_v28  ;;  %v5497_v33 = vcombine.low %v1315_v29, %v1319_v44  ;;  %v1375_v57 = vld [vmem:[#allocation9 + $0x8b8] sm:$0xff] }
 0x2e7   : > { %4544 = vmatpush1.bf16.msra.mxu0 %v5431_v34  ;;  %4708 = vmatpush1.bf16.msra.mxu1 %v5433_v20  ;;  %v5498_v34 = vcombine.high %v1315_v29, %v1319_v44  ;;  %v1322_v20 = vld [vmem:[#allocation9 + $0x710] sm:$0xff] }
 0x2e8   : > { %4545 = vmatprep.subr.bf16.mxu0 %v5440_v53  ;;  %4709 = vmatprep.subr.bf16.mxu1 %v5442_v14  ;;  %v1326_v53 = vld [vmem:[#allocation9 + $0x730] sm:$0xff]  ;;  %v1323_v14 = vld [vmem:[#allocation9 + $0x718] sm:$0xff] }
 0x2e9   : > { %v5504_v35 = vcombine.high %v1322_v20, %v1326_v53  ;;  %v5503_v9 = vcombine.low %v1322_v20, %v1326_v53  ;;  %v5505_v19 = vcombine.low %v1323_v14, %v1327_v24  ;;  %v1383_v20 = vld [vmem:[#allocation9 + $0x8f8] sm:$0xff] }
 0x2eb   : > { %4546 = vmatpush1.bf16.msra.mxu0 %v5439_v36  ;;  %4710 = vmatpush1.bf16.msra.mxu1 %v5441_v39  ;;  %v5506_v36 = vcombine.high %v1323_v14, %v1327_v24  ;;  %v1330_v39 = vld [vmem:[#allocation9 + $0x750] sm:$0xff] }
 0x2ec   : > { %4547 = vmatprep.subr.bf16.mxu0 %v5448_v4  ;;  %4711 = vmatprep.subr.bf16.mxu1 %v5450_v37  ;;  %v1334_v4 = vld [vmem:[#allocation9 + $0x770] sm:$0xff]  ;;  %v1331_v37 = vld [vmem:[#allocation9 + $0x758] sm:$0xff] }
 0x2ed   : > { %v5512_v13 = vcombine.high %v1330_v39, %v1334_v4  ;;  %v5511_v47 = vcombine.low %v1330_v39, %v1334_v4  ;;  %v5513_v48 = vcombine.low %v1331_v37, %v1335_v38 }
 0x2ef   : > { %4548 = vmatpush1.bf16.msra.mxu0 %v5447_v40  ;;  %4712 = vmatpush1.bf16.msra.mxu1 %v5449_v41  ;;  %v5514_v40 = vcombine.high %v1331_v37, %v1335_v38  ;;  %v1338_v41 = vld [vmem:[#allocation9 + $0x790] sm:$0xff] }
 0x2f0   : > { %4549 = vmatprep.subr.bf16.mxu0 %v5456_v43  ;;  %4713 = vmatprep.subr.bf16.mxu1 %v5458_v12  ;;  %v1342_v43 = vld [vmem:[#allocation9 + $0x7b0] sm:$0xff]  ;;  %v1339_v12 = vld [vmem:[#allocation9 + $0x798] sm:$0xff] }
 0x2f1   : > { %v5520_v50 = vcombine.high %v1338_v41, %v1342_v43  ;;  %v5519_v56 = vcombine.low %v1338_v41, %v1342_v43  ;;  %v5521_v58 = vcombine.low %v1339_v12, %v1343_v46  ;;  %v1394_v38 = vld [vmem:[#allocation9 + $0x950] sm:$0xff] }
 0x2f3   : > { %4550 = vmatpush1.bf16.msra.mxu0 %v5455_v51  ;;  %4714 = vmatpush1.bf16.msra.mxu1 %v5457_v52  ;;  %v5522_v51 = vcombine.high %v1339_v12, %v1343_v46  ;;  %v1346_v52 = vld [vmem:[#allocation9 + $0x7d0] sm:$0xff] }
 0x2f4   : > { %4551 = vmatprep.subr.bf16.mxu0 %v5464_v54  ;;  %4715 = vmatprep.subr.bf16.mxu1 %v5466_v55  ;;  %v1350_v54 = vld [vmem:[#allocation9 + $0x7f0] sm:$0xff]  ;;  %v1347_v55 = vld [vmem:[#allocation9 + $0x7d8] sm:$0xff] }
 0x2f5   : > { %v5528_v59 = vcombine.high %v1346_v52, %v1350_v54  ;;  %v5527_v3 = vcombine.low %v1346_v52, %v1350_v54  ;;  %v5529_v6 = vcombine.low %v1347_v55, %v1351_v45  ;;  %v1402_v46 = vld [vmem:[#allocation9 + $0x990] sm:$0xff] }
 0x2f7   : > { %4552 = vmatpush1.bf16.msra.mxu0 %v5463_v61  ;;  %4716 = vmatpush1.bf16.msra.mxu1 %v5465_v62  ;;  %v5530_v61 = vcombine.high %v1347_v55, %v1351_v45  ;;  %v1354_v62 = vld [vmem:[#allocation9 + $0x810] sm:$0xff] }
 0x2f8   : > { %4553 = vmatprep.subr.bf16.mxu0 %v5472_v63  ;;  %4717 = vmatprep.subr.bf16.mxu1 %v5474_v0  ;;  %v1358_v63 = vld [vmem:[#allocation9 + $0x830] sm:$0xff]  ;;  %v1355_v0 = vld [vmem:[#allocation9 + $0x818] sm:$0xff] }
 0x2f9   : > { %v5536_v7 = vcombine.high %v1354_v62, %v1358_v63  ;;  %v5535_v26 = vcombine.low %v1354_v62, %v1358_v63  ;;  %v5537_v21 = vcombine.low %v1355_v0, %v1359_v2  ;;  %v1410_v45 = vld [vmem:[#allocation9 + $0x9d0] sm:$0xff] }
 0x2fb   : > { %4554 = vmatpush1.bf16.msra.mxu0 %v5471_v8  ;;  %4718 = vmatpush1.bf16.msra.mxu1 %v5473_v10  ;;  %v5538_v8 = vcombine.high %v1355_v0, %v1359_v2  ;;  %v1362_v10 = vld [vmem:[#allocation9 + $0x850] sm:$0xff] }
 0x2fc   : > { %4555 = vmatprep.subr.bf16.mxu0 %v5480_v11  ;;  %4719 = vmatprep.subr.bf16.mxu1 %v5482_v16  ;;  %v1366_v11 = vld [vmem:[#allocation9 + $0x870] sm:$0xff]  ;;  %v1363_v16 = vld [vmem:[#allocation9 + $0x858] sm:$0xff] }
 0x2fd   : > { %v5544_v22 = vcombine.high %v1362_v10, %v1366_v11  ;;  %v5543_v28 = vcombine.low %v1362_v10, %v1366_v11  ;;  %v5545_v29 = vcombine.low %v1363_v16, %v1367_v17  ;;  %v1418_v2 = vld [vmem:[#allocation9 + $0xa10] sm:$0xff] }
 0x2ff   : > { %4556 = vmatpush1.bf16.msra.mxu0 %v5479_v42  ;;  %4720 = vmatpush1.bf16.msra.mxu1 %v5481_v23  ;;  %v5546_v42 = vcombine.high %v1363_v16, %v1367_v17  ;;  %v1370_v23 = vld [vmem:[#allocation9 + $0x890] sm:$0xff] }
 0x300   : > { %4557 = vmatprep.subr.bf16.mxu0 %v5488_v25  ;;  %4721 = vmatprep.subr.bf16.mxu1 %v5490_v27  ;;  %v1374_v25 = vld [vmem:[#allocation9 + $0x8b0] sm:$0xff]  ;;  %v1371_v27 = vld [vmem:[#allocation9 + $0x898] sm:$0xff] }
 0x301   : > { %v5552_v44 = vcombine.high %v1370_v23, %v1374_v25  ;;  %v5551_v53 = vcombine.low %v1370_v23, %v1374_v25  ;;  %v1426_v17 = vld [vmem:[#allocation9 + $0xa50] sm:$0xff] }
 0x303   : > { %4558 = vmatpush1.bf16.msra.mxu0 %v5487_v60  ;;  %4722 = vmatpush1.bf16.msra.mxu1 %v5489_v30  ;;  %v5554_v60 = vcombine.high %v1371_v27, %v1375_v57  ;;  %v1378_v30 = vld [vmem:[#allocation9 + $0x8d0] sm:$0xff] }
 0x304   : > { %4559 = vmatprep.subr.bf16.mxu0 %v5496_v31  ;;  %4723 = vmatprep.subr.bf16.mxu1 %v5498_v34  ;;  %v1382_v31 = vld [vmem:[#allocation9 + $0x8f0] sm:$0xff]  ;;  %v1379_v34 = vld [vmem:[#allocation9 + $0x8d8] sm:$0xff] }
 0x305   : > { %v5560_v14 = vcombine.high %v1378_v30, %v1382_v31  ;;  %v5562_v24 = vcombine.high %v1379_v34, %v1383_v20  ;;  %v5559_v39 = vcombine.low %v1378_v30, %v1382_v31  ;;  %v5561_v4 = vcombine.low %v1379_v34, %v1383_v20  ;;  %v1442_v20 = vld [vmem:[#allocation9 + $0xad0] sm:$0xff] }
 0x307   : > { %4560 = vmatpush1.bf16.msra.mxu0 %v5495_v32  ;;  %4724 = vmatpush1.bf16.msra.mxu1 %v5497_v33  ;;  %v1386_v32 = vld [vmem:[#allocation9 + $0x910] sm:$0xff] }
 0x308   : > { %4561 = vmatprep.subr.bf16.mxu0 %v5504_v35  ;;  %4725 = vmatprep.subr.bf16.mxu1 %v5506_v36  ;;  %v1390_v33 = vld [vmem:[#allocation9 + $0x930] sm:$0xff]  ;;  %v1387_v35 = vld [vmem:[#allocation9 + $0x918] sm:$0xff] }
 0x309   : > { %v1391_v36 = vld [vmem:[#allocation9 + $0x938] sm:$0xff]  ;;  %v5568_v37 = vcombine.high %v1386_v32, %v1390_v33 }
 0x30a   : > { %v5569_v41 = vcombine.low %v1387_v35, %v1391_v36 }
 0x30b   : > { %4562 = vmatpush1.bf16.msra.mxu0 %v5503_v9  ;;  %4726 = vmatpush1.bf16.msra.mxu1 %v5505_v19  ;;  %v1398_v9 = vld [vmem:[#allocation9 + $0x970] sm:$0xff]  ;;  %v1395_v19 = vld [vmem:[#allocation9 + $0x958] sm:$0xff] }
 0x30c   : > { %4563 = vmatprep.subr.bf16.mxu0 %v5512_v13  ;;  %4727 = vmatprep.subr.bf16.mxu1 %v5514_v40  ;;  %v1399_v13 = vld [vmem:[#allocation9 + $0x978] sm:$0xff]  ;;  %v5567_v40 = vcombine.low %v1386_v32, %v1390_v33  ;;  %v5576_v43 = vcombine.high %v1394_v38, %v1398_v9 }
 0x30d   : > { %v5578_v12 = vcombine.high %v1395_v19, %v1399_v13  ;;  %v5577_v52 = vcombine.low %v1395_v19, %v1399_v13  ;;  %v1458_v13 = vld [vmem:[#allocation9 + $0xb50] sm:$0xff] }
 0x30f   : > { %4564 = vmatpush1.bf16.msra.mxu0 %v5511_v47  ;;  %4728 = vmatpush1.bf16.msra.mxu1 %v5513_v48  ;;  %v1406_v47 = vld [vmem:[#allocation9 + $0x9b0] sm:$0xff]  ;;  %v1403_v48 = vld [vmem:[#allocation9 + $0x998] sm:$0xff] }
 0x310   : > { %4565 = vmatprep.subr.bf16.mxu0 %v5520_v50  ;;  %4729 = vmatprep.subr.bf16.mxu1 %v5522_v51  ;;  %v1407_v50 = vld [vmem:[#allocation9 + $0x9b8] sm:$0xff]  ;;  %v5575_v51 = vcombine.low %v1394_v38, %v1398_v9  ;;  %v5584_v54 = vcombine.high %v1402_v46, %v1406_v47 }
 0x311   : > { %v5586_v55 = vcombine.high %v1403_v48, %v1407_v50  ;;  %v5585_v62 = vcombine.low %v1403_v48, %v1407_v50  ;;  %v1466_v50 = vld [vmem:[#allocation9 + $0xb90] sm:$0xff] }
 0x313   : > { %4566 = vmatpush1.bf16.msra.mxu0 %v5519_v56  ;;  %4730 = vmatpush1.bf16.msra.mxu1 %v5521_v58  ;;  %v1414_v56 = vld [vmem:[#allocation9 + $0x9f0] sm:$0xff]  ;;  %v1411_v58 = vld [vmem:[#allocation9 + $0x9d8] sm:$0xff] }
 0x314   : > { %4567 = vmatprep.subr.bf16.mxu0 %v5528_v59  ;;  %4731 = vmatprep.subr.bf16.mxu1 %v5530_v61  ;;  %v1415_v59 = vld [vmem:[#allocation9 + $0x9f8] sm:$0xff]  ;;  %v5583_v61 = vcombine.low %v1402_v46, %v1406_v47  ;;  %v5592_v63 = vcombine.high %v1410_v45, %v1414_v56 }
 0x315   : > { %v5594_v0 = vcombine.high %v1411_v58, %v1415_v59  ;;  %v5593_v10 = vcombine.low %v1411_v58, %v1415_v59  ;;  %v1474_v59 = vld [vmem:[#allocation9 + $0xbd0] sm:$0xff] }
 0x317   : > { %4568 = vmatpush1.bf16.msra.mxu0 %v5527_v3  ;;  %4732 = vmatpush1.bf16.msra.mxu1 %v5529_v6  ;;  %v1422_v3 = vld [vmem:[#allocation9 + $0xa30] sm:$0xff]  ;;  %v1419_v6 = vld [vmem:[#allocation9 + $0xa18] sm:$0xff] }
 0x318   : > { %4578 = vmatprep.subr.bf16.mxu0 %v5536_v7  ;;  %4742 = vmatprep.subr.bf16.mxu1 %v5538_v8  ;;  %v1423_v7 = vld [vmem:[#allocation9 + $0xa38] sm:$0xff]  ;;  %v5591_v8 = vcombine.low %v1410_v45, %v1414_v56  ;;  %v5600_v11 = vcombine.high %v1418_v2, %v1422_v3 }
 0x319   : > { %v5602_v16 = vcombine.high %v1419_v6, %v1423_v7  ;;  %v5601_v23 = vcombine.low %v1419_v6, %v1423_v7  ;;  %v1482_v7 = vld [vmem:[#allocation9 + $0xc10] sm:$0xff] }
 0x31a   : > { %4570 = vmatmul.mubr.bf16.vlgmr.msra.gmra.mrb[4].mxu0 %v6567_v1  ;;  %4734 = vmatmul.mubr.bf16.vlgmr.msra.gmra.mrb[4].mxu1 %v6567_v1  ;;  %v5553_v1 = vcombine.low %v1371_v27, %v1375_v57  ;;  %v1434_v57 = vld [vmem:[#allocation9 + $0xa90] sm:$0xff] }
 0x31b   : > { %4579 = vmatpush1.bf16.msra.mxu0 %v5535_v26  ;;  %4743 = vmatpush1.bf16.msra.mxu1 %v5537_v21  ;;  %v1430_v26 = vld [vmem:[#allocation9 + $0xa70] sm:$0xff]  ;;  %v1427_v21 = vld [vmem:[#allocation9 + $0xa58] sm:$0xff] }
 0x31c   : > { %4580 = vmatprep.subr.bf16.mxu0 %v5544_v22  ;;  %4744 = vmatprep.subr.bf16.mxu1 %v5546_v42  ;;  %v1431_v22 = vld [vmem:[#allocation9 + $0xa78] sm:$0xff]  ;;  %v5599_v42 = vcombine.low %v1418_v2, %v1422_v3  ;;  %v5608_v25 = vcombine.high %v1426_v17, %v1430_v26 }
 0x31d   : > { %4610 = vmatprep.mubr.bf16.mxu0 %v6570_v15  ;;  %4774 = vmatprep.mubr.bf16.mxu1 %v6570_v15  ;;  %v5570_v15 = vcombine.high %v1387_v35, %v1391_v36  ;;  %v5610_v27 = vcombine.high %v1427_v21, %v1431_v22  ;;  %v5609_v30 = vcombine.low %v1427_v21, %v1431_v22  ;;  %v1450_v36 = vld [vmem:[#allocation9 + $0xb10] sm:$0xff] }
 0x31e   : > { %v1490_v22 = vld [vmem:[#allocation9 + $0xc50] sm:$0xff] }
 0x31f   : > { %4581 = vmatpush1.bf16.msra.mxu0 %v5543_v28  ;;  %4745 = vmatpush1.bf16.msra.mxu1 %v5545_v29  ;;  %v1438_v28 = vld [vmem:[#allocation9 + $0xab0] sm:$0xff]  ;;  %v1435_v29 = vld [vmem:[#allocation9 + $0xa98] sm:$0xff] }
 0x320   : > { %4582 = vmatprep.subr.bf16.mxu0 %v5552_v44  ;;  %4746 = vmatprep.subr.bf16.mxu1 %v5554_v60  ;;  %v1439_v44 = vld [vmem:[#allocation9 + $0xab8] sm:$0xff]  ;;  %v5607_v60 = vcombine.low %v1426_v17, %v1430_v26  ;;  %v5616_v31 = vcombine.high %v1434_v57, %v1438_v28 }
 0x321   : > { %v5618_v34 = vcombine.high %v1435_v29, %v1439_v44  ;;  %v5617_v32 = vcombine.low %v1435_v29, %v1439_v44  ;;  %v1498_v44 = vld [vmem:[#allocation9 + $0xc90] sm:$0xff] }
 0x323   : > { %4583 = vmatpush1.bf16.msra.mxu0 %v5551_v53  ;;  %4747 = vmatpush1.bf16.msra.mxu1 %v5553_v1  ;;  %v1446_v53 = vld [vmem:[#allocation9 + $0xaf0] sm:$0xff]  ;;  %v1443_v1 = vld [vmem:[#allocation9 + $0xad8] sm:$0xff] }
 0x324   : > { %4584 = vmatprep.subr.bf16.mxu0 %v5560_v14  ;;  %4748 = vmatprep.subr.bf16.mxu1 %v5562_v24  ;;  %v1447_v14 = vld [vmem:[#allocation9 + $0xaf8] sm:$0xff]  ;;  %v5615_v24 = vcombine.low %v1434_v57, %v1438_v28  ;;  %v5624_v33 = vcombine.high %v1442_v20, %v1446_v53 }
 0x325   : > { %v5626_v35 = vcombine.high %v1443_v1, %v1447_v14  ;;  %v5625_v38 = vcombine.low %v1443_v1, %v1447_v14  ;;  %v1506_v14 = vld [vmem:[#allocation9 + $0xcd0] sm:$0xff] }
 0x327   : > { %4585 = vmatpush1.bf16.msra.mxu0 %v5559_v39  ;;  %4749 = vmatpush1.bf16.msra.mxu1 %v5561_v4  ;;  %v1454_v39 = vld [vmem:[#allocation9 + $0xb30] sm:$0xff]  ;;  %v1451_v4 = vld [vmem:[#allocation9 + $0xb18] sm:$0xff] }
 0x328   : > { %4586 = vmatprep.subr.bf16.mxu0 %v5568_v37  ;;  %4750 = vmatprep.subr.bf16.mxu1 %v5570_v15  ;;  %v1455_v37 = vld [vmem:[#allocation9 + $0xb38] sm:$0xff]  ;;  %v5623_v15 = vcombine.low %v1442_v20, %v1446_v53  ;;  %v5632_v9 = vcombine.high %v1450_v36, %v1454_v39 }
 0x329   : > { %v5634_v19 = vcombine.high %v1451_v4, %v1455_v37  ;;  %v5633_v46 = vcombine.low %v1451_v4, %v1455_v37  ;;  %v1514_v4 = vld [vmem:[#allocation9 + $0xd10] sm:$0xff] }
 0x32a   : > { %v1518_v37 = vld [vmem:[#allocation9 + $0xd30] sm:$0xff] }
 0x32b   : > { %4587 = vmatpush1.bf16.msra.mxu0 %v5567_v40  ;;  %4751 = vmatpush1.bf16.msra.mxu1 %v5569_v41  ;;  %v1462_v40 = vld [vmem:[#allocation9 + $0xb70] sm:$0xff]  ;;  %v1459_v41 = vld [vmem:[#allocation9 + $0xb58] sm:$0xff] }
 0x32c   : > { %4588 = vmatprep.subr.bf16.mxu0 %v5576_v43  ;;  %4752 = vmatprep.subr.bf16.mxu1 %v5578_v12  ;;  %v1463_v43 = vld [vmem:[#allocation9 + $0xb78] sm:$0xff]  ;;  %v5631_v12 = vcombine.low %v1450_v36, %v1454_v39  ;;  %v5640_v47 = vcombine.high %v1458_v13, %v1462_v40 }
 0x32d   : > { %v5642_v48 = vcombine.high %v1459_v41, %v1463_v43  ;;  %v5641_v45 = vcombine.low %v1459_v41, %v1463_v43  ;;  %v1526_v41 = vld [vmem:[#allocation9 + $0xd70] sm:$0xff]  ;;  %v6626_v43 = vld [vmem:[#allocation9 + $0xd58] sm:$0xff] }
 0x32f   : > { %4589 = vmatpush1.bf16.msra.mxu0 %v5575_v51  ;;  %4753 = vmatpush1.bf16.msra.mxu1 %v5577_v52  ;;  %v1470_v51 = vld [vmem:[#allocation9 + $0xbb0] sm:$0xff]  ;;  %v1467_v52 = vld [vmem:[#allocation9 + $0xb98] sm:$0xff] }
 0x330   : > { %4590 = vmatprep.subr.bf16.mxu0 %v5584_v54  ;;  %4754 = vmatprep.subr.bf16.mxu1 %v5586_v55  ;;  %v1471_v54 = vld [vmem:[#allocation9 + $0xbb8] sm:$0xff]  ;;  %v5639_v55 = vcombine.low %v1458_v13, %v1462_v40  ;;  %v5648_v56 = vcombine.high %v1466_v50, %v1470_v51  ;;  %v5696_v13 = vcombine.high %v1514_v4, %v1518_v37  ;;  %v1522_v40 = vld [vmem:[#allocation9 + $0xd50] sm:$0xff] }
 0x331   : > { %v5650_v58 = vcombine.high %v1467_v52, %v1471_v54  ;;  %v5649_v2 = vcombine.low %v1467_v52, %v1471_v54  ;;  %v6638_v52 = vld [vmem:[#allocation9 + $0xdd0] sm:$0xff] }
 0x333   : > { %4591 = vmatpush1.bf16.msra.mxu0 %v5583_v61  ;;  %4755 = vmatpush1.bf16.msra.mxu1 %v5585_v62  ;;  %v1478_v61 = vld [vmem:[#allocation9 + $0xbf0] sm:$0xff]  ;;  %v1475_v62 = vld [vmem:[#allocation9 + $0xbd8] sm:$0xff] }
 0x334   : > { %4592 = vmatprep.subr.bf16.mxu0 %v5592_v63  ;;  %4756 = vmatprep.subr.bf16.mxu1 %v5594_v0  ;;  %v1479_v63 = vld [vmem:[#allocation9 + $0xbf8] sm:$0xff]  ;;  %v5647_v0 = vcombine.low %v1466_v50, %v1470_v51  ;;  %v5656_v3 = vcombine.high %v1474_v59, %v1478_v61 }
 0x335   : > { %v5658_v6 = vcombine.high %v1475_v62, %v1479_v63  ;;  %v5657_v17 = vcombine.low %v1475_v62, %v1479_v63  ;;  %v6634_v50 = vld [vmem:[#allocation9 + $0xd98] sm:$0xff]  ;;  %v6648_v62 = vld [vmem:[#allocation9 + $0xe10] sm:$0xff] }
 0x336   : > { %v6636_v51 = vld [vmem:[#allocation9 + $0xdb8] sm:$0xff]  ;;  %v6650_v63 = vld [vmem:[#allocation9 + $0xe30] sm:$0xff] }
 0x337   : > { %4593 = vmatpush1.bf16.msra.mxu0 %v5591_v8  ;;  %4757 = vmatpush1.bf16.msra.mxu1 %v5593_v10  ;;  %v1486_v8 = vld [vmem:[#allocation9 + $0xc30] sm:$0xff]  ;;  %v1483_v10 = vld [vmem:[#allocation9 + $0xc18] sm:$0xff] }
 0x338   : > { %4594 = vmatprep.subr.bf16.mxu0 %v5600_v11  ;;  %4758 = vmatprep.subr.bf16.mxu1 %v5602_v16  ;;  %v1487_v11 = vld [vmem:[#allocation9 + $0xc38] sm:$0xff]  ;;  %v5655_v16 = vcombine.low %v1474_v59, %v1478_v61  ;;  %v5664_v26 = vcombine.high %v1482_v7, %v1486_v8  ;;  %v5703_v59 = vcombine.low %v1522_v40, %v1526_v41 }
 0x339   : > { %v5666_v21 = vcombine.high %v1483_v10, %v1487_v11  ;;  %v5665_v57 = vcombine.low %v1483_v10, %v1487_v11  ;;  %v6664_v10 = vld [vmem:[#allocation9 + $0xe50] sm:$0xff] }
 0x33a   : > { %v6666_v11 = vld [vmem:[#allocation9 + $0xe70] sm:$0xff] }
 0x33b   : > { %4595 = vmatpush1.bf16.msra.mxu0 %v5599_v42  ;;  %4759 = vmatpush1.bf16.msra.mxu1 %v5601_v23  ;;  %v1494_v42 = vld [vmem:[#allocation9 + $0xc70] sm:$0xff]  ;;  %v1491_v23 = vld [vmem:[#allocation9 + $0xc58] sm:$0xff] }
 0x33c   : > { %4596 = vmatprep.subr.bf16.mxu0 %v5608_v25  ;;  %4760 = vmatprep.subr.bf16.mxu1 %v5610_v27  ;;  %v1495_v25 = vld [vmem:[#allocation9 + $0xc78] sm:$0xff]  ;;  %v5663_v27 = vcombine.low %v1482_v7, %v1486_v8  ;;  %v5672_v28 = vcombine.high %v1490_v22, %v1494_v42  ;;  %v5713_v7 = vcombine.low %v6634_v50, %v6636_v51 }
 0x33d   : > { %v5674_v29 = vcombine.high %v1491_v23, %v1495_v25  ;;  %v5673_v20 = vcombine.low %v1491_v23, %v1495_v25  ;;  %v6662_v8 = vld [vmem:[#allocation9 + $0xe38] sm:$0xff]  ;;  %v5727_v25 = vcombine.low %v6648_v62, %v6650_v63 }
 0x33f   : > { %4597 = vmatpush1.bf16.msra.mxu0 %v5607_v60  ;;  %4761 = vmatpush1.bf16.msra.mxu1 %v5609_v30  ;;  %v1502_v60 = vld [vmem:[#allocation9 + $0xcb0] sm:$0xff]  ;;  %v1499_v30 = vld [vmem:[#allocation9 + $0xc98] sm:$0xff] }
 0x340   : > { %4598 = vmatprep.subr.bf16.mxu0 %v5616_v31  ;;  %4762 = vmatprep.subr.bf16.mxu1 %v5618_v34  ;;  %v1503_v31 = vld [vmem:[#allocation9 + $0xcb8] sm:$0xff]  ;;  %v5671_v34 = vcombine.low %v1490_v22, %v1494_v42  ;;  %v5680_v53 = vcombine.high %v1498_v44, %v1502_v60 }
 0x341   : > { %v5682_v1 = vcombine.high %v1499_v30, %v1503_v31  ;;  %v6676_v22 = vld [vmem:[#allocation9 + $0xe58] sm:$0xff] }
 0x342   : > { %v6678_v42 = vld [vmem:[#allocation9 + $0xe78] sm:$0xff] }
 0x343   : > { %4599 = vmatpush1.bf16.msra.mxu0 %v5615_v24  ;;  %4763 = vmatpush1.bf16.msra.mxu1 %v5617_v32  ;;  %v1510_v24 = vld [vmem:[#allocation9 + $0xcf0] sm:$0xff]  ;;  %v1507_v32 = vld [vmem:[#allocation9 + $0xcd8] sm:$0xff] }
 0x344   : > { %4600 = vmatprep.subr.bf16.mxu0 %v5624_v33  ;;  %4764 = vmatprep.subr.bf16.mxu1 %v5626_v35  ;;  %v1511_v33 = vld [vmem:[#allocation9 + $0xcf8] sm:$0xff]  ;;  %v5679_v35 = vcombine.low %v1498_v44, %v1502_v60  ;;  %v5688_v36 = vcombine.high %v1506_v14, %v1510_v24  ;;  %v5735_v44 = vcombine.low %v6664_v10, %v6666_v11 }
 0x345   : > { %v5690_v39 = vcombine.high %v1507_v32, %v1511_v33  ;;  %v5736_v60 = vcombine.high %v6664_v10, %v6666_v11 }
 0x347   : > { %4601 = vmatpush1.bf16.msra.mxu0 %v5623_v15  ;;  %4765 = vmatpush1.bf16.msra.mxu1 %v5625_v38  ;;  %v1515_v15 = vld [vmem:[#allocation9 + $0xd18] sm:$0xff] }
 0x348   : > { %4602 = vmatprep.subr.bf16.mxu0 %v5632_v9  ;;  %4766 = vmatprep.subr.bf16.mxu1 %v5634_v19  ;;  %v1519_v38 = vld [vmem:[#allocation9 + $0xd38] sm:$0xff]  ;;  %v5687_v9 = vcombine.low %v1506_v14, %v1510_v24  ;;  %v5689_v19 = vcombine.low %v1507_v32, %v1511_v33 }
 0x349   : > { %v5697_v54 = vcombine.low %v1515_v15, %v1519_v38 }
 0x34b   : > { %4603 = vmatpush1.bf16.msra.mxu0 %v5631_v12  ;;  %4767 = vmatpush1.bf16.msra.mxu1 %v5633_v46  ;;  %v6628_v12 = vld [vmem:[#allocation9 + $0xd78] sm:$0xff]  ;;  %v6630_v46 = vld [vmem:[#allocation9 + $0xd90] sm:$0xff] }
 0x34c   : > { %4604 = vmatprep.subr.bf16.mxu0 %v5640_v47  ;;  %4768 = vmatprep.subr.bf16.mxu1 %v5642_v48  ;;  %v6632_v47 = vld [vmem:[#allocation9 + $0xdb0] sm:$0xff]  ;;  %v5695_v48 = vcombine.low %v1514_v4, %v1518_v37  ;;  %v5706_v61 = vcombine.high %v6626_v43, %v6628_v12 }
 0x34f   : > { %4605 = vmatpush1.bf16.msra.mxu0 %v5639_v55  ;;  %4769 = vmatpush1.bf16.msra.mxu1 %v5641_v45  ;;  %v5704_v55 = vcombine.high %v1522_v40, %v1526_v41  ;;  %v6640_v45 = vld [vmem:[#allocation9 + $0xdf0] sm:$0xff] }
 0x350   : > { %4606 = vmatprep.subr.bf16.mxu0 %v5648_v56  ;;  %4770 = vmatprep.subr.bf16.mxu1 %v5650_v58  ;;  %v6642_v56 = vld [vmem:[#allocation9 + $0xdd8] sm:$0xff] }
 0x351   : > { %v6644_v58 = vld [vmem:[#allocation9 + $0xdf8] sm:$0xff] }
 0x352   : > { %v5722_v23 = vcombine.high %v6642_v56, %v6644_v58 }
 0x353   : > { %4607 = vmatpush1.bf16.msra.mxu0 %v5647_v0  ;;  %4771 = vmatpush1.bf16.msra.mxu1 %v5649_v2  ;;  %v6652_v0 = vld [vmem:[#allocation9 + $0xe18] sm:$0xff]  ;;  %v5705_v2 = vcombine.low %v6626_v43, %v6628_v12 }
 0x354   : > { %4608 = vmatprep.subr.bf16.mxu0 %v5656_v3  ;;  %4772 = vmatprep.subr.bf16.mxu1 %v5658_v6  ;;  %v5711_v3 = vcombine.low %v6630_v46, %v6632_v47  ;;  %v5712_v6 = vcombine.high %v6630_v46, %v6632_v47 }
 0x357   : > { %4609 = vmatpush1.bf16.msra.mxu0 %v5655_v16  ;;  %4773 = vmatpush1.bf16.msra.mxu1 %v5657_v17  ;;  %v5714_v16 = vcombine.high %v6634_v50, %v6636_v51  ;;  %v5719_v17 = vcombine.low %v6638_v52, %v6640_v45 }
 0x358   : > { %4619 = vmatprep.subr.bf16.mxu0 %v5664_v26  ;;  %4783 = vmatprep.subr.bf16.mxu1 %v5666_v21  ;;  %v5720_v26 = vcombine.high %v6638_v52, %v6640_v45  ;;  %v5721_v21 = vcombine.low %v6642_v56, %v6644_v58  ;;  %v1562_v52 = vld [vmem:[#allocation9 + $0xe90] sm:$0xff]  ;;  %v1563_v58 = vld [vmem:[#allocation9 + $0xe98] sm:$0xff] }
 0x359   : > { %v1566_v45 = vld [vmem:[#allocation9 + $0xeb0] sm:$0xff] }
 0x35a   : > { %4611 = vmatmul.mubr.bf16.vlgmr.msra.gmra.mrb[4].mxu0 %v6594_v5  ;;  %4775 = vmatmul.mubr.bf16.vlgmr.msra.gmra.mrb[4].mxu1 %v6594_v5  ;;  %v5681_v5 = vcombine.low %v1499_v30, %v1503_v31 }
 0x35b   : > { %4620 = vmatpush1.bf16.msra.mxu0 %v5663_v27  ;;  %4784 = vmatpush1.bf16.msra.mxu1 %v5665_v57  ;;  %v5728_v27 = vcombine.high %v6648_v62, %v6650_v63 }
 0x35c   : > { %4621 = vmatprep.subr.bf16.mxu0 %v5672_v28  ;;  %4785 = vmatprep.subr.bf16.mxu1 %v5674_v29  ;;  %v5729_v28 = vcombine.low %v6652_v0, %v6662_v8  ;;  %v5730_v29 = vcombine.high %v6652_v0, %v6662_v8 }
 0x35d   : > { %4651 = vmatprep.mubr.bf16.mxu0 %v6596_v18  ;;  %4815 = vmatprep.mubr.bf16.mxu1 %v6596_v18  ;;  %v5698_v18 = vcombine.high %v1515_v15, %v1519_v38 }
 0x35f   : > { %4622 = vmatpush1.bf16.msra.mxu0 %v5671_v34  ;;  %4786 = vmatpush1.bf16.msra.mxu1 %v5673_v20 }
 0x360   : > { %4623 = vmatprep.subr.bf16.mxu0 %v5680_v53  ;;  %4787 = vmatprep.subr.bf16.mxu1 %v5682_v1  ;;  %v5737_v53 = vcombine.low %v6676_v22, %v6678_v42  ;;  %v5738_v1 = vcombine.high %v6676_v22, %v6678_v42 }
 0x363   : > { %4624 = vmatpush1.bf16.msra.mxu0 %v5679_v35  ;;  %4788 = vmatpush1.bf16.msra.mxu1 %v5681_v5 }
 0x364   : > { %4625 = vmatprep.subr.bf16.mxu0 %v5688_v36  ;;  %4789 = vmatprep.subr.bf16.mxu1 %v5690_v39 }
 0x367   : > { %4626 = vmatpush1.bf16.msra.mxu0 %v5687_v9  ;;  %4790 = vmatpush1.bf16.msra.mxu1 %v5689_v19 }
 0x368   : > { %4627 = vmatprep.subr.bf16.mxu0 %v5696_v13  ;;  %4791 = vmatprep.subr.bf16.mxu1 %v5698_v18 }
 0x36b   : > { %4628 = vmatpush1.bf16.msra.mxu0 %v5695_v48  ;;  %4792 = vmatpush1.bf16.msra.mxu1 %v5697_v54 }
 0x36c   : > { %4629 = vmatprep.subr.bf16.mxu0 %v5704_v55  ;;  %4793 = vmatprep.subr.bf16.mxu1 %v5706_v61 }
 0x36d   : > { %v6686_v57 = vpop.f32.mrb[0].mxu0  ;;  %v6699_v34 = vpop.f32.mrb[0].mxu1 }
 0x36e   : > { %v4824_v30 = vrot.slane %v6686_v57, 4  ;;  %v4872_v31 = vmul.f32 %v6686_v57, %v6686_v57  ;;  %v6701_v20 = vpop.f32.mrb[1].mxu0  ;;  %v4836_v14 = vrot.slane %v6699_v34, 4  ;;  %v4874_v24 = vmul.f32 %v6699_v34, %v6699_v34  ;;  %v6713_v35 = vpop.f32.mrb[1].mxu1 }
 0x36f   : > { %v4830_v32 = vrot.slane %v6701_v20, 4  ;;  %v4873_v33 = vmul.f32 %v6701_v20, %v6701_v20  ;;  %v4329_v5 = vpop.f32.mrb[2].mxu0  ;;  %4630 = vmatpush1.bf16.msra.mxu0 %v5703_v59  ;;  %v4842_v4 = vrot.slane %v6713_v35, 4  ;;  %v4875_v37 = vmul.f32 %v6713_v35, %v6713_v35  ;;  %v4493_v15 = vpop.f32.mrb[2].mxu1  ;;  %4794 = vmatpush1.bf16.msra.mxu1 %v5705_v2 }
 0x370   : > { %v4825_v36 = vadd.f32 %v4824_v30, %v6686_v57  ;;  %v4880_v39 = vrot.slane %v4872_v31, 4  ;;  %v4330_v38 = vpop.f32.mrb[3].mxu0  ;;  %4631 = vmatprep.subr.bf16.mxu0 %v5712_v6  ;;  %v4837_v9 = vadd.f32 %v4836_v14, %v6699_v34  ;;  %v4892_v19 = vrot.slane %v4874_v24, 4  ;;  %v4494_v40 = vpop.f32.mrb[3].mxu1  ;;  %4795 = vmatprep.subr.bf16.mxu1 %v5714_v16 }
 0x371   : > { %v4831_v13 = vadd.f32 %v4830_v32, %v6701_v20  ;;  %v4886_v18 = vrot.slane %v4873_v33, 4  ;;  %v4843_v12 = vadd.f32 %v4842_v4, %v6713_v35  ;;  %v4898_v46 = vrot.slane %v4875_v37, 4 }
 0x372   : > { %v4826_v41 = vrot.slane %v4825_v36, 2  ;;  %v4881_v43 = vadd.f32 %v4880_v39, %v4872_v31  ;;  %v4838_v47 = vrot.slane %v4837_v9, 2  ;;  %v4893_v48 = vadd.f32 %v4892_v19, %v4874_v24 }
 0x373   : > { %v4832_v50 = vrot.slane %v4831_v13, 2  ;;  %v4887_v51 = vadd.f32 %v4886_v18, %v4873_v33  ;;  %4632 = vmatpush1.bf16.msra.mxu0 %v5711_v3  ;;  %v4844_v59 = vrot.slane %v4843_v12, 2  ;;  %v4899_v61 = vadd.f32 %v4898_v46, %v4875_v37  ;;  %4796 = vmatpush1.bf16.msra.mxu1 %v5713_v7 }
 0x374   : > { %v4827_v54 = vadd.f32 %v4826_v41, %v4825_v36  ;;  %v4882_v55 = vrot.slane %v4881_v43, 2  ;;  %4633 = vmatprep.subr.bf16.mxu0 %v5720_v26  ;;  %v4839_v2 = vadd.f32 %v4838_v47, %v4837_v9  ;;  %v4894_v6 = vrot.slane %v4893_v48, 2  ;;  %4797 = vmatprep.subr.bf16.mxu1 %v5722_v23 }
 0x375   : > { %v4833_v30 = vadd.f32 %v4832_v50, %v4831_v13  ;;  %v4888_v16 = vrot.slane %v4887_v51, 2  ;;  %v4845_v32 = vadd.f32 %v4844_v59, %v4843_v12  ;;  %v4900_v5 = vrot.slane %v4899_v61, 2 }
 0x376   : > { %v4828_v31 = vrot.slane %v4827_v54, 1  ;;  %v4883_v14 = vadd.f32 %v4882_v55, %v4881_v43  ;;  %v4840_v39 = vrot.slane %v4839_v2, 1  ;;  %v4895_v24 = vadd.f32 %v4894_v6, %v4893_v48  ;;  %v1574_v48 = vld [vmem:[#allocation9 + $0xef0] sm:$0xff] }
 0x377   : > { %v4834_v4 = vrot.slane %v4833_v30, 1  ;;  %v4889_v33 = vadd.f32 %v4888_v16, %v4887_v51  ;;  %4634 = vmatpush1.bf16.msra.mxu0 %v5719_v17  ;;  %v4846_v26 = vrot.slane %v4845_v32, 1  ;;  %v4901_v36 = vadd.f32 %v4900_v5, %v4899_v61  ;;  %4798 = vmatpush1.bf16.msra.mxu1 %v5721_v21  ;;  %v1567_v21 = vld [vmem:[#allocation9 + $0xeb8] sm:$0xff] }
 0x378   : > { %v4829_v3 = vadd.f32 %v4828_v31, %v4827_v54  ;;  %v4884_v7 = vrot.slane %v4883_v14, 1  ;;  %4635 = vmatprep.subr.bf16.mxu0 %v5728_v27  ;;  %v4841_v23 = vadd.f32 %v4840_v39, %v4839_v2  ;;  %v4896_v37 = vrot.slane %v4895_v24, 1  ;;  %4799 = vmatprep.subr.bf16.mxu1 %v5730_v29  ;;  %v1578_v31 = vld [vmem:[#allocation9 + $0xf10] sm:$0xff]  ;;  %v1583_v5 = vld [vmem:[#allocation9 + $0xf38] sm:$0xff] }
 0x379   : > { %v4835_v15 = vadd.f32 %v4834_v4, %v4833_v30  ;;  %v4890_v38 = vrot.slane %v4889_v33, 1  ;;  %v4847_v19 = vadd.f32 %v4846_v26, %v4845_v32  ;;  %v4902_v56 = vrot.slane %v4901_v36, 1  ;;  %v1579_v32 = vld [vmem:[#allocation9 + $0xf18] sm:$0xff]  ;;  %v1590_v26 = vld [vmem:[#allocation9 + $0xf70] sm:$0xff] }
 0x37a   : > { %v4885_v17 = vadd.f32 %v4884_v7, %v4883_v14  ;;  %v6734_v9 = vmul.f32 0.125, %v4829_v3  ;;  %v4897_v13 = vadd.f32 %v4896_v37, %v4895_v24  ;;  %v6736_v18 = vmul.f32 0.125, %v4841_v23  ;;  %v1582_v14 = vld [vmem:[#allocation9 + $0xf30] sm:$0xff]  ;;  %v1587_v23 = vld [vmem:[#allocation9 + $0xf58] sm:$0xff] }
 0x37b   : > { %v4891_v27 = vadd.f32 %v4890_v38, %v4889_v33  ;;  %v6738_v40 = vmul.f32 0.125, %v4835_v15  ;;  %4636 = vmatpush1.bf16.msra.mxu0 %v5727_v25  ;;  %v4903_v43 = vadd.f32 %v4902_v56, %v4901_v36  ;;  %4800 = vmatpush1.bf16.msra.mxu1 %v5729_v28  ;;  %v5744_v12 = vcombine.high %v1562_v52, %v1566_v45  ;;  %v1570_v25 = vld [vmem:[#allocation9 + $0xed0] sm:$0xff]  ;;  %v1571_v28 = vld [vmem:[#allocation9 + $0xed8] sm:$0xff] }
 0x37c   : > { %v4936_v29 = vmul.f32 0.125, %v4885_v17  ;;  %v4944_v41 = vmul.f32 %v6734_v9, %v6734_v9  ;;  %4637 = vmatprep.subr.bf16.mxu0 %v5736_v60  ;;  %v4938_v46 = vmul.f32 0.125, %v4897_v13  ;;  %v4946_v47 = vmul.f32 %v6736_v18, %v6736_v18  ;;  %4801 = vmatprep.subr.bf16.mxu1 %v5738_v1  ;;  %v1575_v60 = vld [vmem:[#allocation9 + $0xef8] sm:$0xff]  ;;  %v1586_v7 = vld [vmem:[#allocation9 + $0xf50] sm:$0xff] }
 0x37d   : > { %v4937_v62 = vmul.f32 0.125, %v4891_v27  ;;  %v5746_v63 = vcombine.high %v1563_v58, %v1567_v21  ;;  %v4945_v0 = vmul.f32 %v6738_v40, %v6738_v40  ;;  %v6758_v8 = vmul.f32 0.125, %v4847_v19  ;;  %v1591_v37 = vld [vmem:[#allocation9 + $0xf78] sm:$0xff]  ;;  %v1594_v19 = vld [vmem:[#allocation9 + $0xf90] sm:$0xff] }
 0x37e   : > { %v4952_v50 = vsub.f32 %v4936_v29, %v4944_v41  ;;  %v4954_v51 = vsub.f32 %v4938_v46, %v4946_v47  ;;  %v4939_v54 = vmul.f32 0.125, %v4903_v43  ;;  %v5743_v55 = vcombine.low %v1562_v52, %v1566_v45  ;;  %v1598_v56 = vld [vmem:[#allocation9 + $0xfb0] sm:$0xff]  ;;  %v6772_v29 = vld [vmem:[#allocation10] sm:$0xff] }
 0x37f   : > { %4638 = vmatpush1.bf16.msra.mxu0 %v5735_v44  ;;  %v5745_v59 = vcombine.low %v1563_v58, %v1567_v21  ;;  %v4953_v61 = vsub.f32 %v4937_v62, %v4945_v0  ;;  %v4947_v2 = vmul.f32 %v6758_v8, %v6758_v8  ;;  %4802 = vmatpush1.bf16.msra.mxu1 %v5737_v53  ;;  %v5018_v39 = vlaneseq  ;;  %v1595_v58 = vld [vmem:[#allocation9 + $0xf98] sm:$0xff]  ;;  %v1602_v47 = vld [vmem:[#allocation9 + $0xfd0] sm:$0xff] }
 0x380   : > { %v4960_v1 = vmax.f32 %v4952_v50, 0.0  ;;  %4639 = vmatprep.subr.bf16.mxu0 %v5744_v12  ;;  %v5752_v6 = vcombine.high %v1570_v25, %v1574_v48  ;;  %v4962_v30 = vmax.f32 %v4954_v51, 0.0  ;;  %4803 = vmatprep.subr.bf16.mxu1 %v5746_v63  ;;  %v5754_v16 = vcombine.high %v1571_v28, %v1575_v60  ;;  %v1599_v21 = vld [vmem:[#allocation9 + $0xfb8] sm:$0xff]  ;;  %v1606_v62 = vld [vmem:[#allocation9 + $0xff0] sm:$0xff] }
 0x381   : > { %v4961_v11 = vmax.f32 %v4953_v61, 0.0  ;;  %v4955_v44 = vsub.f32 %v4939_v54, %v4947_v2  ;;  %v5751_v4 = vcombine.low %v1570_v25, %v1574_v48  ;;  %v5753_v33 = vcombine.low %v1571_v28, %v1575_v60  ;;  %v1603_v50 = vld [vmem:[#allocation9 + $0xfd8] sm:$0xff] }
 0x382   : > { %v4976_v10 = vadd.f32 1e-05, %v4960_v1  ;;  %v4978_v24 = vadd.f32 1e-05, %v4962_v30  ;;  %v5760_v53 = vcombine.high %v1578_v31, %v1582_v14  ;;  %v5762_v3 = vcombine.high %v1579_v32, %v1583_v5  ;;  %v1607_v0 = vld [vmem:[#allocation9 + $0xff8] sm:$0xff] }
 0x383   : > { %4640 = vmatpush1.bf16.msra.mxu0 %v5743_v55  ;;  %v4977_v22 = vadd.f32 1e-05, %v4961_v11  ;;  %v4963_v42 = vmax.f32 %v4955_v44, 0.0  ;;  %4804 = vmatpush1.bf16.msra.mxu1 %v5745_v59  ;;  %v6769_v15 = vshrl.u32 %v5018_v39, 7  ;;  %v5759_v38 = vcombine.low %v1578_v31, %v1582_v14 }
 0x384   : > { %5934 = vrsqrt.f32 %v4976_v10  ;;  %4641 = vmatprep.subr.bf16.mxu0 %v5752_v6  ;;  %4805 = vmatprep.subr.bf16.mxu1 %v5754_v16  ;;  %v5761_v52 = vcombine.low %v1579_v32, %v1583_v5  ;;  %v5768_v45 = vcombine.high %v1586_v7, %v1590_v26  ;;  %v5770_v17 = vcombine.high %v1587_v23, %v1591_v37 }
 0x385   : > { %5936 = vrsqrt.f32 %v4978_v24  ;;  %v4979_v36 = vadd.f32 1e-05, %v4963_v42  ;;  %v5020_v13 = vsub.s32 0, %v6769_v15  ;;  %v5767_v27 = vcombine.low %v1586_v7, %v1590_v26 }
 0x386   : > { %5938 = vrsqrt.f32 %v4977_v22  ;;  %v5769_v41 = vcombine.low %v1587_v23, %v1591_v37  ;;  %v5776_v43 = vcombine.high %v1594_v19, %v1598_v56  ;;  %v4968_v12 = vsub.f32 %v6686_v57, %v6734_v9 }
 0x387   : > { %4642 = vmatpush1.bf16.msra.mxu0 %v5751_v4  ;;  %5940 = vrsqrt.f32 %v4979_v36  ;;  %4806 = vmatpush1.bf16.msra.mxu1 %v5753_v33  ;;  %v5778_v46 = vcombine.high %v1595_v58, %v1599_v21  ;;  %v4970_v25 = vsub.f32 %v6699_v34, %v6736_v18  ;;  %v5024_v48 = vsub.s32 1, %v6769_v15 }
 0x388   : > { %4643 = vmatprep.subr.bf16.mxu0 %v5760_v53  ;;  %4807 = vmatprep.subr.bf16.mxu1 %v5762_v3  ;;  %v5021_v51 = vrot.slane %v6772_v29, %v5020_v13  ;;  %v4969_v54 = vsub.f32 %v6701_v20, %v6738_v40  ;;  %v5775_v57 = vcombine.low %v1594_v19, %v1598_v56  ;;  %v5028_v59 = vsub.s32 2, %v6769_v15 }
 0x389   : > { %v5777_v34 = vcombine.low %v1595_v58, %v1599_v21  ;;  %v5784_v18 = vcombine.high %v1602_v47, %v1606_v62  ;;  %v4971_v2 = vsub.f32 %v6713_v35, %v6758_v8  ;;  %v5786_v6 = vcombine.high %v1603_v50, %v1607_v0 }
 0x38a   : > { %v5025_v20 = vrot.slane %v6772_v29, %v5024_v48  ;;  %v5032_v40 = vsub.s32 3, %v6769_v15  ;;  %v5783_v11 = vcombine.low %v1602_v47, %v1606_v62  ;;  %v5029_v44 = vrot.slane %v6772_v29, %v5028_v59 }
 0x38b   : > { %4644 = vmatpush1.bf16.msra.mxu0 %v5759_v38  ;;  %4808 = vmatpush1.bf16.msra.mxu1 %v5761_v52  ;;  %v5785_v32 = vcombine.low %v1603_v50, %v1607_v0 }
 0x38c   : > { %4645 = vmatprep.subr.bf16.mxu0 %v5768_v45  ;;  %4809 = vmatprep.subr.bf16.mxu1 %v5770_v17  ;;  %v5033_v22 = vrot.slane %v6772_v29, %v5032_v40 }
 0x38e   : > { %v5935_v63 = vpop.eup %5934 }
 0x38f   : > { %v5937_v28 = vpop.eup %5936  ;;  %v4992_v60 = vmul.f32 %v5935_v63, %v4968_v12  ;;  %4646 = vmatpush1.bf16.msra.mxu0 %v5767_v27  ;;  %4810 = vmatpush1.bf16.msra.mxu1 %v5769_v41 }
 0x390   : > { %v5939_v9 = vpop.eup %5938  ;;  %v4994_v55 = vmul.f32 %v5937_v28, %v4970_v25  ;;  %4647 = vmatprep.subr.bf16.mxu0 %v5776_v43  ;;  %4811 = vmatprep.subr.bf16.mxu1 %v5778_v46 }
 0x391   : > { %v5000_v1 = vmul.f32 0.2, %v4992_v60  ;;  %v4993_v61 = vmul.f32 %v5939_v9, %v4969_v54  ;;  %v5941_v30 = vpop.eup %5940 }
 0x392   : > { %v5002_v16 = vmul.f32 0.2, %v4994_v55  ;;  %v4995_v10 = vmul.f32 %v5941_v30, %v4971_v2 }
 0x393   : > { %v5008_v31 = vmax.f32 %v4992_v60, %v5000_v1  ;;  %v5001_v14 = vmul.f32 0.2, %v4993_v61  ;;  %4648 = vmatpush1.bf16.msra.mxu0 %v5775_v57  ;;  %4812 = vmatpush1.bf16.msra.mxu1 %v5777_v34 }
 0x394   : > { %4649 = vmatprep.subr.bf16.mxu0 %v5784_v18  ;;  %v5010_v35 = vmax.f32 %v4994_v55, %v5002_v16  ;;  %v5003_v24 = vmul.f32 0.2, %v4995_v10  ;;  %4813 = vmatprep.subr.bf16.mxu1 %v5786_v6 }
 0x395   : > { %v5058_v5 = vmul.f32 %v5021_v51, %v5008_v31  ;;  %v5009_v8 = vmax.f32 %v4993_v61, %v5001_v14 }
 0x396   : > { %v5011_v33 = vmax.f32 %v4995_v10, %v5003_v24  ;;  %v5060_v42 = vmul.f32 %v5029_v44, %v5010_v35 }
 0x397   : > { %v5059_v4 = vmul.f32 %v5025_v20, %v5009_v8  ;;  %4650 = vmatpush1.bf16.msra.mxu0 %v5783_v11  ;;  %4814 = vmatpush1.bf16.msra.mxu1 %v5785_v32 }
 0x398   : > { %v5061_v3 = vmul.f32 %v5033_v22, %v5011_v33 }
 0x399   : > { %v5066_v53 = vadd.f32 %v5059_v4, %v5058_v5 }
 0x39a   : > { %4652 = vmatmul.mubr.bf16.vlgmr.msra.gmra.mrb[4].mxu0 %v6608_v49  ;;  %4816 = vmatmul.mubr.bf16.vlgmr.msra.gmra.mrb[4].mxu1 %v6608_v49 }
 0x39b   : > { %v5067_v7 = vadd.f32 %v5066_v53, %v5060_v42 }
 0x39d   : > { %v6791_v26 = vadd.f32 %v5067_v7, %v5061_v3 }
 0x46d   : > { %v6793_v36 = vpop.f32.mrb[4].mxu0  ;;  %v6798_v38 = vpop.f32.mrb[4].mxu1 }
 0x46e   : > { %v4848_v23 = vrot.slane %v6793_v36, 4  ;;  %v4876_v37 = vmul.f32 %v6793_v36, %v6793_v36  ;;  %v6800_v52 = vpop.f32.mrb[5].mxu0  ;;  %v4860_v45 = vrot.slane %v6798_v38, 4  ;;  %v4878_v49 = vmul.f32 %v6798_v38, %v6798_v38  ;;  %v6808_v56 = vpop.f32.mrb[5].mxu1 }
 0x46f   : > { %v4854_v17 = vrot.slane %v6800_v52, 4  ;;  %v4877_v19 = vmul.f32 %v6800_v52, %v6800_v52  ;;  %v4657_v58 = vpop.f32.mrb[6].mxu0  ;;  %v4866_v27 = vrot.slane %v6808_v56, 4  ;;  %v4879_v41 = vmul.f32 %v6808_v56, %v6808_v56  ;;  %v4821_v43 = vpop.f32.mrb[6].mxu1 }
 0x470   : > { %v4849_v21 = vadd.f32 %v4848_v23, %v6793_v36  ;;  %v4904_v13 = vrot.slane %v4876_v37, 4  ;;  %v4658_v12 = vpop.f32.mrb[7].mxu0  ;;  %v4861_v46 = vadd.f32 %v4860_v45, %v6798_v38  ;;  %v4916_v47 = vrot.slane %v4878_v49, 4  ;;  %v4822_v25 = vpop.f32.mrb[7].mxu1 }
 0x471   : > { %v4855_v62 = vadd.f32 %v4854_v17, %v6800_v52  ;;  %v4910_v63 = vrot.slane %v4877_v19, 4  ;;  %v4867_v0 = vadd.f32 %v4866_v27, %v6808_v56  ;;  %v4922_v28 = vrot.slane %v4879_v41, 4 }
 0x472   : > { %v4850_v48 = vrot.slane %v4849_v21, 2  ;;  %v4905_v50 = vadd.f32 %v4904_v13, %v4876_v37  ;;  %v4862_v60 = vrot.slane %v4861_v46, 2  ;;  %v4917_v51 = vadd.f32 %v4916_v47, %v4878_v49 }
 0x473   : > { %v4856_v54 = vrot.slane %v4855_v62, 2  ;;  %v4911_v57 = vadd.f32 %v4910_v63, %v4877_v19  ;;  %v4868_v59 = vrot.slane %v4867_v0, 2  ;;  %v4923_v34 = vadd.f32 %v4922_v28, %v4879_v41 }
 0x474   : > { %v4851_v9 = vadd.f32 %v4850_v48, %v4849_v21  ;;  %v4906_v55 = vrot.slane %v4905_v50, 2  ;;  %v4863_v18 = vadd.f32 %v4862_v60, %v4861_v46  ;;  %v4918_v1 = vrot.slane %v4917_v51, 2 }
 0x475   : > { %v4857_v61 = vadd.f32 %v4856_v54, %v4855_v62  ;;  %v4912_v2 = vrot.slane %v4911_v57, 2  ;;  %v4869_v16 = vadd.f32 %v4868_v59, %v4867_v0  ;;  %v4924_v20 = vrot.slane %v4923_v34, 2 }
 0x476   : > { %v4852_v6 = vrot.slane %v4851_v9, 1  ;;  %v4907_v30 = vadd.f32 %v4906_v55, %v4905_v50  ;;  %v4864_v40 = vrot.slane %v4863_v18, 1  ;;  %v4919_v31 = vadd.f32 %v4918_v1, %v4917_v51 }
 0x477   : > { %v4858_v14 = vrot.slane %v4857_v61, 1  ;;  %v4913_v10 = vadd.f32 %v4912_v2, %v4911_v57  ;;  %v4870_v32 = vrot.slane %v4869_v16, 1  ;;  %v4925_v5 = vadd.f32 %v4924_v20, %v4923_v34 }
 0x478   : > { %v4853_v11 = vadd.f32 %v4852_v6, %v4851_v9  ;;  %v4908_v44 = vrot.slane %v4907_v30, 1  ;;  %v4865_v35 = vadd.f32 %v4864_v40, %v4863_v18  ;;  %v4920_v8 = vrot.slane %v4919_v31, 1 }
 0x479   : > { %v4859_v24 = vadd.f32 %v4858_v14, %v4857_v61  ;;  %v4914_v4 = vrot.slane %v4913_v10, 1  ;;  %v4871_v42 = vadd.f32 %v4870_v32, %v4869_v16  ;;  %v4926_v53 = vrot.slane %v4925_v5, 1 }
 0x47a   : > { %v4909_v33 = vadd.f32 %v4908_v44, %v4907_v30  ;;  %v4932_v22 = vmul.f32 0.125, %v4853_v11  ;;  %v4921_v3 = vadd.f32 %v4920_v8, %v4919_v31  ;;  %v4934_v7 = vmul.f32 0.125, %v4865_v35 }
 0x47b   : > { %v4915_v23 = vadd.f32 %v4914_v4, %v4913_v10  ;;  %v4933_v37 = vmul.f32 0.125, %v4859_v24  ;;  %v4927_v17 = vadd.f32 %v4926_v53, %v4925_v5  ;;  %v4935_v41 = vmul.f32 0.125, %v4871_v42 }
 0x47c   : > { %v4940_v45 = vmul.f32 0.125, %v4909_v33  ;;  %v4948_v49 = vmul.f32 %v4932_v22, %v4932_v22  ;;  %v4942_v19 = vmul.f32 0.125, %v4921_v3  ;;  %v4950_v58 = vmul.f32 %v4934_v7, %v4934_v7 }
 0x47d   : > { %v4941_v21 = vmul.f32 0.125, %v4915_v23  ;;  %v4949_v27 = vmul.f32 %v4933_v37, %v4933_v37  ;;  %v4943_v12 = vmul.f32 0.125, %v4927_v17  ;;  %v4951_v62 = vmul.f32 %v4935_v41, %v4935_v41 }
 0x47e   : > { %v4956_v13 = vsub.f32 %v4940_v45, %v4948_v49  ;;  %v4958_v43 = vsub.f32 %v4942_v19, %v4950_v58  ;;  %v4972_v54 = vsub.f32 %v6793_v36, %v4932_v22  ;;  %v5036_v57 = vsub.s32 4, %v6769_v15 }
 0x47f   : > { %v4957_v47 = vsub.f32 %v4941_v21, %v4949_v27  ;;  %v4959_v50 = vsub.f32 %v4943_v12, %v4951_v62  ;;  %v4974_v55 = vsub.f32 %v6798_v38, %v4934_v7  ;;  %v4973_v18 = vsub.f32 %v6800_v52, %v4933_v37 }
 0x480   : > { %v4964_v46 = vmax.f32 %v4956_v13, 0.0  ;;  %v4966_v63 = vmax.f32 %v4958_v43, 0.0  ;;  %v5040_v1 = vsub.s32 5, %v6769_v15  ;;  %v5044_v6 = vsub.s32 6, %v6769_v15 }
 0x481   : > { %v4965_v48 = vmax.f32 %v4957_v47, 0.0  ;;  %v4967_v60 = vmax.f32 %v4959_v50, 0.0  ;;  %v4975_v20 = vsub.f32 %v6808_v56, %v4935_v41  ;;  %v5037_v36 = vrot.slane %v6772_v29, %v5036_v57 }
 0x482   : > { %v4980_v25 = vadd.f32 1e-05, %v4964_v46  ;;  %v4982_v0 = vadd.f32 1e-05, %v4966_v63  ;;  %v5048_v38 = vsub.s32 7, %v6769_v15  ;;  %v5041_v52 = vrot.slane %v6772_v29, %v5040_v1 }
 0x483   : > { %v4981_v28 = vadd.f32 1e-05, %v4965_v48  ;;  %v4983_v51 = vadd.f32 1e-05, %v4967_v60  ;;  %v5045_v44 = vrot.slane %v6772_v29, %v5044_v6  ;;  %v5076_v23 = vstv %s5075_s24 }
 0x484   : > { %5942 = vrsqrt.f32 %v4980_v25  ;;  %v5049_v56 = vrot.slane %v6772_v29, %v5048_v38  ;;  %v5086_v29 = vand.u32 127, %v5018_v39 }
 0x485   : > { %5944 = vrsqrt.f32 %v4982_v0 }
 0x486   : > { %5946 = vrsqrt.f32 %v4981_v28  ;;  %v5089_v58 = vsub.s32 %v5086_v29, %v6769_v15 }
 0x487   : > { %5948 = vrsqrt.f32 %v4983_v51 }
 0x48e   : > { %v5943_v9 = vpop.eup %5942 }
 0x48f   : > { %v5945_v59 = vpop.eup %5944  ;;  %v4996_v34 = vmul.f32 %v5943_v9, %v4972_v54 }
 0x490   : > { %v5947_v61 = vpop.eup %5946  ;;  %v4998_v2 = vmul.f32 %v5945_v59, %v4974_v55 }
 0x491   : > { %v5004_v30 = vmul.f32 0.2, %v4996_v34  ;;  %v4997_v16 = vmul.f32 %v5947_v61, %v4973_v18  ;;  %v5949_v40 = vpop.eup %5948 }
 0x492   : > { %v5006_v31 = vmul.f32 0.2, %v4998_v2  ;;  %v4999_v11 = vmul.f32 %v5949_v40, %v4975_v20 }
 0x493   : > { %v5012_v14 = vmax.f32 %v4996_v34, %v5004_v30  ;;  %v5005_v10 = vmul.f32 0.2, %v4997_v16 }
 0x494   : > { %v5007_v32 = vmul.f32 0.2, %v4999_v11  ;;  %v5014_v35 = vmax.f32 %v4998_v2, %v5006_v31 }
 0x495   : > { %v5013_v5 = vmax.f32 %v4997_v16, %v5005_v10  ;;  %v5062_v8 = vmul.f32 %v5037_v36, %v5012_v14 }
 0x496   : > { %v5015_v24 = vmax.f32 %v4999_v11, %v5007_v32  ;;  %v5064_v22 = vmul.f32 %v5045_v44, %v5014_v35 }
 0x497   : > { %v5063_v4 = vmul.f32 %v5041_v52, %v5013_v5  ;;  %v5069_v33 = vadd.f32 %v6791_v26, %v5062_v8 }
 0x498   : > { %v5065_v53 = vmul.f32 %v5049_v56, %v5015_v24 }
 0x499   : > { %v5070_v42 = vadd.f32 %v5069_v33, %v5063_v4 }
 0x49b   : > { %v5071_v3 = vadd.f32 %v5070_v42, %v5064_v22 }
 0x49d   : > { %v5072_v7 = vadd.f32 %v5071_v3, %v5065_v53 }
 0x49f   : > { %5073 = vadd.xlane.f32.xlu0 %v5072_v7 }
 0x52c   : > { %v5074_v37 = vpop.xlane.xlu0 %5073 }
 0x52d   : > { %v5077_v45 = vadd.f32 %v5076_v23, %v5074_v37 }
 0x52f   : > { %v5787_v49 = vmul.f32 -1.442695, %v5077_v45 }
 0x531   : > { %5950 = vpow2.f32 %v5787_v49 }
 0x53b   : > { %v5951_v17 = vpop.eup %5950 }
 0x53c   : > { %v5081_v19 = vadd.f32 1.0, %v5951_v17 }
 0x53e   : > { %5952 = vrcp.f32 %v5081_v19 }
 0x548   : > { %v5953_v26 = vpop.eup %5952 }
 0x549   : > { %v5090_v21 = vrot.slane %v5953_v26, %v5089_v58 }
 0x54b   : > { %5093 = vst.msk [vmem:[#allocation12] sm:$0x1] %vm5092_vm0, %v5090_v21 }
 0x54c PF: > { %p5877_p0 = scmp.eq.s32.totalorder %s6209_s4, 1  ;;  %s6156_s25 = smov [#allocation12]  }
 0x54d   : > { %s5101_s8 = sshll.u32 %s6156_s25, 4  ;;  %s5102_s8 = int_to_ptr.vmem [resolvable:$true] %s5101_s8 }
 0x54e   : > { %s6070_s17 = scalar_lea.vmem %s5102_s8, 16  ;;  %s6076_s30 = scalar_lea.vmem %s5102_s8, 32 }
 0x54f   : > { %p6071_p2 = scmp.ne.s32.totalorder %s5102_s8, %s6070_s17  ;;  %p6077_p10 = scmp.lt.s32.totalorder %s5102_s8, %s5102_s8 }
 0x550   : > { %p6078_p1 = scmp.lt.s32.totalorder %s6076_s30, %s6070_s17 }
 0x551   : > { %p6072_p13 = pnand %p6071_p2, %p5877_p0 }
 0x552   : > { %p6079_p11 = por %p6078_p1, %p6077_p10 }
 0x553   : > { %p6073_p3 = pneg %p6072_p13 }
 0x555   : > { %p6080_p7 = pnand %p6079_p11, %p6073_p3 }
 0x557   : > { %6083 = shalt.err (!%p6080_p7)
}
 0x558   : > { %s6084_s26 = scalar_lea.hbm %s6873_s5, 16 }
 0x559   : > { %p6085_p8 = scmp.ne.s32.totalorder %s6873_s5, %s6084_s26  ;;  %p6090_p6 = scmp.lt.u32.totalorder %s6084_s26, %s6873_s5 }
 0x55b   : > { %p6086_p4 = pnand %p6085_p8, %p5877_p0 }
 0x55d   : > { %p6087_p5 = pneg %p6086_p4 }
 0x55f   : > { %p6092_p9 = pnand %p6090_p6, %p6087_p5 }
 0x561   : > { %6095 = shalt.err (!%p6092_p9)
}
 0x562   : > { %5855 = dma.vmem_to_hbm [thread:$0]  (%p5877_p0), %s5102_s8, 16, %s6873_s5, [#allocation6]  }
 0x563   : > { %6129 = dma.done.wait (%p5877_p0), [#allocation6], 16  }
 0x564   : > { %6131 = vsyncadd (%p5877_p0), [#allocation6], 4294967280 }
 0x565 PF: > { %p21_p12 = scmp.ge.s32.totalorder %s6287_s10, 4   ;;  %s6888_s20 = smov %s6138_s21 }
 0x566   : > { %s6889_s21 = smov %s6142_s22  ;;  %s6890_s22 = smov %s6300_s13 }
 0x567   : > { %s6891_s23 = smov %s6287_s10  ;;  %23 = sbr.rel (!%p21_p12) target bundleno = 9 (0x9), region = 106 }
 0x56e   :  { %5114 = vsyncpa [#allocation5], 1 }
 0x56f   :  { %5116 = vsyncpa [#allocation5 + $0x1], 1 }
 0x570   :  { %5117 = vsyncpa [#allocation8], 1 }
 0x571   :  { %5119 = vsyncpa [#allocation8 + $0x1], 1 }
 0x572   :  { %5120 = vsyncpa [#allocation11], 1 }
 0x573   :  { %5121 = vsyncpa [#allocation6], 1 }
 0x574   :  { %5123 = vsyncpa [#allocation6 + $0x1], 1 }

</bundles_post_ra>
